<compile_context>
chip_gen: v6e
topology: v6e:2x2x1
jax: 0.10.0
libtpu: 0.0.40
codegen_flags: <defaults>
</compile_context>

<pallas_src>
import jax
import jax.numpy as jnp
from jax.experimental import pallas as pl
from jax.experimental.pallas import tpu as pltpu

HIDDEN = 1000          # nn.Linear(1, 1000)
HIDDEN_PAD = 1024      # lane-multiple padding of the hidden dim
LANE = 128
TB_MAX = 512           # batch-tile lanes (safe for v7x 32 MiB scoped VMEM)


def _round_up(n, m):
    return ((n + m - 1) // m) * m


def _mlp_kernel(x_ref, w1_ref, b1_ref, w2_ref, b2_ref, o_ref):
    # x_ref : (1, TB)          lane-dense batch tile
    # w1/b1/w2_ref : (H_PAD, 1) column vectors (grid-invariant, VMEM resident)
    # b2_ref : (1, 1)          scalar in SMEM
    # o_ref : (1, TB)          lane-dense output tile
    x = x_ref[...]                                            # (1, TB)
    # Layer 1: outer-product multiply-add + ReLU  -> pure VPU (no K=1 matmul)
    h = jnp.maximum(w1_ref[...] * x + b1_ref[...], 0.0)       # (H_PAD, TB)
    # Layer 2: elementwise mul + reduce over hidden (sublane axis) -> VPU + XLU
    y = jnp.sum(h * w2_ref[...], axis=0, keepdims=True)       # (1, TB)
    o_ref[...] = jnp.maximum(y + b2_ref[0, 0], 0.0).astype(o_ref.dtype)


def neural_network_forward(x, w1, b1, w2, b2):
    """Forward pass of the module.

    x : (B, 1) f32;  w1: (1, HIDDEN);  b1: (1, HIDDEN) or (HIDDEN,);
    w2: (HIDDEN, 1);  b2: (1, 1).  Returns (B, 1) f32.
    Weights are the transpose of PyTorch's (out, in) convention — same math.
    """
    B = x.shape[0]

    # Batch tiling: lane-dense batch, tile size a multiple of 128.
    tb = min(TB_MAX, _round_up(B, LANE))
    b_pad = _round_up(B, tb)

    # Lane-dense input row (padded batch lanes are sliced off afterwards).
    x_row = jnp.zeros((1, b_pad), jnp.float32).at[0, :B].set(
        x.reshape(-1).astype(jnp.float32))

    # Hidden-padded column vectors; zero padding is mathematically inert
    # because relu(0*x + 0) = 0 and the padded w2 rows are 0.
    def col(v):
        v = v.reshape(-1).astype(jnp.float32)
        return jnp.zeros((HIDDEN_PAD, 1), jnp.float32).at[:v.shape[0], 0].set(v)

    w1c, b1c, w2c = col(w1), col(b1), col(w2)
    b2s = b2.reshape(1, 1).astype(jnp.float32)

    out_row = pl.pallas_call(
        _mlp_kernel,
        out_shape=jax.ShapeDtypeStruct((1, b_pad), jnp.float32),
        grid_spec=pltpu.PrefetchScalarGridSpec(
            num_scalar_prefetch=0,
            grid=(b_pad // tb,),
            in_specs=[
                pl.BlockSpec((1, tb), lambda i: (0, i)),            # x batch tile
                pl.BlockSpec((HIDDEN_PAD, 1), lambda i: (0, 0)),    # w1 (resident)
                pl.BlockSpec((HIDDEN_PAD, 1), lambda i: (0, 0)),    # b1 (resident)
                pl.BlockSpec((HIDDEN_PAD, 1), lambda i: (0, 0)),    # w2 (resident)
                pl.BlockSpec(memory_space=pltpu.MemorySpace.SMEM),  # b2 scalar
            ],
            out_specs=pl.BlockSpec((1, tb), lambda i: (0, i)),
        ),
        compiler_params=pltpu.CompilerParams(
            dimension_semantics=("parallel",)),
    )(x_row, w1c, b1c, w2c, b2s)

    return out_row[0, :B].reshape(B, 1)


def init_params(key):
    """Deterministic init mirroring the shapes in NeuralNetwork.__init__."""
    k1, k2, k3, k4 = jax.random.split(key, 4)
    w1 = jax.random.uniform(k1, (1, HIDDEN), jnp.float32, -1.0, 1.0)   # fan_in = 1
    b1 = jax.random.uniform(k2, (1, HIDDEN), jnp.float32, -1.0, 1.0)
    bound2 = 1.0 / jnp.sqrt(float(HIDDEN))
    w2 = jax.random.uniform(k3, (HIDDEN, 1), jnp.float32, -bound2, bound2)
    b2 = jax.random.uniform(k4, (1, 1), jnp.float32, -bound2, bound2)
    return w1, b1, w2, b2


if __name__ == "__main__":
    key = jax.random.PRNGKey(0)
    kx, kp = jax.random.split(key)

    B = 8  # small batch
    x = jax.random.normal(kx, (B, 1), jnp.float32)
    w1, b1, w2, b2 = init_params(kp)

    out = neural_network_forward(x, w1, b1, w2, b2)
    out = jax.block_until_ready(out)

    # Pure-JAX elementwise reference of the same math (no matmul precision path)
    h_ref = jnp.maximum(x * w1 + b1, 0.0)                              # (B, HIDDEN)
    y_ref = jnp.sum(h_ref * w2.reshape(1, -1), axis=1, keepdims=True) + b2
    ref = jnp.maximum(y_ref, 0.0)

    assert out.shape == (B, 1)
    assert jnp.allclose(out, ref, atol=1e-4, rtol=1e-4)

    print("KERNEL_OK")
</pallas_src>

<mosaic_0001>
module attributes {stable_mosaic.version = 11 : i64} {
  func.func @_mlp_kernel(%arg0: i32, %arg1: memref<1x128xf32, #tpu.memory_space<vmem>>, %arg2: memref<1024x1xf32, #tpu.memory_space<vmem>>, %arg3: memref<1024x1xf32, #tpu.memory_space<vmem>>, %arg4: memref<1024x1xf32, #tpu.memory_space<vmem>>, %arg5: memref<1x1xf32, #tpu.memory_space<smem>>, %arg6: memref<1x128xf32, #tpu.memory_space<vmem>>) attributes {dimension_semantics = [#tpu.dimension_semantics<parallel>], iteration_bounds = array<i64: 1>, scalar_prefetch = 0 : i64, scratch_operands = 0 : i64, tpu.core_type = #tpu.core_type<tc>, window_params = [{transform_indices = @transform_0, window_bounds = array<i64: 1, 128>}, {pipeline_mode = #tpu.pipeline_mode<synchronous>, transform_indices = @transform_1, window_bounds = array<i64: 1024, 1>}, {pipeline_mode = #tpu.pipeline_mode<synchronous>, transform_indices = @transform_2, window_bounds = array<i64: 1024, 1>}, {pipeline_mode = #tpu.pipeline_mode<synchronous>, transform_indices = @transform_3, window_bounds = array<i64: 1024, 1>}, {transform_indices = @transform_4, window_bounds = array<i64: 1, 1>}, {transform_indices = @transform_5, window_bounds = array<i64: 1, 128>}]} {
    %c0 = arith.constant 0 : index
    %c0_0 = arith.constant 0 : index
    %0 = vector.load %arg1[%c0, %c0_0] : memref<1x128xf32, #tpu.memory_space<vmem>>, vector<1x128xf32>
    %c0_1 = arith.constant 0 : index
    %c0_2 = arith.constant 0 : index
    %1 = vector.load %arg2[%c0_1, %c0_2] : memref<1024x1xf32, #tpu.memory_space<vmem>>, vector<1024x1xf32>
    %2 = vector.broadcast %1 : vector<1024x1xf32> to vector<1024x128xf32>
    %3 = vector.broadcast %0 : vector<1x128xf32> to vector<1024x128xf32>
    %4 = arith.mulf %2, %3 : vector<1024x128xf32>
    %c0_3 = arith.constant 0 : index
    %c0_4 = arith.constant 0 : index
    %5 = vector.load %arg3[%c0_3, %c0_4] : memref<1024x1xf32, #tpu.memory_space<vmem>>, vector<1024x1xf32>
    %6 = vector.broadcast %5 : vector<1024x1xf32> to vector<1024x128xf32>
    %7 = arith.addf %4, %6 : vector<1024x128xf32>
    %cst = arith.constant 0.000000e+00 : f32
    %8 = vector.broadcast %cst : f32 to vector<1024x128xf32>
    %9 = arith.maximumf %7, %8 : vector<1024x128xf32>
    %c0_5 = arith.constant 0 : index
    %c0_6 = arith.constant 0 : index
    %10 = vector.load %arg4[%c0_5, %c0_6] : memref<1024x1xf32, #tpu.memory_space<vmem>>, vector<1024x1xf32>
    %11 = vector.broadcast %10 : vector<1024x1xf32> to vector<1024x128xf32>
    %12 = arith.mulf %9, %11 : vector<1024x128xf32>
    %cst_7 = arith.constant dense<0.000000e+00> : vector<128xf32>
    %13 = vector.multi_reduction <add>, %12, %cst_7 [0] : vector<1024x128xf32> to vector<128xf32>
    %14 = vector.shape_cast %13 : vector<128xf32> to vector<1x128xf32>
    %c0_8 = arith.constant 0 : index
    %c0_9 = arith.constant 0 : index
    %15 = memref.load %arg5[%c0_8, %c0_9] : memref<1x1xf32, #tpu.memory_space<smem>>
    %16 = vector.broadcast %15 : f32 to vector<1x128xf32>
    %17 = arith.addf %14, %16 : vector<1x128xf32>
    %cst_10 = arith.constant 0.000000e+00 : f32
    %18 = vector.broadcast %cst_10 : f32 to vector<1x128xf32>
    %19 = arith.maximumf %17, %18 : vector<1x128xf32>
    %c0_11 = arith.constant 0 : index
    %c0_12 = arith.constant 0 : index
    %20 = vector.load %arg6[%c0_11, %c0_12] : memref<1x128xf32, #tpu.memory_space<vmem>>, vector<1x128xf32>
    tpu.vector_store %arg6[%c0_11, %c0_12], %19 {strides = array<i32>} : memref<1x128xf32, #tpu.memory_space<vmem>>, vector<1x128xf32>,
    return
  }
  func.func @transform_0(%arg0: i32) -> (i32, i32) {
    %c0_i32 = arith.constant 0 : i32
    %c0_i32_0 = arith.constant 0 : i32
    return %c0_i32, %arg0 : i32, i32
  }
  func.func @transform_1(%arg0: i32) -> (i32, i32) {
    %c0_i32 = arith.constant 0 : i32
    %c0_i32_0 = arith.constant 0 : i32
    %c0_i32_1 = arith.constant 0 : i32
    return %c0_i32, %c0_i32_0 : i32, i32
  }
  func.func @transform_2(%arg0: i32) -> (i32, i32) {
    %c0_i32 = arith.constant 0 : i32
    %c0_i32_0 = arith.constant 0 : i32
    %c0_i32_1 = arith.constant 0 : i32
    return %c0_i32, %c0_i32_0 : i32, i32
  }
  func.func @transform_3(%arg0: i32) -> (i32, i32) {
    %c0_i32 = arith.constant 0 : i32
    %c0_i32_0 = arith.constant 0 : i32
    %c0_i32_1 = arith.constant 0 : i32
    return %c0_i32, %c0_i32_0 : i32, i32
  }
  func.func @transform_4(%arg0: i32) -> (i32, i32) {
    %c0_i32 = arith.constant 0 : i32
    %c0_i32_0 = arith.constant 0 : i32
    %c0_i32_1 = arith.constant 0 : i32
    return %c0_i32, %c0_i32_0 : i32, i32
  }
  func.func @transform_5(%arg0: i32) -> (i32, i32) {
    %c0_i32 = arith.constant 0 : i32
    %c0_i32_0 = arith.constant 0 : i32
    return %c0_i32, %arg0 : i32, i32
  }
}

</mosaic_0001>

<bundles_post_ra>
// kernel: tpu_custom_call.1
= control target key start
LH: loop header
LB: loop body
LE: loop exit
PB: predicated region body
PF: predicated region fallthrough
CT: control target
= control target key end

     0   :  { %v3025_v2 = vmov 0   ;;  %s5121_s0 = inlined_call_operand.vmem [shape: f32[1,128], index: 0, kind: input, shape index: {}]   ;;  %s5122_s1 = inlined_call_operand.vmem [shape: f32[1024,1], index: 1, kind: input, shape index: {}]   ;;  %s5123_s2 = inlined_call_operand.vmem [shape: f32[1024,1], index: 2, kind: input, shape index: {}]   ;;  %s5124_s3 = inlined_call_operand.vmem [shape: f32[1024,1], index: 3, kind: input, shape index: {}]   ;;  %s5125_s4 = inlined_call_operand.<no memory space> [shape: f32[1,1], index: 4, kind: input, shape index: {}]   ;;  %s5126_s5 = inlined_call_operand.hbm [shape: f32[1,128], index: 5, kind: output, shape index: {}]  }
   0x1   :  { %v25_v0 = vld [vmem:[%s5122_s1 + $0x10] sm:$0xff]  ;;  %v23_v1 = vld [vmem:[%s5122_s1] sm:$0xff]  ;;  %3001 = vset.pattern.permute.xlu1 %v3025_v2  ;;  %3000 = vset.pattern.permute.xlu0 %v3025_v2  ;;  %v26_v3 = vld [vmem:[%s5122_s1 + $0x18] sm:$0xff] }
   0x2   :  { %163 = vperm.xlu1 %3001, %v25_v0   ;;  %153 = vperm.xlu0 %3000, %v23_v1   ;;  %v24_v4 = vld [vmem:[%s5122_s1 + $0x8] sm:$0xff]  ;;  %v27_v6 = vld [vmem:[%s5122_s1 + $0x20] sm:$0xff]  ;;  %v30_v7 = vld [vmem:[%s5122_s1 + $0x38] sm:$0xff] }
   0x3   :  { %v28_v5 = vld [vmem:[%s5122_s1 + $0x28] sm:$0xff]  ;;  %v29_v8 = vld [vmem:[%s5122_s1 + $0x30] sm:$0xff]  ;;  %v31_v10 = vld [vmem:[%s5122_s1 + $0x40] sm:$0xff] }
   0x4   :  { %v32_v9 = vld [vmem:[%s5122_s1 + $0x48] sm:$0xff]  ;;  %v34_v11 = vld [vmem:[%s5122_s1 + $0x58] sm:$0xff]  ;;  %v33_v12 = vld [vmem:[%s5122_s1 + $0x50] sm:$0xff] }
   0x5   :  { %v36_v13 = vld [vmem:[%s5122_s1 + $0x68] sm:$0xff]  ;;  %v35_v14 = vld [vmem:[%s5122_s1 + $0x60] sm:$0xff] }
   0x6   :  { %168 = vperm.xlu1 %3001, %v26_v3   ;;  %158 = vperm.xlu0 %3000, %v24_v4  }
   0xa   :  { %178 = vperm.xlu1 %3001, %v28_v5   ;;  %173 = vperm.xlu0 %3000, %v27_v6  }
   0xe   :  { %188 = vperm.xlu1 %3001, %v30_v7   ;;  %183 = vperm.xlu0 %3000, %v29_v8  }
  0x12   :  { %198 = vperm.xlu1 %3001, %v32_v9   ;;  %193 = vperm.xlu0 %3000, %v31_v10  }
  0x16   :  { %208 = vperm.xlu1 %3001, %v34_v11   ;;  %203 = vperm.xlu0 %3000, %v33_v12  }
  0x1a   :  { %218 = vperm.xlu1 %3001, %v36_v13   ;;  %213 = vperm.xlu0 %3000, %v35_v14  }
  0x1b   :  { %11 = vsyncpa [#allocation4], 0  ;;  %v38_v15 = vld [vmem:[%s5122_s1 + $0x78] sm:$0xff]  ;;  %v37_v16 = vld [vmem:[%s5122_s1 + $0x70] sm:$0xff]  ;;  %s3026_s10 = smov [#allocation3]  }
  0x1c   :  { %v40_v17 = vld [vmem:[%s5122_s1 + $0x88] sm:$0xff]  ;;  %v39_v18 = vld [vmem:[%s5122_s1 + $0x80] sm:$0xff]  ;;  %v42_v19 = vld [vmem:[%s5122_s1 + $0x98] sm:$0xff]  ;;  %s2989_s11 = sshll.u32 %s3026_s10, 4  ;;  %s2990_s11 = int_to_ptr.vmem [resolvable:$true] %s2989_s11 }
  0x1d   :  { %v41_v20 = vld [vmem:[%s5122_s1 + $0x90] sm:$0xff]  ;;  %v44_v21 = vld [vmem:[%s5122_s1 + $0xa8] sm:$0xff]  ;;  %v43_v22 = vld [vmem:[%s5122_s1 + $0xa0] sm:$0xff]  ;;  %s3003_s12 = scalar_lea.vmem %s2990_s11, 16  ;;  %s3007_s13 = scalar_lea.vmem %s2990_s11, 32 }
  0x1e   :  { %228 = vperm.xlu1 %3001, %v38_v15   ;;  %223 = vperm.xlu0 %3000, %v37_v16   ;;  %v46_v23 = vld [vmem:[%s5122_s1 + $0xb8] sm:$0xff]  ;;  %v45_v24 = vld [vmem:[%s5122_s1 + $0xb0] sm:$0xff]  ;;  %v48_v25 = vld [vmem:[%s5122_s1 + $0xc8] sm:$0xff]  ;;  %p3004_p0 = scmp.ne.s32.totalorder %s2990_s11, %s3003_s12  ;;  %p3008_p1 = scmp.lt.s32.totalorder %s2990_s11, %s2990_s11 }
  0x1f   :  { %v47_v26 = vld [vmem:[%s5122_s1 + $0xc0] sm:$0xff]  ;;  %v50_v27 = vld [vmem:[%s5122_s1 + $0xd8] sm:$0xff]  ;;  %v49_v28 = vld [vmem:[%s5122_s1 + $0xd0] sm:$0xff]  ;;  %p3009_p2 = scmp.lt.s32.totalorder %s3007_s13, %s3003_s12 }
  0x20   :  { %v52_v29 = vld [vmem:[%s5122_s1 + $0xe8] sm:$0xff]  ;;  %v51_v30 = vld [vmem:[%s5122_s1 + $0xe0] sm:$0xff]  ;;  %v54_v31 = vld [vmem:[%s5122_s1 + $0xf8] sm:$0xff] }
  0x21   :  { %v53_v32 = vld [vmem:[%s5122_s1 + $0xf0] sm:$0xff]  ;;  %v56_v33 = vld [vmem:[%s5122_s1 + $0x108] sm:$0xff]  ;;  %v55_v34 = vld [vmem:[%s5122_s1 + $0x100] sm:$0xff]  ;;  %p3010_p3 = por %p3009_p2, %p3008_p1 }
  0x22   :  { %238 = vperm.xlu1 %3001, %v40_v17   ;;  %233 = vperm.xlu0 %3000, %v39_v18   ;;  %v58_v35 = vld [vmem:[%s5122_s1 + $0x118] sm:$0xff]  ;;  %v57_v36 = vld [vmem:[%s5122_s1 + $0x110] sm:$0xff]  ;;  %v60_v37 = vld [vmem:[%s5122_s1 + $0x128] sm:$0xff] }
  0x23   :  { %v59_v38 = vld [vmem:[%s5122_s1 + $0x120] sm:$0xff]  ;;  %v62_v39 = vld [vmem:[%s5122_s1 + $0x138] sm:$0xff]  ;;  %v61_v40 = vld [vmem:[%s5122_s1 + $0x130] sm:$0xff]  ;;  %p3011_p4 = pnand %p3010_p3, %p3004_p0 }
  0x24   :  { %v64_v41 = vld [vmem:[%s5122_s1 + $0x148] sm:$0xff]  ;;  %v63_v42 = vld [vmem:[%s5122_s1 + $0x140] sm:$0xff]  ;;  %v66_v43 = vld [vmem:[%s5122_s1 + $0x158] sm:$0xff] }
  0x25   :  { %v65_v44 = vld [vmem:[%s5122_s1 + $0x150] sm:$0xff]  ;;  %v68_v45 = vld [vmem:[%s5122_s1 + $0x168] sm:$0xff]  ;;  %v67_v46 = vld [vmem:[%s5122_s1 + $0x160] sm:$0xff] }
  0x26   :  { %248 = vperm.xlu1 %3001, %v42_v19   ;;  %243 = vperm.xlu0 %3000, %v41_v20   ;;  %v70_v47 = vld [vmem:[%s5122_s1 + $0x178] sm:$0xff]  ;;  %v69_v48 = vld [vmem:[%s5122_s1 + $0x170] sm:$0xff]  ;;  %v72_v49 = vld [vmem:[%s5122_s1 + $0x188] sm:$0xff] }
  0x27   :  { %v71_v50 = vld [vmem:[%s5122_s1 + $0x180] sm:$0xff]  ;;  %v74_v51 = vld [vmem:[%s5122_s1 + $0x198] sm:$0xff]  ;;  %v73_v52 = vld [vmem:[%s5122_s1 + $0x190] sm:$0xff] }
  0x28   :  { %v76_v53 = vld [vmem:[%s5122_s1 + $0x1a8] sm:$0xff]  ;;  %v75_v54 = vld [vmem:[%s5122_s1 + $0x1a0] sm:$0xff]  ;;  %v78_v55 = vld [vmem:[%s5122_s1 + $0x1b8] sm:$0xff] }
  0x29   :  { %v77_v56 = vld [vmem:[%s5122_s1 + $0x1b0] sm:$0xff]  ;;  %v80_v57 = vld [vmem:[%s5122_s1 + $0x1c8] sm:$0xff]  ;;  %v79_v58 = vld [vmem:[%s5122_s1 + $0x1c0] sm:$0xff] }
  0x2a   :  { %258 = vperm.xlu1 %3001, %v44_v21   ;;  %253 = vperm.xlu0 %3000, %v43_v22   ;;  %v82_v59 = vld [vmem:[%s5122_s1 + $0x1d8] sm:$0xff]  ;;  %v81_v60 = vld [vmem:[%s5122_s1 + $0x1d0] sm:$0xff]  ;;  %v84_v61 = vld [vmem:[%s5122_s1 + $0x1e8] sm:$0xff] }
  0x2b   :  { %v83_v62 = vld [vmem:[%s5122_s1 + $0x1e0] sm:$0xff]  ;;  %v86_v63 = vld [vmem:[%s5122_s1 + $0x1f8] sm:$0xff]  ;;  %v85_v0 = vld [vmem:[%s5122_s1 + $0x1f0] sm:$0xff] }
  0x2c   :  { %v88_v3 = vld [vmem:[%s5122_s1 + $0x208] sm:$0xff]  ;;  %v87_v4 = vld [vmem:[%s5122_s1 + $0x200] sm:$0xff]  ;;  %v90_v7 = vld [vmem:[%s5122_s1 + $0x218] sm:$0xff] }
  0x2d   :  { %v89_v8 = vld [vmem:[%s5122_s1 + $0x210] sm:$0xff]  ;;  %v92_v11 = vld [vmem:[%s5122_s1 + $0x228] sm:$0xff]  ;;  %v91_v12 = vld [vmem:[%s5122_s1 + $0x220] sm:$0xff] }
  0x2e   :  { %268 = vperm.xlu1 %3001, %v46_v23   ;;  %263 = vperm.xlu0 %3000, %v45_v24   ;;  %v94_v15 = vld [vmem:[%s5122_s1 + $0x238] sm:$0xff]  ;;  %v93_v16 = vld [vmem:[%s5122_s1 + $0x230] sm:$0xff]  ;;  %v96_v19 = vld [vmem:[%s5122_s1 + $0x248] sm:$0xff] }
  0x2f   :  { %v95_v20 = vld [vmem:[%s5122_s1 + $0x240] sm:$0xff]  ;;  %v98_v23 = vld [vmem:[%s5122_s1 + $0x258] sm:$0xff]  ;;  %v97_v24 = vld [vmem:[%s5122_s1 + $0x250] sm:$0xff] }
  0x32   :  { %278 = vperm.xlu1 %3001, %v48_v25   ;;  %273 = vperm.xlu0 %3000, %v47_v26  }
  0x36   :  { %288 = vperm.xlu1 %3001, %v50_v27   ;;  %283 = vperm.xlu0 %3000, %v49_v28   ;;  %v100_v27 = vld [vmem:[%s5122_s1 + $0x268] sm:$0xff]  ;;  %v99_v28 = vld [vmem:[%s5122_s1 + $0x260] sm:$0xff] }
  0x3a   :  { %298 = vperm.xlu1 %3001, %v52_v29   ;;  %293 = vperm.xlu0 %3000, %v51_v30  }
  0x3e   :  { %308 = vperm.xlu1 %3001, %v54_v31   ;;  %303 = vperm.xlu0 %3000, %v53_v32   ;;  %v102_v31 = vld [vmem:[%s5122_s1 + $0x278] sm:$0xff]  ;;  %v101_v32 = vld [vmem:[%s5122_s1 + $0x270] sm:$0xff] }
  0x42   :  { %318 = vperm.xlu1 %3001, %v56_v33   ;;  %313 = vperm.xlu0 %3000, %v55_v34  }
  0x46   :  { %328 = vperm.xlu1 %3001, %v58_v35   ;;  %323 = vperm.xlu0 %3000, %v57_v36   ;;  %v104_v35 = vld [vmem:[%s5122_s1 + $0x288] sm:$0xff]  ;;  %v103_v36 = vld [vmem:[%s5122_s1 + $0x280] sm:$0xff] }
  0x4a   :  { %338 = vperm.xlu1 %3001, %v60_v37   ;;  %333 = vperm.xlu0 %3000, %v59_v38  }
  0x4e   :  { %348 = vperm.xlu1 %3001, %v62_v39   ;;  %343 = vperm.xlu0 %3000, %v61_v40   ;;  %v106_v39 = vld [vmem:[%s5122_s1 + $0x298] sm:$0xff]  ;;  %v105_v40 = vld [vmem:[%s5122_s1 + $0x290] sm:$0xff] }
  0x52   :  { %358 = vperm.xlu1 %3001, %v64_v41   ;;  %353 = vperm.xlu0 %3000, %v63_v42  }
  0x56   :  { %368 = vperm.xlu1 %3001, %v66_v43   ;;  %363 = vperm.xlu0 %3000, %v65_v44   ;;  %v108_v43 = vld [vmem:[%s5122_s1 + $0x2a8] sm:$0xff]  ;;  %v107_v44 = vld [vmem:[%s5122_s1 + $0x2a0] sm:$0xff] }
  0x5a   :  { %378 = vperm.xlu1 %3001, %v68_v45   ;;  %373 = vperm.xlu0 %3000, %v67_v46  }
  0x5e   :  { %388 = vperm.xlu1 %3001, %v70_v47   ;;  %383 = vperm.xlu0 %3000, %v69_v48   ;;  %v110_v47 = vld [vmem:[%s5122_s1 + $0x2b8] sm:$0xff]  ;;  %v109_v48 = vld [vmem:[%s5122_s1 + $0x2b0] sm:$0xff] }
  0x62   :  { %398 = vperm.xlu1 %3001, %v72_v49   ;;  %393 = vperm.xlu0 %3000, %v71_v50  }
  0x66   :  { %408 = vperm.xlu1 %3001, %v74_v51   ;;  %403 = vperm.xlu0 %3000, %v73_v52   ;;  %v112_v51 = vld [vmem:[%s5122_s1 + $0x2c8] sm:$0xff]  ;;  %v111_v52 = vld [vmem:[%s5122_s1 + $0x2c0] sm:$0xff] }
  0x6a   :  { %418 = vperm.xlu1 %3001, %v76_v53   ;;  %413 = vperm.xlu0 %3000, %v75_v54  }
  0x6e   :  { %428 = vperm.xlu1 %3001, %v78_v55   ;;  %423 = vperm.xlu0 %3000, %v77_v56   ;;  %v114_v55 = vld [vmem:[%s5122_s1 + $0x2d8] sm:$0xff]  ;;  %v113_v56 = vld [vmem:[%s5122_s1 + $0x2d0] sm:$0xff] }
  0x72   :  { %438 = vperm.xlu1 %3001, %v80_v57   ;;  %433 = vperm.xlu0 %3000, %v79_v58  }
  0x76   :  { %448 = vperm.xlu1 %3001, %v82_v59   ;;  %443 = vperm.xlu0 %3000, %v81_v60   ;;  %v116_v59 = vld [vmem:[%s5122_s1 + $0x2e8] sm:$0xff]  ;;  %v115_v60 = vld [vmem:[%s5122_s1 + $0x2e0] sm:$0xff] }
  0x7a   :  { %458 = vperm.xlu1 %3001, %v84_v61   ;;  %453 = vperm.xlu0 %3000, %v83_v62  }
  0x7d   :  { %v3249_v1 = vpop.permute.xlu1 %163  ;;  %v3251_v2 = vpop.permute.xlu0 %153 }
  0x7e   :  { %468 = vperm.xlu1 %3001, %v86_v63   ;;  %463 = vperm.xlu0 %3000, %v85_v0   ;;  %v118_v63 = vld [vmem:[%s5122_s1 + $0x2f8] sm:$0xff]  ;;  %v117_v0 = vld [vmem:[%s5122_s1 + $0x2f0] sm:$0xff] }
  0x81   :  { %v3259_v5 = vpop.permute.xlu1 %168  ;;  %v3261_v6 = vpop.permute.xlu0 %158 }
  0x82   :  { %478 = vperm.xlu1 %3001, %v88_v3   ;;  %473 = vperm.xlu0 %3000, %v87_v4  }
  0x85   :  { %v3269_v9 = vpop.permute.xlu1 %178  ;;  %v3271_v10 = vpop.permute.xlu0 %173 }
  0x86   :  { %488 = vperm.xlu1 %3001, %v90_v7   ;;  %483 = vperm.xlu0 %3000, %v89_v8   ;;  %v120_v7 = vld [vmem:[%s5122_s1 + $0x308] sm:$0xff]  ;;  %v119_v8 = vld [vmem:[%s5122_s1 + $0x300] sm:$0xff] }
  0x89   :  { %v3279_v13 = vpop.permute.xlu1 %188  ;;  %v3281_v14 = vpop.permute.xlu0 %183 }
  0x8a   :  { %498 = vperm.xlu1 %3001, %v92_v11   ;;  %493 = vperm.xlu0 %3000, %v91_v12  }
  0x8d   :  { %v3289_v17 = vpop.permute.xlu1 %198  ;;  %v3291_v18 = vpop.permute.xlu0 %193 }
  0x8e   :  { %508 = vperm.xlu1 %3001, %v94_v15   ;;  %503 = vperm.xlu0 %3000, %v93_v16   ;;  %v122_v15 = vld [vmem:[%s5122_s1 + $0x318] sm:$0xff]  ;;  %v121_v16 = vld [vmem:[%s5122_s1 + $0x310] sm:$0xff] }
  0x91   :  { %v3299_v21 = vpop.permute.xlu1 %208  ;;  %v3301_v22 = vpop.permute.xlu0 %203 }
  0x92   :  { %518 = vperm.xlu1 %3001, %v96_v19   ;;  %513 = vperm.xlu0 %3000, %v95_v20  }
  0x95   :  { %v3309_v25 = vpop.permute.xlu1 %218  ;;  %v3311_v26 = vpop.permute.xlu0 %213 }
  0x96   :  { %528 = vperm.xlu1 %3001, %v98_v23   ;;  %523 = vperm.xlu0 %3000, %v97_v24   ;;  %v124_v23 = vld [vmem:[%s5122_s1 + $0x328] sm:$0xff]  ;;  %v123_v24 = vld [vmem:[%s5122_s1 + $0x320] sm:$0xff] }
  0x99   :  { %v3319_v29 = vpop.permute.xlu1 %228  ;;  %v3321_v30 = vpop.permute.xlu0 %223 }
  0x9a   :  { %538 = vperm.xlu1 %3001, %v100_v27   ;;  %533 = vperm.xlu0 %3000, %v99_v28  }
  0x9d   :  { %v3329_v33 = vpop.permute.xlu1 %238  ;;  %v3331_v34 = vpop.permute.xlu0 %233 }
  0x9e   :  { %548 = vperm.xlu1 %3001, %v102_v31   ;;  %543 = vperm.xlu0 %3000, %v101_v32   ;;  %v126_v31 = vld [vmem:[%s5122_s1 + $0x338] sm:$0xff]  ;;  %v125_v32 = vld [vmem:[%s5122_s1 + $0x330] sm:$0xff] }
  0xa1   :  { %v3339_v37 = vpop.permute.xlu1 %248  ;;  %v3341_v38 = vpop.permute.xlu0 %243 }
  0xa2   :  { %558 = vperm.xlu1 %3001, %v104_v35   ;;  %553 = vperm.xlu0 %3000, %v103_v36  }
  0xa5   :  { %v3349_v41 = vpop.permute.xlu1 %258  ;;  %v3351_v42 = vpop.permute.xlu0 %253 }
  0xa6   :  { %568 = vperm.xlu1 %3001, %v106_v39   ;;  %563 = vperm.xlu0 %3000, %v105_v40   ;;  %v128_v39 = vld [vmem:[%s5122_s1 + $0x348] sm:$0xff]  ;;  %v127_v40 = vld [vmem:[%s5122_s1 + $0x340] sm:$0xff] }
  0xa9   :  { %v3359_v45 = vpop.permute.xlu1 %268  ;;  %v3361_v46 = vpop.permute.xlu0 %263 }
  0xaa   :  { %578 = vperm.xlu1 %3001, %v108_v43   ;;  %573 = vperm.xlu0 %3000, %v107_v44  }
  0xad   :  { %v3369_v49 = vpop.permute.xlu1 %278  ;;  %v3371_v50 = vpop.permute.xlu0 %273 }
  0xae   :  { %588 = vperm.xlu1 %3001, %v110_v47   ;;  %583 = vperm.xlu0 %3000, %v109_v48   ;;  %v130_v47 = vld [vmem:[%s5122_s1 + $0x358] sm:$0xff]  ;;  %v129_v48 = vld [vmem:[%s5122_s1 + $0x350] sm:$0xff] }
  0xb1   :  { %v3379_v53 = vpop.permute.xlu1 %288  ;;  %v3381_v54 = vpop.permute.xlu0 %283 }
  0xb2   :  { %5127 = vst [vmem:[#allocation6_spill] sm:$0xff] %v3379_v53  ;;  %598 = vperm.xlu1 %3001, %v112_v51   ;;  %593 = vperm.xlu0 %3000, %v111_v52  }
  0xb5   :  { %v3389_v57 = vpop.permute.xlu1 %298  ;;  %v3391_v58 = vpop.permute.xlu0 %293 }
  0xb6   :  { %5128 = vst [vmem:[#allocation7_spill] sm:$0xff] %v3389_v57  ;;  %5129 = vst [vmem:[#allocation8_spill] sm:$0xff] %v3391_v58  ;;  %608 = vperm.xlu1 %3001, %v114_v55   ;;  %603 = vperm.xlu0 %3000, %v113_v56   ;;  %v132_v55 = vld [vmem:[%s5122_s1 + $0x368] sm:$0xff]  ;;  %v131_v56 = vld [vmem:[%s5122_s1 + $0x360] sm:$0xff] }
  0xb7   :  { %v1018_v57 = vld [vmem:[%s5123_s2 + $0x2e8] sm:$0xff]  ;;  %v2009_v58 = vld [vmem:[%s5124_s3 + $0x1e0] sm:$0xff] }
  0xb9   :  { %v3399_v61 = vpop.permute.xlu1 %308  ;;  %v3401_v62 = vpop.permute.xlu0 %303 }
  0xba   :  { %5130 = vst [vmem:[#allocation9_spill] sm:$0xff] %v3399_v61  ;;  %5131 = vst [vmem:[#allocation10_spill] sm:$0xff] %v3401_v62  ;;  %618 = vperm.xlu1 %3001, %v116_v59   ;;  %613 = vperm.xlu0 %3000, %v115_v60   ;;  %v1016_v61 = vld [vmem:[%s5123_s2 + $0x2d8] sm:$0xff] }
  0xbd   :  { %v3409_v3 = vpop.permute.xlu1 %318  ;;  %v3411_v4 = vpop.permute.xlu0 %313 }
  0xbe   :  { %5132 = vst [vmem:[#allocation11_spill] sm:$0xff] %v3409_v3  ;;  %5133 = vst [vmem:[#allocation12_spill] sm:$0xff] %v3411_v4  ;;  %628 = vperm.xlu1 %3001, %v118_v63   ;;  %623 = vperm.xlu0 %3000, %v117_v0   ;;  %v134_v63 = vld [vmem:[%s5122_s1 + $0x378] sm:$0xff]  ;;  %v133_v0 = vld [vmem:[%s5122_s1 + $0x370] sm:$0xff] }
  0xbf   :  { %v1014_v3 = vld [vmem:[%s5123_s2 + $0x2c8] sm:$0xff] }
  0xc1   :  { %v3419_v11 = vpop.permute.xlu1 %328  ;;  %v3421_v12 = vpop.permute.xlu0 %323 }
  0xc2   :  { %5134 = vst [vmem:[#allocation13_spill] sm:$0xff] %v3419_v11  ;;  %5135 = vst [vmem:[#allocation14_spill] sm:$0xff] %v3421_v12  ;;  %638 = vperm.xlu1 %3001, %v120_v7   ;;  %633 = vperm.xlu0 %3000, %v119_v8   ;;  %v1012_v11 = vld [vmem:[%s5123_s2 + $0x2b8] sm:$0xff] }
  0xc5   :  { %v3429_v19 = vpop.permute.xlu1 %338  ;;  %v3431_v20 = vpop.permute.xlu0 %333 }
  0xc6   :  { %5136 = vst [vmem:[#allocation15_spill] sm:$0xff] %v3429_v19  ;;  %5137 = vst [vmem:[#allocation16_spill] sm:$0xff] %v3431_v20  ;;  %648 = vperm.xlu1 %3001, %v122_v15   ;;  %643 = vperm.xlu0 %3000, %v121_v16   ;;  %v136_v15 = vld [vmem:[%s5122_s1 + $0x388] sm:$0xff]  ;;  %v135_v16 = vld [vmem:[%s5122_s1 + $0x380] sm:$0xff] }
  0xc7   :  { %v1010_v19 = vld [vmem:[%s5123_s2 + $0x2a8] sm:$0xff] }
  0xc9   :  { %v3439_v27 = vpop.permute.xlu1 %348  ;;  %v3441_v28 = vpop.permute.xlu0 %343 }
  0xca   :  { %5138 = vst [vmem:[#allocation17_spill] sm:$0xff] %v3439_v27  ;;  %5139 = vst [vmem:[#allocation18_spill] sm:$0xff] %v3441_v28  ;;  %658 = vperm.xlu1 %3001, %v124_v23   ;;  %653 = vperm.xlu0 %3000, %v123_v24   ;;  %v1008_v27 = vld [vmem:[%s5123_s2 + $0x298] sm:$0xff] }
  0xcd   :  { %v3449_v35 = vpop.permute.xlu1 %358  ;;  %v3451_v36 = vpop.permute.xlu0 %353 }
  0xce   :  { %5140 = vst [vmem:[#allocation19_spill] sm:$0xff] %v3449_v35  ;;  %5141 = vst [vmem:[#allocation20_spill] sm:$0xff] %v3451_v36  ;;  %668 = vperm.xlu1 %3001, %v126_v31   ;;  %663 = vperm.xlu0 %3000, %v125_v32   ;;  %v138_v31 = vld [vmem:[%s5122_s1 + $0x398] sm:$0xff]  ;;  %v137_v32 = vld [vmem:[%s5122_s1 + $0x390] sm:$0xff] }
  0xcf   :  { %v1006_v35 = vld [vmem:[%s5123_s2 + $0x288] sm:$0xff] }
  0xd1   :  { %v3459_v43 = vpop.permute.xlu1 %368  ;;  %v3461_v44 = vpop.permute.xlu0 %363 }
  0xd2   :  { %5142 = vst [vmem:[#allocation21_spill] sm:$0xff] %v3459_v43  ;;  %5143 = vst [vmem:[#allocation22_spill] sm:$0xff] %v3461_v44  ;;  %678 = vperm.xlu1 %3001, %v128_v39   ;;  %673 = vperm.xlu0 %3000, %v127_v40   ;;  %v1004_v43 = vld [vmem:[%s5123_s2 + $0x278] sm:$0xff] }
  0xd5   :  { %v3469_v51 = vpop.permute.xlu1 %378  ;;  %v3471_v52 = vpop.permute.xlu0 %373 }
  0xd6   :  { %5144 = vst [vmem:[#allocation23_spill] sm:$0xff] %v3469_v51  ;;  %5145 = vst [vmem:[#allocation24_spill] sm:$0xff] %v3471_v52  ;;  %688 = vperm.xlu1 %3001, %v130_v47   ;;  %683 = vperm.xlu0 %3000, %v129_v48   ;;  %v140_v47 = vld [vmem:[%s5122_s1 + $0x3a8] sm:$0xff]  ;;  %v139_v48 = vld [vmem:[%s5122_s1 + $0x3a0] sm:$0xff] }
  0xd7   :  { %v1002_v51 = vld [vmem:[%s5123_s2 + $0x268] sm:$0xff] }
  0xd9   :  { %v3479_v59 = vpop.permute.xlu1 %388  ;;  %v3481_v60 = vpop.permute.xlu0 %383 }
  0xda   :  { %5146 = vst [vmem:[#allocation25_spill] sm:$0xff] %v3479_v59  ;;  %5147 = vst [vmem:[#allocation26_spill] sm:$0xff] %v3481_v60  ;;  %698 = vperm.xlu1 %3001, %v132_v55   ;;  %693 = vperm.xlu0 %3000, %v131_v56   ;;  %v1000_v59 = vld [vmem:[%s5123_s2 + $0x258] sm:$0xff] }
  0xdd   :  { %v3489_v7 = vpop.permute.xlu1 %398  ;;  %v3491_v8 = vpop.permute.xlu0 %393 }
  0xde   :  { %5148 = vst [vmem:[#allocation27_spill] sm:$0xff] %v3489_v7  ;;  %5149 = vst [vmem:[#allocation28_spill] sm:$0xff] %v3491_v8  ;;  %708 = vperm.xlu1 %3001, %v134_v63   ;;  %703 = vperm.xlu0 %3000, %v133_v0   ;;  %v142_v63 = vld [vmem:[%s5122_s1 + $0x3b8] sm:$0xff]  ;;  %v141_v0 = vld [vmem:[%s5122_s1 + $0x3b0] sm:$0xff] }
  0xdf   :  { %v998_v7 = vld [vmem:[%s5123_s2 + $0x248] sm:$0xff] }
  0xe1   :  { %v3499_v23 = vpop.permute.xlu1 %408  ;;  %v3501_v24 = vpop.permute.xlu0 %403 }
  0xe2   :  { %5150 = vst [vmem:[#allocation29_spill] sm:$0xff] %v3499_v23  ;;  %5151 = vst [vmem:[#allocation30_spill] sm:$0xff] %v3501_v24  ;;  %718 = vperm.xlu1 %3001, %v136_v15   ;;  %713 = vperm.xlu0 %3000, %v135_v16   ;;  %v996_v23 = vld [vmem:[%s5123_s2 + $0x238] sm:$0xff] }
  0xe5   :  { %v3509_v39 = vpop.permute.xlu1 %418  ;;  %v3511_v40 = vpop.permute.xlu0 %413 }
  0xe6   :  { %5152 = vst [vmem:[#allocation31_spill] sm:$0xff] %v3509_v39  ;;  %5153 = vst [vmem:[#allocation32_spill] sm:$0xff] %v3511_v40  ;;  %728 = vperm.xlu1 %3001, %v138_v31   ;;  %723 = vperm.xlu0 %3000, %v137_v32   ;;  %v144_v31 = vld [vmem:[%s5122_s1 + $0x3c8] sm:$0xff]  ;;  %v143_v32 = vld [vmem:[%s5122_s1 + $0x3c0] sm:$0xff] }
  0xe7   :  { %v994_v39 = vld [vmem:[%s5123_s2 + $0x228] sm:$0xff] }
  0xe9   :  { %v3519_v55 = vpop.permute.xlu1 %428  ;;  %v3521_v56 = vpop.permute.xlu0 %423 }
  0xea   :  { %5154 = vst [vmem:[#allocation33_spill] sm:$0xff] %v3519_v55  ;;  %5155 = vst [vmem:[#allocation34_spill] sm:$0xff] %v3521_v56  ;;  %738 = vperm.xlu1 %3001, %v140_v47   ;;  %733 = vperm.xlu0 %3000, %v139_v48   ;;  %v992_v55 = vld [vmem:[%s5123_s2 + $0x218] sm:$0xff] }
  0xed   :  { %v3529_v15 = vpop.permute.xlu1 %438  ;;  %v3531_v16 = vpop.permute.xlu0 %433 }
  0xee   :  { %5156 = vst [vmem:[#allocation35_spill] sm:$0xff] %v3529_v15  ;;  %5157 = vst [vmem:[#allocation36_spill] sm:$0xff] %v3531_v16  ;;  %748 = vperm.xlu1 %3001, %v142_v63   ;;  %743 = vperm.xlu0 %3000, %v141_v0   ;;  %v146_v15 = vld [vmem:[%s5122_s1 + $0x3d8] sm:$0xff]  ;;  %v145_v63 = vld [vmem:[%s5122_s1 + $0x3d0] sm:$0xff] }
  0xf1   :  { %v3539_v47 = vpop.permute.xlu1 %448  ;;  %v3541_v48 = vpop.permute.xlu0 %443 }
  0xf2   :  { %5158 = vst [vmem:[#allocation37_spill] sm:$0xff] %v3539_v47  ;;  %5159 = vst [vmem:[#allocation38_spill] sm:$0xff] %v3541_v48  ;;  %758 = vperm.xlu1 %3001, %v144_v31   ;;  %753 = vperm.xlu0 %3000, %v143_v32   ;;  %v148_v47 = vld [vmem:[%s5122_s1 + $0x3e8] sm:$0xff]  ;;  %v147_v31 = vld [vmem:[%s5122_s1 + $0x3e0] sm:$0xff] }
  0xf5   :  { %v3549_v0 = vpop.permute.xlu1 %458  ;;  %v3551_v16 = vpop.permute.xlu0 %453 }
  0xf6   :  { %5160 = vst [vmem:[#allocation39_spill] sm:$0xff] %v3549_v0  ;;  %5161 = vst [vmem:[#allocation40_spill] sm:$0xff] %v3551_v16  ;;  %768 = vperm.xlu1 %3001, %v146_v15   ;;  %763 = vperm.xlu0 %3000, %v145_v63   ;;  %v150_v0 = vld [vmem:[%s5122_s1 + $0x3f8] sm:$0xff]  ;;  %v149_v15 = vld [vmem:[%s5122_s1 + $0x3f0] sm:$0xff] }
  0xf9   :  { %v3559_v32 = vpop.permute.xlu1 %468  ;;  %v3561_v48 = vpop.permute.xlu0 %463 }
  0xfa   :  { %5162 = vst [vmem:[#allocation41_spill] sm:$0xff] %v3559_v32  ;;  %5163 = vst [vmem:[#allocation42_spill] sm:$0xff] %v3561_v48  ;;  %778 = vperm.xlu1 %3001, %v148_v47   ;;  %773 = vperm.xlu0 %3000, %v147_v31   ;;  %v926_v32 = vld [vmem:[%s5123_s2 + $0x8] sm:$0xff]  ;;  %v925_v47 = vld [vmem:[%s5123_s2] sm:$0xff] }
  0xfd   :  { %v3569_v63 = vpop.permute.xlu1 %478  ;;  %v3571_v16 = vpop.permute.xlu0 %473 }
  0xfe   :  { %5164 = vst [vmem:[#allocation43_spill] sm:$0xff] %v3569_v63  ;;  %5165 = vst [vmem:[#allocation44_spill] sm:$0xff] %v3571_v16  ;;  %788 = vperm.xlu1 %3001, %v150_v0   ;;  %783 = vperm.xlu0 %3000, %v149_v15   ;;  %v928_v63 = vld [vmem:[%s5123_s2 + $0x18] sm:$0xff]  ;;  %v927_v0 = vld [vmem:[%s5123_s2 + $0x10] sm:$0xff] }
 0x101   :  { %v3579_v31 = vpop.permute.xlu1 %488  ;;  %v3581_v48 = vpop.permute.xlu0 %483 }
 0x102   :  { %5166 = vst [vmem:[#allocation45_spill] sm:$0xff] %v3579_v31  ;;  %5167 = vst [vmem:[#allocation46_spill] sm:$0xff] %v3581_v48  ;;  %1060 = vperm.xlu1 %3001, %v926_v32   ;;  %1055 = vperm.xlu0 %3000, %v925_v47   ;;  %v930_v31 = vld [vmem:[%s5123_s2 + $0x28] sm:$0xff]  ;;  %v929_v32 = vld [vmem:[%s5123_s2 + $0x20] sm:$0xff] }
 0x105   :  { %v3589_v15 = vpop.permute.xlu1 %498  ;;  %v3591_v16 = vpop.permute.xlu0 %493 }
 0x106   :  { %5168 = vst [vmem:[#allocation47_spill] sm:$0xff] %v3589_v15  ;;  %5169 = vst [vmem:[#allocation48_spill] sm:$0xff] %v3591_v16  ;;  %1070 = vperm.xlu1 %3001, %v928_v63   ;;  %1065 = vperm.xlu0 %3000, %v927_v0   ;;  %v932_v15 = vld [vmem:[%s5123_s2 + $0x38] sm:$0xff]  ;;  %v931_v63 = vld [vmem:[%s5123_s2 + $0x30] sm:$0xff] }
 0x109   :  { %v3599_v47 = vpop.permute.xlu1 %508  ;;  %v3601_v48 = vpop.permute.xlu0 %503 }
 0x10a   :  { %5170 = vst [vmem:[#allocation49_spill] sm:$0xff] %v3599_v47  ;;  %5171 = vst [vmem:[#allocation50_spill] sm:$0xff] %v3601_v48  ;;  %1080 = vperm.xlu1 %3001, %v930_v31   ;;  %1075 = vperm.xlu0 %3000, %v929_v32   ;;  %v934_v47 = vld [vmem:[%s5123_s2 + $0x48] sm:$0xff]  ;;  %v933_v31 = vld [vmem:[%s5123_s2 + $0x40] sm:$0xff] }
 0x10d   :  { %v3609_v0 = vpop.permute.xlu1 %518  ;;  %v3611_v16 = vpop.permute.xlu0 %513 }
 0x10e   :  { %5172 = vst [vmem:[#allocation51_spill] sm:$0xff] %v3609_v0  ;;  %5173 = vst [vmem:[#allocation52_spill] sm:$0xff] %v3611_v16  ;;  %1090 = vperm.xlu1 %3001, %v932_v15   ;;  %1085 = vperm.xlu0 %3000, %v931_v63   ;;  %v936_v0 = vld [vmem:[%s5123_s2 + $0x58] sm:$0xff]  ;;  %v935_v15 = vld [vmem:[%s5123_s2 + $0x50] sm:$0xff] }
 0x111   :  { %v3619_v32 = vpop.permute.xlu1 %528  ;;  %v3621_v48 = vpop.permute.xlu0 %523 }
 0x112   :  { %5174 = vst [vmem:[#allocation53_spill] sm:$0xff] %v3619_v32  ;;  %5175 = vst [vmem:[#allocation54_spill] sm:$0xff] %v3621_v48  ;;  %1100 = vperm.xlu1 %3001, %v934_v47   ;;  %1095 = vperm.xlu0 %3000, %v933_v31   ;;  %v938_v32 = vld [vmem:[%s5123_s2 + $0x68] sm:$0xff]  ;;  %v937_v47 = vld [vmem:[%s5123_s2 + $0x60] sm:$0xff] }
 0x115   :  { %v3629_v63 = vpop.permute.xlu1 %538  ;;  %v3631_v16 = vpop.permute.xlu0 %533 }
 0x116   :  { %5176 = vst [vmem:[#allocation55_spill] sm:$0xff] %v3629_v63  ;;  %5177 = vst [vmem:[#allocation56_spill] sm:$0xff] %v3631_v16  ;;  %1110 = vperm.xlu1 %3001, %v936_v0   ;;  %1105 = vperm.xlu0 %3000, %v935_v15   ;;  %v940_v63 = vld [vmem:[%s5123_s2 + $0x78] sm:$0xff]  ;;  %v939_v0 = vld [vmem:[%s5123_s2 + $0x70] sm:$0xff] }
 0x119   :  { %v3639_v31 = vpop.permute.xlu1 %548  ;;  %v3641_v48 = vpop.permute.xlu0 %543 }
 0x11a   :  { %5178 = vst [vmem:[#allocation57_spill] sm:$0xff] %v3639_v31  ;;  %5179 = vst [vmem:[#allocation58_spill] sm:$0xff] %v3641_v48  ;;  %1120 = vperm.xlu1 %3001, %v938_v32   ;;  %1115 = vperm.xlu0 %3000, %v937_v47   ;;  %v942_v31 = vld [vmem:[%s5123_s2 + $0x88] sm:$0xff]  ;;  %v941_v32 = vld [vmem:[%s5123_s2 + $0x80] sm:$0xff] }
 0x11d   :  { %v3649_v15 = vpop.permute.xlu1 %558  ;;  %v3651_v16 = vpop.permute.xlu0 %553 }
 0x11e   :  { %5180 = vst [vmem:[#allocation59_spill] sm:$0xff] %v3649_v15  ;;  %5181 = vst [vmem:[#allocation60_spill] sm:$0xff] %v3651_v16  ;;  %1130 = vperm.xlu1 %3001, %v940_v63   ;;  %1125 = vperm.xlu0 %3000, %v939_v0   ;;  %v944_v15 = vld [vmem:[%s5123_s2 + $0x98] sm:$0xff]  ;;  %v943_v63 = vld [vmem:[%s5123_s2 + $0x90] sm:$0xff] }
 0x121   :  { %v3659_v47 = vpop.permute.xlu1 %568  ;;  %v3661_v48 = vpop.permute.xlu0 %563 }
 0x122   :  { %5182 = vst [vmem:[#allocation61_spill] sm:$0xff] %v3659_v47  ;;  %5183 = vst [vmem:[#allocation62_spill] sm:$0xff] %v3661_v48  ;;  %1140 = vperm.xlu1 %3001, %v942_v31   ;;  %1135 = vperm.xlu0 %3000, %v941_v32   ;;  %v946_v47 = vld [vmem:[%s5123_s2 + $0xa8] sm:$0xff]  ;;  %v945_v31 = vld [vmem:[%s5123_s2 + $0xa0] sm:$0xff] }
 0x125   :  { %v3669_v0 = vpop.permute.xlu1 %578  ;;  %v3671_v16 = vpop.permute.xlu0 %573 }
 0x126   :  { %5184 = vst [vmem:[#allocation63_spill] sm:$0xff] %v3669_v0  ;;  %5185 = vst [vmem:[#allocation64_spill] sm:$0xff] %v3671_v16  ;;  %1150 = vperm.xlu1 %3001, %v944_v15   ;;  %1145 = vperm.xlu0 %3000, %v943_v63   ;;  %v948_v0 = vld [vmem:[%s5123_s2 + $0xb8] sm:$0xff]  ;;  %v947_v15 = vld [vmem:[%s5123_s2 + $0xb0] sm:$0xff] }
 0x129   :  { %v3679_v32 = vpop.permute.xlu1 %588  ;;  %v3681_v48 = vpop.permute.xlu0 %583 }
 0x12a   :  { %5186 = vst [vmem:[#allocation65_spill] sm:$0xff] %v3679_v32  ;;  %5187 = vst [vmem:[#allocation66_spill] sm:$0xff] %v3681_v48  ;;  %1160 = vperm.xlu1 %3001, %v946_v47   ;;  %1155 = vperm.xlu0 %3000, %v945_v31   ;;  %v950_v32 = vld [vmem:[%s5123_s2 + $0xc8] sm:$0xff]  ;;  %v949_v47 = vld [vmem:[%s5123_s2 + $0xc0] sm:$0xff] }
 0x12d   :  { %v3689_v63 = vpop.permute.xlu1 %598  ;;  %v3691_v16 = vpop.permute.xlu0 %593 }
 0x12e   :  { %5188 = vst [vmem:[#allocation67_spill] sm:$0xff] %v3689_v63  ;;  %5189 = vst [vmem:[#allocation68_spill] sm:$0xff] %v3691_v16  ;;  %1170 = vperm.xlu1 %3001, %v948_v0   ;;  %1165 = vperm.xlu0 %3000, %v947_v15   ;;  %v952_v63 = vld [vmem:[%s5123_s2 + $0xd8] sm:$0xff]  ;;  %v951_v0 = vld [vmem:[%s5123_s2 + $0xd0] sm:$0xff] }
 0x131   :  { %v3699_v31 = vpop.permute.xlu1 %608  ;;  %v3701_v48 = vpop.permute.xlu0 %603 }
 0x132   :  { %5190 = vst [vmem:[#allocation69_spill] sm:$0xff] %v3699_v31  ;;  %5191 = vst [vmem:[#allocation70_spill] sm:$0xff] %v3701_v48  ;;  %1180 = vperm.xlu1 %3001, %v950_v32   ;;  %1175 = vperm.xlu0 %3000, %v949_v47   ;;  %v954_v31 = vld [vmem:[%s5123_s2 + $0xe8] sm:$0xff]  ;;  %v953_v32 = vld [vmem:[%s5123_s2 + $0xe0] sm:$0xff] }
 0x135   :  { %v3709_v15 = vpop.permute.xlu1 %618  ;;  %v3711_v16 = vpop.permute.xlu0 %613 }
 0x136   :  { %5192 = vst [vmem:[#allocation71_spill] sm:$0xff] %v3709_v15  ;;  %5193 = vst [vmem:[#allocation72_spill] sm:$0xff] %v3711_v16  ;;  %1190 = vperm.xlu1 %3001, %v952_v63   ;;  %1185 = vperm.xlu0 %3000, %v951_v0   ;;  %v956_v15 = vld [vmem:[%s5123_s2 + $0xf8] sm:$0xff]  ;;  %v955_v63 = vld [vmem:[%s5123_s2 + $0xf0] sm:$0xff] }
 0x139   :  { %v3719_v47 = vpop.permute.xlu1 %628  ;;  %v3721_v48 = vpop.permute.xlu0 %623 }
 0x13a   :  { %5194 = vst [vmem:[#allocation73_spill] sm:$0xff] %v3719_v47  ;;  %5195 = vst [vmem:[#allocation74_spill] sm:$0xff] %v3721_v48  ;;  %1200 = vperm.xlu1 %3001, %v954_v31   ;;  %1195 = vperm.xlu0 %3000, %v953_v32   ;;  %v958_v47 = vld [vmem:[%s5123_s2 + $0x108] sm:$0xff]  ;;  %v957_v31 = vld [vmem:[%s5123_s2 + $0x100] sm:$0xff] }
 0x13d   :  { %v3729_v0 = vpop.permute.xlu1 %638  ;;  %v3731_v16 = vpop.permute.xlu0 %633 }
 0x13e   :  { %5196 = vst [vmem:[#allocation75_spill] sm:$0xff] %v3729_v0  ;;  %5197 = vst [vmem:[#allocation76_spill] sm:$0xff] %v3731_v16  ;;  %1210 = vperm.xlu1 %3001, %v956_v15   ;;  %1205 = vperm.xlu0 %3000, %v955_v63   ;;  %v960_v0 = vld [vmem:[%s5123_s2 + $0x118] sm:$0xff]  ;;  %v959_v15 = vld [vmem:[%s5123_s2 + $0x110] sm:$0xff] }
 0x141   :  { %v3739_v32 = vpop.permute.xlu1 %648  ;;  %v3741_v48 = vpop.permute.xlu0 %643 }
 0x142   :  { %5198 = vst [vmem:[#allocation77_spill] sm:$0xff] %v3739_v32  ;;  %5199 = vst [vmem:[#allocation78_spill] sm:$0xff] %v3741_v48  ;;  %1220 = vperm.xlu1 %3001, %v958_v47   ;;  %1215 = vperm.xlu0 %3000, %v957_v31   ;;  %v962_v32 = vld [vmem:[%s5123_s2 + $0x128] sm:$0xff]  ;;  %v961_v47 = vld [vmem:[%s5123_s2 + $0x120] sm:$0xff] }
 0x145   :  { %v3749_v63 = vpop.permute.xlu1 %658  ;;  %v3751_v16 = vpop.permute.xlu0 %653 }
 0x146   :  { %5200 = vst [vmem:[#allocation79_spill] sm:$0xff] %v3749_v63  ;;  %5201 = vst [vmem:[#allocation80_spill] sm:$0xff] %v3751_v16  ;;  %1230 = vperm.xlu1 %3001, %v960_v0   ;;  %1225 = vperm.xlu0 %3000, %v959_v15   ;;  %v964_v63 = vld [vmem:[%s5123_s2 + $0x138] sm:$0xff]  ;;  %v963_v0 = vld [vmem:[%s5123_s2 + $0x130] sm:$0xff] }
 0x149   :  { %v3759_v31 = vpop.permute.xlu1 %668  ;;  %v3761_v48 = vpop.permute.xlu0 %663 }
 0x14a   :  { %5202 = vst [vmem:[#allocation81_spill] sm:$0xff] %v3759_v31  ;;  %5203 = vst [vmem:[#allocation82_spill] sm:$0xff] %v3761_v48  ;;  %1240 = vperm.xlu1 %3001, %v962_v32   ;;  %1235 = vperm.xlu0 %3000, %v961_v47   ;;  %v966_v31 = vld [vmem:[%s5123_s2 + $0x148] sm:$0xff]  ;;  %v965_v32 = vld [vmem:[%s5123_s2 + $0x140] sm:$0xff] }
 0x14d   :  { %v3769_v15 = vpop.permute.xlu1 %678  ;;  %v3771_v16 = vpop.permute.xlu0 %673 }
 0x14e   :  { %5204 = vst [vmem:[#allocation83_spill] sm:$0xff] %v3769_v15  ;;  %5205 = vst [vmem:[#allocation84_spill] sm:$0xff] %v3771_v16  ;;  %1250 = vperm.xlu1 %3001, %v964_v63   ;;  %1245 = vperm.xlu0 %3000, %v963_v0   ;;  %v968_v15 = vld [vmem:[%s5123_s2 + $0x158] sm:$0xff]  ;;  %v967_v63 = vld [vmem:[%s5123_s2 + $0x150] sm:$0xff] }
 0x151   :  { %v3779_v47 = vpop.permute.xlu1 %688  ;;  %v3781_v48 = vpop.permute.xlu0 %683 }
 0x152   :  { %5206 = vst [vmem:[#allocation85_spill] sm:$0xff] %v3779_v47  ;;  %5207 = vst [vmem:[#allocation86_spill] sm:$0xff] %v3781_v48  ;;  %1260 = vperm.xlu1 %3001, %v966_v31   ;;  %1255 = vperm.xlu0 %3000, %v965_v32   ;;  %v970_v47 = vld [vmem:[%s5123_s2 + $0x168] sm:$0xff]  ;;  %v969_v31 = vld [vmem:[%s5123_s2 + $0x160] sm:$0xff] }
 0x155   :  { %v3789_v0 = vpop.permute.xlu1 %698  ;;  %v3791_v16 = vpop.permute.xlu0 %693 }
 0x156   :  { %5208 = vst [vmem:[#allocation87_spill] sm:$0xff] %v3789_v0  ;;  %5209 = vst [vmem:[#allocation88_spill] sm:$0xff] %v3791_v16  ;;  %1270 = vperm.xlu1 %3001, %v968_v15   ;;  %1265 = vperm.xlu0 %3000, %v967_v63   ;;  %v972_v0 = vld [vmem:[%s5123_s2 + $0x178] sm:$0xff]  ;;  %v971_v15 = vld [vmem:[%s5123_s2 + $0x170] sm:$0xff] }
 0x159   :  { %v3799_v32 = vpop.permute.xlu1 %708  ;;  %v3801_v48 = vpop.permute.xlu0 %703 }
 0x15a   :  { %5210 = vst [vmem:[#allocation89_spill] sm:$0xff] %v3799_v32  ;;  %5211 = vst [vmem:[#allocation90_spill] sm:$0xff] %v3801_v48  ;;  %1280 = vperm.xlu1 %3001, %v970_v47   ;;  %1275 = vperm.xlu0 %3000, %v969_v31   ;;  %v974_v32 = vld [vmem:[%s5123_s2 + $0x188] sm:$0xff]  ;;  %v973_v47 = vld [vmem:[%s5123_s2 + $0x180] sm:$0xff] }
 0x15d   :  { %v3809_v63 = vpop.permute.xlu1 %718  ;;  %v3811_v16 = vpop.permute.xlu0 %713 }
 0x15e   :  { %5212 = vst [vmem:[#allocation91_spill] sm:$0xff] %v3809_v63  ;;  %5213 = vst [vmem:[#allocation92_spill] sm:$0xff] %v3811_v16  ;;  %1290 = vperm.xlu1 %3001, %v972_v0   ;;  %1285 = vperm.xlu0 %3000, %v971_v15   ;;  %v976_v63 = vld [vmem:[%s5123_s2 + $0x198] sm:$0xff]  ;;  %v975_v0 = vld [vmem:[%s5123_s2 + $0x190] sm:$0xff] }
 0x161   :  { %v3819_v31 = vpop.permute.xlu1 %728  ;;  %v3821_v48 = vpop.permute.xlu0 %723 }
 0x162   :  { %5214 = vst [vmem:[#allocation93_spill] sm:$0xff] %v3819_v31  ;;  %5215 = vst [vmem:[#allocation94_spill] sm:$0xff] %v3821_v48  ;;  %1300 = vperm.xlu1 %3001, %v974_v32   ;;  %1295 = vperm.xlu0 %3000, %v973_v47   ;;  %v978_v31 = vld [vmem:[%s5123_s2 + $0x1a8] sm:$0xff]  ;;  %v977_v32 = vld [vmem:[%s5123_s2 + $0x1a0] sm:$0xff] }
 0x165   :  { %v3829_v15 = vpop.permute.xlu1 %738  ;;  %v3831_v16 = vpop.permute.xlu0 %733 }
 0x166   :  { %5216 = vst [vmem:[#allocation95_spill] sm:$0xff] %v3829_v15  ;;  %5217 = vst [vmem:[#allocation96_spill] sm:$0xff] %v3831_v16  ;;  %1310 = vperm.xlu1 %3001, %v976_v63   ;;  %1305 = vperm.xlu0 %3000, %v975_v0   ;;  %v980_v15 = vld [vmem:[%s5123_s2 + $0x1b8] sm:$0xff]  ;;  %v979_v63 = vld [vmem:[%s5123_s2 + $0x1b0] sm:$0xff] }
 0x169   :  { %v3839_v47 = vpop.permute.xlu1 %748  ;;  %v3841_v48 = vpop.permute.xlu0 %743 }
 0x16a   :  { %5218 = vst [vmem:[#allocation97_spill] sm:$0xff] %v3839_v47  ;;  %5219 = vst [vmem:[#allocation98_spill] sm:$0xff] %v3841_v48  ;;  %1320 = vperm.xlu1 %3001, %v978_v31   ;;  %1315 = vperm.xlu0 %3000, %v977_v32   ;;  %v982_v47 = vld [vmem:[%s5123_s2 + $0x1c8] sm:$0xff]  ;;  %v981_v31 = vld [vmem:[%s5123_s2 + $0x1c0] sm:$0xff] }
 0x16d   :  { %v3849_v0 = vpop.permute.xlu1 %758  ;;  %v3851_v16 = vpop.permute.xlu0 %753 }
 0x16e   :  { %5220 = vst [vmem:[#allocation99_spill] sm:$0xff] %v3849_v0  ;;  %5221 = vst [vmem:[#allocation100_spill] sm:$0xff] %v3851_v16  ;;  %1330 = vperm.xlu1 %3001, %v980_v15   ;;  %1325 = vperm.xlu0 %3000, %v979_v63   ;;  %v984_v0 = vld [vmem:[%s5123_s2 + $0x1d8] sm:$0xff]  ;;  %v983_v15 = vld [vmem:[%s5123_s2 + $0x1d0] sm:$0xff] }
 0x171   :  { %v3859_v32 = vpop.permute.xlu1 %768  ;;  %v3861_v48 = vpop.permute.xlu0 %763 }
 0x172   :  { %5222 = vst [vmem:[#allocation101_spill] sm:$0xff] %v3859_v32  ;;  %5223 = vst [vmem:[#allocation102_spill] sm:$0xff] %v3861_v48  ;;  %1340 = vperm.xlu1 %3001, %v982_v47   ;;  %1335 = vperm.xlu0 %3000, %v981_v31   ;;  %v986_v32 = vld [vmem:[%s5123_s2 + $0x1e8] sm:$0xff]  ;;  %v985_v47 = vld [vmem:[%s5123_s2 + $0x1e0] sm:$0xff] }
 0x175   :  { %v3869_v63 = vpop.permute.xlu1 %778  ;;  %v3871_v16 = vpop.permute.xlu0 %773 }
 0x176   :  { %5224 = vst [vmem:[#allocation103_spill] sm:$0xff] %v3869_v63  ;;  %5225 = vst [vmem:[#allocation104_spill] sm:$0xff] %v3871_v16  ;;  %1350 = vperm.xlu1 %3001, %v984_v0   ;;  %1345 = vperm.xlu0 %3000, %v983_v15   ;;  %v988_v63 = vld [vmem:[%s5123_s2 + $0x1f8] sm:$0xff]  ;;  %v987_v0 = vld [vmem:[%s5123_s2 + $0x1f0] sm:$0xff] }
 0x179   :  { %v3879_v31 = vpop.permute.xlu1 %788  ;;  %v3881_v48 = vpop.permute.xlu0 %783 }
 0x17a   :  { %5226 = vst [vmem:[#allocation105_spill] sm:$0xff] %v3879_v31  ;;  %5227 = vst [vmem:[#allocation106_spill] sm:$0xff] %v3881_v48  ;;  %1360 = vperm.xlu1 %3001, %v986_v32   ;;  %1355 = vperm.xlu0 %3000, %v985_v47   ;;  %v990_v31 = vld [vmem:[%s5123_s2 + $0x208] sm:$0xff]  ;;  %v989_v32 = vld [vmem:[%s5123_s2 + $0x200] sm:$0xff] }
 0x17d   :  { %v3889_v15 = vpop.permute.xlu1 %1060  ;;  %v3891_v16 = vpop.permute.xlu0 %1055 }
 0x17e   :  { %1370 = vperm.xlu1 %3001, %v988_v63   ;;  %1365 = vperm.xlu0 %3000, %v987_v0   ;;  %v991_v63 = vld [vmem:[%s5123_s2 + $0x210] sm:$0xff] }
 0x181   :  { %v3899_v47 = vpop.permute.xlu1 %1070  ;;  %v3901_v48 = vpop.permute.xlu0 %1065 }
 0x182   :  { %1380 = vperm.xlu1 %3001, %v990_v31   ;;  %1375 = vperm.xlu0 %3000, %v989_v32   ;;  %v993_v31 = vld [vmem:[%s5123_s2 + $0x220] sm:$0xff] }
 0x185   :  { %v3909_v0 = vpop.permute.xlu1 %1080  ;;  %v3911_v56 = vpop.permute.xlu0 %1075 }
 0x186   :  { %1390 = vperm.xlu1 %3001, %v992_v55   ;;  %1385 = vperm.xlu0 %3000, %v991_v63   ;;  %v995_v55 = vld [vmem:[%s5123_s2 + $0x230] sm:$0xff] }
 0x189   :  { %v3919_v32 = vpop.permute.xlu1 %1090  ;;  %v3921_v40 = vpop.permute.xlu0 %1085 }
 0x18a   :  { %1400 = vperm.xlu1 %3001, %v994_v39   ;;  %1395 = vperm.xlu0 %3000, %v993_v31   ;;  %v997_v39 = vld [vmem:[%s5123_s2 + $0x240] sm:$0xff] }
 0x18d   :  { %v3929_v63 = vpop.permute.xlu1 %1100  ;;  %v3931_v24 = vpop.permute.xlu0 %1095 }
 0x18e   :  { %1410 = vperm.xlu1 %3001, %v996_v23   ;;  %1405 = vperm.xlu0 %3000, %v995_v55   ;;  %v999_v23 = vld [vmem:[%s5123_s2 + $0x250] sm:$0xff] }
 0x191   :  { %v3939_v31 = vpop.permute.xlu1 %1110  ;;  %v3941_v8 = vpop.permute.xlu0 %1105 }
 0x192   :  { %1420 = vperm.xlu1 %3001, %v998_v7   ;;  %1415 = vperm.xlu0 %3000, %v997_v39   ;;  %v1001_v7 = vld [vmem:[%s5123_s2 + $0x260] sm:$0xff] }
 0x195   :  { %v3949_v55 = vpop.permute.xlu1 %1120  ;;  %v3951_v60 = vpop.permute.xlu0 %1115 }
 0x196   :  { %1430 = vperm.xlu1 %3001, %v1000_v59   ;;  %1425 = vperm.xlu0 %3000, %v999_v23   ;;  %v1003_v59 = vld [vmem:[%s5123_s2 + $0x270] sm:$0xff] }
 0x199   :  { %v3959_v39 = vpop.permute.xlu1 %1130  ;;  %v3961_v52 = vpop.permute.xlu0 %1125 }
 0x19a   :  { %1440 = vperm.xlu1 %3001, %v1002_v51   ;;  %1435 = vperm.xlu0 %3000, %v1001_v7   ;;  %v1005_v51 = vld [vmem:[%s5123_s2 + $0x280] sm:$0xff] }
 0x19d   :  { %v3969_v23 = vpop.permute.xlu1 %1140  ;;  %v3971_v44 = vpop.permute.xlu0 %1135 }
 0x19e   :  { %1450 = vperm.xlu1 %3001, %v1004_v43   ;;  %1445 = vperm.xlu0 %3000, %v1003_v59   ;;  %v1007_v43 = vld [vmem:[%s5123_s2 + $0x290] sm:$0xff] }
 0x1a1   :  { %v3979_v7 = vpop.permute.xlu1 %1150  ;;  %v3981_v36 = vpop.permute.xlu0 %1145 }
 0x1a2   :  { %1460 = vperm.xlu1 %3001, %v1006_v35   ;;  %1455 = vperm.xlu0 %3000, %v1005_v51   ;;  %v1009_v35 = vld [vmem:[%s5123_s2 + $0x2a0] sm:$0xff] }
 0x1a5   :  { %v3989_v59 = vpop.permute.xlu1 %1160  ;;  %v3991_v28 = vpop.permute.xlu0 %1155 }
 0x1a6   :  { %1470 = vperm.xlu1 %3001, %v1008_v27   ;;  %1465 = vperm.xlu0 %3000, %v1007_v43   ;;  %v1011_v27 = vld [vmem:[%s5123_s2 + $0x2b0] sm:$0xff] }
 0x1a9   :  { %v3999_v51 = vpop.permute.xlu1 %1170  ;;  %v4001_v20 = vpop.permute.xlu0 %1165 }
 0x1aa   :  { %1480 = vperm.xlu1 %3001, %v1010_v19   ;;  %1475 = vperm.xlu0 %3000, %v1009_v35   ;;  %v1013_v19 = vld [vmem:[%s5123_s2 + $0x2c0] sm:$0xff] }
 0x1ad   :  { %v4009_v43 = vpop.permute.xlu1 %1180  ;;  %v4011_v12 = vpop.permute.xlu0 %1175 }
 0x1ae   :  { %5228 = vst [vmem:[#allocation107_spill] sm:$0xff] %v4009_v43  ;;  %1490 = vperm.xlu1 %3001, %v1012_v11   ;;  %1485 = vperm.xlu0 %3000, %v1011_v27   ;;  %v1015_v11 = vld [vmem:[%s5123_s2 + $0x2d0] sm:$0xff]  ;;  %v2014_v43 = vld [vmem:[%s5124_s3 + $0x208] sm:$0xff] }
 0x1b1   :  { %v4019_v35 = vpop.permute.xlu1 %1190  ;;  %v4021_v4 = vpop.permute.xlu0 %1185 }
 0x1b2   :  { %5229 = vst [vmem:[#allocation108_spill] sm:$0xff] %v4019_v35  ;;  %5230 = vst [vmem:[#allocation109_spill] sm:$0xff] %v4021_v4  ;;  %1500 = vperm.xlu1 %3001, %v1014_v3   ;;  %1495 = vperm.xlu0 %3000, %v1013_v19   ;;  %v1017_v3 = vld [vmem:[%s5123_s2 + $0x2e0] sm:$0xff] }
 0x1b5   :  { %v4029_v27 = vpop.permute.xlu1 %1200  ;;  %v4031_v62 = vpop.permute.xlu0 %1195 }
 0x1b6   :  { %5231 = vst [vmem:[#allocation110_spill] sm:$0xff] %v4029_v27  ;;  %5232 = vst [vmem:[#allocation111_spill] sm:$0xff] %v4031_v62  ;;  %1510 = vperm.xlu1 %3001, %v1016_v61   ;;  %1505 = vperm.xlu0 %3000, %v1015_v11   ;;  %v1020_v27 = vld [vmem:[%s5123_s2 + $0x2f8] sm:$0xff]  ;;  %v1019_v61 = vld [vmem:[%s5123_s2 + $0x2f0] sm:$0xff] }
 0x1b9   :  { %v4039_v19 = vpop.permute.xlu1 %1210  ;;  %v4041_v35 = vpop.permute.xlu0 %1205 }
 0x1ba   :  { %5233 = vst [vmem:[#allocation112_spill] sm:$0xff] %v4039_v19  ;;  %5234 = vst [vmem:[#allocation113_spill] sm:$0xff] %v4041_v35  ;;  %1520 = vperm.xlu1 %3001, %v1018_v57   ;;  %1515 = vperm.xlu0 %3000, %v1017_v3   ;;  %v1022_v19 = vld [vmem:[%s5123_s2 + $0x308] sm:$0xff]  ;;  %v1021_v57 = vld [vmem:[%s5123_s2 + $0x300] sm:$0xff] }
 0x1bd   :  { %v4049_v11 = vpop.permute.xlu1 %1220  ;;  %v4051_v62 = vpop.permute.xlu0 %1215 }
 0x1be   :  { %5235 = vst [vmem:[#allocation114_spill] sm:$0xff] %v4049_v11  ;;  %5236 = vst [vmem:[#allocation115_spill] sm:$0xff] %v4051_v62  ;;  %1530 = vperm.xlu1 %3001, %v1020_v27   ;;  %1525 = vperm.xlu0 %3000, %v1019_v61   ;;  %v1024_v11 = vld [vmem:[%s5123_s2 + $0x318] sm:$0xff]  ;;  %v1023_v27 = vld [vmem:[%s5123_s2 + $0x310] sm:$0xff] }
 0x1c1   :  { %v4059_v3 = vpop.permute.xlu1 %1230  ;;  %v4061_v35 = vpop.permute.xlu0 %1225 }
 0x1c2   :  { %5237 = vst [vmem:[#allocation116_spill] sm:$0xff] %v4059_v3  ;;  %5238 = vst [vmem:[#allocation117_spill] sm:$0xff] %v4061_v35  ;;  %1540 = vperm.xlu1 %3001, %v1022_v19   ;;  %1535 = vperm.xlu0 %3000, %v1021_v57   ;;  %v1026_v3 = vld [vmem:[%s5123_s2 + $0x328] sm:$0xff]  ;;  %v1025_v19 = vld [vmem:[%s5123_s2 + $0x320] sm:$0xff] }
 0x1c5   :  { %v4069_v61 = vpop.permute.xlu1 %1240  ;;  %v4071_v62 = vpop.permute.xlu0 %1235 }
 0x1c6   :  { %5239 = vst [vmem:[#allocation118_spill] sm:$0xff] %v4069_v61  ;;  %5240 = vst [vmem:[#allocation119_spill] sm:$0xff] %v4071_v62  ;;  %1550 = vperm.xlu1 %3001, %v1024_v11   ;;  %1545 = vperm.xlu0 %3000, %v1023_v27   ;;  %v1028_v61 = vld [vmem:[%s5123_s2 + $0x338] sm:$0xff]  ;;  %v1027_v11 = vld [vmem:[%s5123_s2 + $0x330] sm:$0xff] }
 0x1c9   :  { %v4079_v57 = vpop.permute.xlu1 %1250  ;;  %v4081_v35 = vpop.permute.xlu0 %1245 }
 0x1ca   :  { %5241 = vst [vmem:[#allocation120_spill] sm:$0xff] %v4079_v57  ;;  %5242 = vst [vmem:[#allocation121_spill] sm:$0xff] %v4081_v35  ;;  %1560 = vperm.xlu1 %3001, %v1026_v3   ;;  %1555 = vperm.xlu0 %3000, %v1025_v19   ;;  %v1030_v57 = vld [vmem:[%s5123_s2 + $0x348] sm:$0xff]  ;;  %v1029_v3 = vld [vmem:[%s5123_s2 + $0x340] sm:$0xff] }
 0x1cd   :  { %v4089_v27 = vpop.permute.xlu1 %1260  ;;  %v4091_v62 = vpop.permute.xlu0 %1255 }
 0x1ce   :  { %5243 = vst [vmem:[#allocation122_spill] sm:$0xff] %v4089_v27  ;;  %5244 = vst [vmem:[#allocation123_spill] sm:$0xff] %v4091_v62  ;;  %1570 = vperm.xlu1 %3001, %v1028_v61   ;;  %1565 = vperm.xlu0 %3000, %v1027_v11   ;;  %v1032_v27 = vld [vmem:[%s5123_s2 + $0x358] sm:$0xff]  ;;  %v1031_v61 = vld [vmem:[%s5123_s2 + $0x350] sm:$0xff] }
 0x1d1   :  { %v4099_v19 = vpop.permute.xlu1 %1270  ;;  %v4101_v35 = vpop.permute.xlu0 %1265 }
 0x1d2   :  { %5245 = vst [vmem:[#allocation124_spill] sm:$0xff] %v4099_v19  ;;  %5246 = vst [vmem:[#allocation125_spill] sm:$0xff] %v4101_v35  ;;  %1580 = vperm.xlu1 %3001, %v1030_v57   ;;  %1575 = vperm.xlu0 %3000, %v1029_v3   ;;  %v1034_v19 = vld [vmem:[%s5123_s2 + $0x368] sm:$0xff]  ;;  %v1033_v57 = vld [vmem:[%s5123_s2 + $0x360] sm:$0xff] }
 0x1d5   :  { %v4109_v11 = vpop.permute.xlu1 %1280  ;;  %v4111_v62 = vpop.permute.xlu0 %1275 }
 0x1d6   :  { %5247 = vst [vmem:[#allocation126_spill] sm:$0xff] %v4109_v11  ;;  %5248 = vst [vmem:[#allocation127_spill] sm:$0xff] %v4111_v62  ;;  %1590 = vperm.xlu1 %3001, %v1032_v27   ;;  %1585 = vperm.xlu0 %3000, %v1031_v61   ;;  %v1036_v11 = vld [vmem:[%s5123_s2 + $0x378] sm:$0xff]  ;;  %v1035_v27 = vld [vmem:[%s5123_s2 + $0x370] sm:$0xff] }
 0x1d9   :  { %v4119_v3 = vpop.permute.xlu1 %1290  ;;  %v4121_v35 = vpop.permute.xlu0 %1285 }
 0x1da   :  { %5249 = vst [vmem:[#allocation128_spill] sm:$0xff] %v4119_v3  ;;  %5250 = vst [vmem:[#allocation129_spill] sm:$0xff] %v4121_v35  ;;  %1600 = vperm.xlu1 %3001, %v1034_v19   ;;  %1595 = vperm.xlu0 %3000, %v1033_v57   ;;  %v1038_v3 = vld [vmem:[%s5123_s2 + $0x388] sm:$0xff]  ;;  %v1037_v19 = vld [vmem:[%s5123_s2 + $0x380] sm:$0xff] }
 0x1dd   :  { %v4129_v61 = vpop.permute.xlu1 %1300  ;;  %v4131_v62 = vpop.permute.xlu0 %1295 }
 0x1de   :  { %5251 = vst [vmem:[#allocation130_spill] sm:$0xff] %v4129_v61  ;;  %5252 = vst [vmem:[#allocation131_spill] sm:$0xff] %v4131_v62  ;;  %1610 = vperm.xlu1 %3001, %v1036_v11   ;;  %1605 = vperm.xlu0 %3000, %v1035_v27   ;;  %v1040_v61 = vld [vmem:[%s5123_s2 + $0x398] sm:$0xff]  ;;  %v1039_v11 = vld [vmem:[%s5123_s2 + $0x390] sm:$0xff] }
 0x1e1   :  { %v4139_v57 = vpop.permute.xlu1 %1310  ;;  %v4141_v35 = vpop.permute.xlu0 %1305 }
 0x1e2   :  { %5253 = vst [vmem:[#allocation132_spill] sm:$0xff] %v4139_v57  ;;  %5254 = vst [vmem:[#allocation133_spill] sm:$0xff] %v4141_v35  ;;  %1620 = vperm.xlu1 %3001, %v1038_v3   ;;  %1615 = vperm.xlu0 %3000, %v1037_v19   ;;  %v1042_v57 = vld [vmem:[%s5123_s2 + $0x3a8] sm:$0xff]  ;;  %v1041_v3 = vld [vmem:[%s5123_s2 + $0x3a0] sm:$0xff] }
 0x1e5   :  { %v4149_v27 = vpop.permute.xlu1 %1320  ;;  %v4151_v62 = vpop.permute.xlu0 %1315 }
 0x1e6   :  { %5255 = vst [vmem:[#allocation134_spill] sm:$0xff] %v4149_v27  ;;  %5256 = vst [vmem:[#allocation135_spill] sm:$0xff] %v4151_v62  ;;  %1630 = vperm.xlu1 %3001, %v1040_v61   ;;  %1625 = vperm.xlu0 %3000, %v1039_v11   ;;  %v1044_v27 = vld [vmem:[%s5123_s2 + $0x3b8] sm:$0xff]  ;;  %v1043_v61 = vld [vmem:[%s5123_s2 + $0x3b0] sm:$0xff] }
 0x1e9   :  { %v4159_v19 = vpop.permute.xlu1 %1330  ;;  %v4161_v35 = vpop.permute.xlu0 %1325 }
 0x1ea   :  { %5257 = vst [vmem:[#allocation136_spill] sm:$0xff] %v4159_v19  ;;  %5258 = vst [vmem:[#allocation137_spill] sm:$0xff] %v4161_v35  ;;  %1640 = vperm.xlu1 %3001, %v1042_v57   ;;  %1635 = vperm.xlu0 %3000, %v1041_v3   ;;  %v1046_v19 = vld [vmem:[%s5123_s2 + $0x3c8] sm:$0xff]  ;;  %v1045_v57 = vld [vmem:[%s5123_s2 + $0x3c0] sm:$0xff] }
 0x1ed   :  { %v4169_v11 = vpop.permute.xlu1 %1340  ;;  %v4171_v62 = vpop.permute.xlu0 %1335 }
 0x1ee   :  { %5259 = vst [vmem:[#allocation138_spill] sm:$0xff] %v4169_v11  ;;  %5260 = vst [vmem:[#allocation139_spill] sm:$0xff] %v4171_v62  ;;  %1650 = vperm.xlu1 %3001, %v1044_v27   ;;  %1645 = vperm.xlu0 %3000, %v1043_v61   ;;  %v1048_v11 = vld [vmem:[%s5123_s2 + $0x3d8] sm:$0xff]  ;;  %v1047_v27 = vld [vmem:[%s5123_s2 + $0x3d0] sm:$0xff] }
 0x1f1   :  { %v4179_v3 = vpop.permute.xlu1 %1350  ;;  %v4181_v35 = vpop.permute.xlu0 %1345 }
 0x1f2   :  { %5261 = vst [vmem:[#allocation140_spill] sm:$0xff] %v4179_v3  ;;  %5262 = vst [vmem:[#allocation141_spill] sm:$0xff] %v4181_v35  ;;  %1660 = vperm.xlu1 %3001, %v1046_v19   ;;  %1655 = vperm.xlu0 %3000, %v1045_v57   ;;  %v1050_v3 = vld [vmem:[%s5123_s2 + $0x3e8] sm:$0xff]  ;;  %v1049_v19 = vld [vmem:[%s5123_s2 + $0x3e0] sm:$0xff] }
 0x1f5   :  { %v4189_v61 = vpop.permute.xlu1 %1360  ;;  %v4191_v62 = vpop.permute.xlu0 %1355 }
 0x1f6   :  { %5263 = vst [vmem:[#allocation142_spill] sm:$0xff] %v4189_v61  ;;  %5264 = vst [vmem:[#allocation143_spill] sm:$0xff] %v4191_v62  ;;  %1670 = vperm.xlu1 %3001, %v1048_v11   ;;  %1665 = vperm.xlu0 %3000, %v1047_v27   ;;  %v1052_v61 = vld [vmem:[%s5123_s2 + $0x3f8] sm:$0xff]  ;;  %v1051_v11 = vld [vmem:[%s5123_s2 + $0x3f0] sm:$0xff] }
 0x1f9   :  { %v4199_v57 = vpop.permute.xlu1 %1370  ;;  %v4201_v35 = vpop.permute.xlu0 %1365 }
 0x1fa   :  { %5265 = vst [vmem:[#allocation144_spill] sm:$0xff] %v4199_v57  ;;  %5266 = vst [vmem:[#allocation145_spill] sm:$0xff] %v4201_v35  ;;  %1680 = vperm.xlu1 %3001, %v1050_v3   ;;  %1675 = vperm.xlu0 %3000, %v1049_v19   ;;  %v1950_v57 = vld [vmem:[%s5124_s3 + $0x8] sm:$0xff]  ;;  %v1949_v3 = vld [vmem:[%s5124_s3] sm:$0xff] }
 0x1fd   :  { %v4209_v27 = vpop.permute.xlu1 %1380  ;;  %v4211_v62 = vpop.permute.xlu0 %1375 }
 0x1fe   :  { %5267 = vst [vmem:[#allocation146_spill] sm:$0xff] %v4209_v27  ;;  %5268 = vst [vmem:[#allocation147_spill] sm:$0xff] %v4211_v62  ;;  %1690 = vperm.xlu1 %3001, %v1052_v61   ;;  %1685 = vperm.xlu0 %3000, %v1051_v11   ;;  %v1952_v27 = vld [vmem:[%s5124_s3 + $0x18] sm:$0xff]  ;;  %v1951_v61 = vld [vmem:[%s5124_s3 + $0x10] sm:$0xff] }
 0x201   :  { %v4219_v19 = vpop.permute.xlu1 %1390  ;;  %v4221_v35 = vpop.permute.xlu0 %1385 }
 0x202   :  { %5269 = vst [vmem:[#allocation148_spill] sm:$0xff] %v4219_v19  ;;  %5270 = vst [vmem:[#allocation149_spill] sm:$0xff] %v4221_v35  ;;  %2084 = vperm.xlu1 %3001, %v1950_v57   ;;  %2079 = vperm.xlu0 %3000, %v1949_v3   ;;  %v1954_v19 = vld [vmem:[%s5124_s3 + $0x28] sm:$0xff]  ;;  %v1953_v57 = vld [vmem:[%s5124_s3 + $0x20] sm:$0xff] }
 0x205   :  { %v4229_v11 = vpop.permute.xlu1 %1400  ;;  %v4231_v62 = vpop.permute.xlu0 %1395 }
 0x206   :  { %5271 = vst [vmem:[#allocation150_spill] sm:$0xff] %v4229_v11  ;;  %5272 = vst [vmem:[#allocation151_spill] sm:$0xff] %v4231_v62  ;;  %2094 = vperm.xlu1 %3001, %v1952_v27   ;;  %2089 = vperm.xlu0 %3000, %v1951_v61   ;;  %v1956_v11 = vld [vmem:[%s5124_s3 + $0x38] sm:$0xff]  ;;  %v1955_v27 = vld [vmem:[%s5124_s3 + $0x30] sm:$0xff] }
 0x209   :  { %v4239_v3 = vpop.permute.xlu1 %1410  ;;  %v4241_v35 = vpop.permute.xlu0 %1405 }
 0x20a   :  { %5273 = vst [vmem:[#allocation152_spill] sm:$0xff] %v4239_v3  ;;  %5274 = vst [vmem:[#allocation153_spill] sm:$0xff] %v4241_v35  ;;  %2104 = vperm.xlu1 %3001, %v1954_v19   ;;  %2099 = vperm.xlu0 %3000, %v1953_v57   ;;  %v1958_v3 = vld [vmem:[%s5124_s3 + $0x48] sm:$0xff]  ;;  %v1957_v19 = vld [vmem:[%s5124_s3 + $0x40] sm:$0xff] }
 0x20d   :  { %v4249_v61 = vpop.permute.xlu1 %1420  ;;  %v4251_v62 = vpop.permute.xlu0 %1415 }
 0x20e   :  { %5275 = vst [vmem:[#allocation154_spill] sm:$0xff] %v4249_v61  ;;  %5276 = vst [vmem:[#allocation155_spill] sm:$0xff] %v4251_v62  ;;  %2114 = vperm.xlu1 %3001, %v1956_v11   ;;  %2109 = vperm.xlu0 %3000, %v1955_v27   ;;  %v1960_v61 = vld [vmem:[%s5124_s3 + $0x58] sm:$0xff]  ;;  %v1959_v11 = vld [vmem:[%s5124_s3 + $0x50] sm:$0xff] }
 0x211   :  { %v4259_v57 = vpop.permute.xlu1 %1430  ;;  %v4261_v35 = vpop.permute.xlu0 %1425 }
 0x212   :  { %5277 = vst [vmem:[#allocation156_spill] sm:$0xff] %v4259_v57  ;;  %5278 = vst [vmem:[#allocation157_spill] sm:$0xff] %v4261_v35  ;;  %2124 = vperm.xlu1 %3001, %v1958_v3   ;;  %2119 = vperm.xlu0 %3000, %v1957_v19   ;;  %v1962_v57 = vld [vmem:[%s5124_s3 + $0x68] sm:$0xff]  ;;  %v1961_v3 = vld [vmem:[%s5124_s3 + $0x60] sm:$0xff] }
 0x215   :  { %v4269_v27 = vpop.permute.xlu1 %1440  ;;  %v4271_v62 = vpop.permute.xlu0 %1435 }
 0x216   :  { %5279 = vst [vmem:[#allocation158_spill] sm:$0xff] %v4269_v27  ;;  %5280 = vst [vmem:[#allocation159_spill] sm:$0xff] %v4271_v62  ;;  %2134 = vperm.xlu1 %3001, %v1960_v61   ;;  %2129 = vperm.xlu0 %3000, %v1959_v11   ;;  %v1964_v27 = vld [vmem:[%s5124_s3 + $0x78] sm:$0xff]  ;;  %v1963_v61 = vld [vmem:[%s5124_s3 + $0x70] sm:$0xff] }
 0x219   :  { %v4279_v19 = vpop.permute.xlu1 %1450  ;;  %v4281_v35 = vpop.permute.xlu0 %1445 }
 0x21a   :  { %5281 = vst [vmem:[#allocation160_spill] sm:$0xff] %v4279_v19  ;;  %5282 = vst [vmem:[#allocation161_spill] sm:$0xff] %v4281_v35  ;;  %2144 = vperm.xlu1 %3001, %v1962_v57   ;;  %2139 = vperm.xlu0 %3000, %v1961_v3   ;;  %v1966_v19 = vld [vmem:[%s5124_s3 + $0x88] sm:$0xff]  ;;  %v1965_v57 = vld [vmem:[%s5124_s3 + $0x80] sm:$0xff] }
 0x21d   :  { %v4289_v11 = vpop.permute.xlu1 %1460  ;;  %v4291_v62 = vpop.permute.xlu0 %1455 }
 0x21e   :  { %5283 = vst [vmem:[#allocation162_spill] sm:$0xff] %v4289_v11  ;;  %5284 = vst [vmem:[#allocation163_spill] sm:$0xff] %v4291_v62  ;;  %2154 = vperm.xlu1 %3001, %v1964_v27   ;;  %2149 = vperm.xlu0 %3000, %v1963_v61   ;;  %v1968_v11 = vld [vmem:[%s5124_s3 + $0x98] sm:$0xff]  ;;  %v1967_v27 = vld [vmem:[%s5124_s3 + $0x90] sm:$0xff] }
 0x221   :  { %v4299_v3 = vpop.permute.xlu1 %1470  ;;  %v4301_v35 = vpop.permute.xlu0 %1465 }
 0x222   :  { %5285 = vst [vmem:[#allocation164_spill] sm:$0xff] %v4299_v3  ;;  %5286 = vst [vmem:[#allocation165_spill] sm:$0xff] %v4301_v35  ;;  %2164 = vperm.xlu1 %3001, %v1966_v19   ;;  %2159 = vperm.xlu0 %3000, %v1965_v57   ;;  %v1970_v3 = vld [vmem:[%s5124_s3 + $0xa8] sm:$0xff]  ;;  %v1969_v19 = vld [vmem:[%s5124_s3 + $0xa0] sm:$0xff] }
 0x225   :  { %v4309_v61 = vpop.permute.xlu1 %1480  ;;  %v4311_v62 = vpop.permute.xlu0 %1475 }
 0x226   :  { %5287 = vst [vmem:[#allocation166_spill] sm:$0xff] %v4309_v61  ;;  %5288 = vst [vmem:[#allocation167_spill] sm:$0xff] %v4311_v62  ;;  %2174 = vperm.xlu1 %3001, %v1968_v11   ;;  %2169 = vperm.xlu0 %3000, %v1967_v27   ;;  %v1972_v61 = vld [vmem:[%s5124_s3 + $0xb8] sm:$0xff]  ;;  %v1971_v11 = vld [vmem:[%s5124_s3 + $0xb0] sm:$0xff] }
 0x229   :  { %v4319_v57 = vpop.permute.xlu1 %1490  ;;  %v4321_v35 = vpop.permute.xlu0 %1485 }
 0x22a   :  { %5289 = vst [vmem:[#allocation168_spill] sm:$0xff] %v4319_v57  ;;  %5290 = vst [vmem:[#allocation169_spill] sm:$0xff] %v4321_v35  ;;  %2184 = vperm.xlu1 %3001, %v1970_v3   ;;  %2179 = vperm.xlu0 %3000, %v1969_v19   ;;  %v1974_v57 = vld [vmem:[%s5124_s3 + $0xc8] sm:$0xff]  ;;  %v1973_v3 = vld [vmem:[%s5124_s3 + $0xc0] sm:$0xff] }
 0x22d   :  { %v4329_v27 = vpop.permute.xlu1 %1500  ;;  %v4331_v62 = vpop.permute.xlu0 %1495 }
 0x22e   :  { %5291 = vst [vmem:[#allocation170_spill] sm:$0xff] %v4329_v27  ;;  %5292 = vst [vmem:[#allocation171_spill] sm:$0xff] %v4331_v62  ;;  %2194 = vperm.xlu1 %3001, %v1972_v61   ;;  %2189 = vperm.xlu0 %3000, %v1971_v11   ;;  %v1976_v27 = vld [vmem:[%s5124_s3 + $0xd8] sm:$0xff]  ;;  %v1975_v61 = vld [vmem:[%s5124_s3 + $0xd0] sm:$0xff] }
 0x231   :  { %v4339_v19 = vpop.permute.xlu1 %1510  ;;  %v4341_v35 = vpop.permute.xlu0 %1505 }
 0x232   :  { %5293 = vst [vmem:[#allocation172_spill] sm:$0xff] %v4339_v19  ;;  %5294 = vst [vmem:[#allocation173_spill] sm:$0xff] %v4341_v35  ;;  %2204 = vperm.xlu1 %3001, %v1974_v57   ;;  %2199 = vperm.xlu0 %3000, %v1973_v3   ;;  %v1978_v19 = vld [vmem:[%s5124_s3 + $0xe8] sm:$0xff]  ;;  %v1977_v57 = vld [vmem:[%s5124_s3 + $0xe0] sm:$0xff] }
 0x235   :  { %v4349_v11 = vpop.permute.xlu1 %1520  ;;  %v4351_v62 = vpop.permute.xlu0 %1515 }
 0x236   :  { %5295 = vst [vmem:[#allocation174_spill] sm:$0xff] %v4349_v11  ;;  %5296 = vst [vmem:[#allocation175_spill] sm:$0xff] %v4351_v62  ;;  %2214 = vperm.xlu1 %3001, %v1976_v27   ;;  %2209 = vperm.xlu0 %3000, %v1975_v61   ;;  %v1980_v11 = vld [vmem:[%s5124_s3 + $0xf8] sm:$0xff]  ;;  %v1979_v27 = vld [vmem:[%s5124_s3 + $0xf0] sm:$0xff] }
 0x239   :  { %v4359_v3 = vpop.permute.xlu1 %1530  ;;  %v4361_v35 = vpop.permute.xlu0 %1525 }
 0x23a   :  { %5297 = vst [vmem:[#allocation176_spill] sm:$0xff] %v4359_v3  ;;  %5298 = vst [vmem:[#allocation177_spill] sm:$0xff] %v4361_v35  ;;  %2224 = vperm.xlu1 %3001, %v1978_v19   ;;  %2219 = vperm.xlu0 %3000, %v1977_v57   ;;  %v1982_v3 = vld [vmem:[%s5124_s3 + $0x108] sm:$0xff]  ;;  %v1981_v19 = vld [vmem:[%s5124_s3 + $0x100] sm:$0xff] }
 0x23d   :  { %v4369_v61 = vpop.permute.xlu1 %1540  ;;  %v4371_v62 = vpop.permute.xlu0 %1535 }
 0x23e   :  { %5299 = vst [vmem:[#allocation178_spill] sm:$0xff] %v4369_v61  ;;  %5300 = vst [vmem:[#allocation179_spill] sm:$0xff] %v4371_v62  ;;  %2234 = vperm.xlu1 %3001, %v1980_v11   ;;  %2229 = vperm.xlu0 %3000, %v1979_v27   ;;  %v1984_v61 = vld [vmem:[%s5124_s3 + $0x118] sm:$0xff]  ;;  %v1983_v11 = vld [vmem:[%s5124_s3 + $0x110] sm:$0xff] }
 0x241   :  { %v4379_v57 = vpop.permute.xlu1 %1550  ;;  %v4381_v35 = vpop.permute.xlu0 %1545 }
 0x242   :  { %5301 = vst [vmem:[#allocation180_spill] sm:$0xff] %v4379_v57  ;;  %5302 = vst [vmem:[#allocation181_spill] sm:$0xff] %v4381_v35  ;;  %2244 = vperm.xlu1 %3001, %v1982_v3   ;;  %2239 = vperm.xlu0 %3000, %v1981_v19   ;;  %v1986_v57 = vld [vmem:[%s5124_s3 + $0x128] sm:$0xff]  ;;  %v1985_v3 = vld [vmem:[%s5124_s3 + $0x120] sm:$0xff] }
 0x245   :  { %v4389_v27 = vpop.permute.xlu1 %1560  ;;  %v4391_v62 = vpop.permute.xlu0 %1555 }
 0x246   :  { %5303 = vst [vmem:[#allocation182_spill] sm:$0xff] %v4389_v27  ;;  %5304 = vst [vmem:[#allocation183_spill] sm:$0xff] %v4391_v62  ;;  %2254 = vperm.xlu1 %3001, %v1984_v61   ;;  %2249 = vperm.xlu0 %3000, %v1983_v11   ;;  %v1988_v27 = vld [vmem:[%s5124_s3 + $0x138] sm:$0xff]  ;;  %v1987_v61 = vld [vmem:[%s5124_s3 + $0x130] sm:$0xff] }
 0x249   :  { %v4399_v19 = vpop.permute.xlu1 %1570  ;;  %v4401_v35 = vpop.permute.xlu0 %1565 }
 0x24a   :  { %5305 = vst [vmem:[#allocation184_spill] sm:$0xff] %v4399_v19  ;;  %5306 = vst [vmem:[#allocation185_spill] sm:$0xff] %v4401_v35  ;;  %2264 = vperm.xlu1 %3001, %v1986_v57   ;;  %2259 = vperm.xlu0 %3000, %v1985_v3   ;;  %v1990_v19 = vld [vmem:[%s5124_s3 + $0x148] sm:$0xff]  ;;  %v1989_v57 = vld [vmem:[%s5124_s3 + $0x140] sm:$0xff] }
 0x24d   :  { %v4409_v11 = vpop.permute.xlu1 %1580  ;;  %v4411_v62 = vpop.permute.xlu0 %1575 }
 0x24e   :  { %5307 = vst [vmem:[#allocation186_spill] sm:$0xff] %v4409_v11  ;;  %5308 = vst [vmem:[#allocation187_spill] sm:$0xff] %v4411_v62  ;;  %2274 = vperm.xlu1 %3001, %v1988_v27   ;;  %2269 = vperm.xlu0 %3000, %v1987_v61   ;;  %v1992_v11 = vld [vmem:[%s5124_s3 + $0x158] sm:$0xff]  ;;  %v1991_v27 = vld [vmem:[%s5124_s3 + $0x150] sm:$0xff] }
 0x251   :  { %v4419_v3 = vpop.permute.xlu1 %1590  ;;  %v4421_v35 = vpop.permute.xlu0 %1585 }
 0x252   :  { %5309 = vst [vmem:[#allocation188_spill] sm:$0xff] %v4419_v3  ;;  %5310 = vst [vmem:[#allocation189_spill] sm:$0xff] %v4421_v35  ;;  %2284 = vperm.xlu1 %3001, %v1990_v19   ;;  %2279 = vperm.xlu0 %3000, %v1989_v57   ;;  %v1994_v3 = vld [vmem:[%s5124_s3 + $0x168] sm:$0xff]  ;;  %v1993_v19 = vld [vmem:[%s5124_s3 + $0x160] sm:$0xff] }
 0x255   :  { %v4429_v61 = vpop.permute.xlu1 %1600  ;;  %v4431_v62 = vpop.permute.xlu0 %1595 }
 0x256   :  { %5311 = vst [vmem:[#allocation190_spill] sm:$0xff] %v4429_v61  ;;  %5312 = vst [vmem:[#allocation191_spill] sm:$0xff] %v4431_v62  ;;  %2294 = vperm.xlu1 %3001, %v1992_v11   ;;  %2289 = vperm.xlu0 %3000, %v1991_v27   ;;  %v1996_v61 = vld [vmem:[%s5124_s3 + $0x178] sm:$0xff]  ;;  %v1995_v11 = vld [vmem:[%s5124_s3 + $0x170] sm:$0xff] }
 0x259   :  { %v4439_v57 = vpop.permute.xlu1 %1610  ;;  %v4441_v35 = vpop.permute.xlu0 %1605 }
 0x25a   :  { %5313 = vst [vmem:[#allocation192_spill] sm:$0xff] %v4439_v57  ;;  %5314 = vst [vmem:[#allocation193_spill] sm:$0xff] %v4441_v35  ;;  %2304 = vperm.xlu1 %3001, %v1994_v3   ;;  %2299 = vperm.xlu0 %3000, %v1993_v19   ;;  %v1998_v57 = vld [vmem:[%s5124_s3 + $0x188] sm:$0xff]  ;;  %v1997_v3 = vld [vmem:[%s5124_s3 + $0x180] sm:$0xff] }
 0x25d   :  { %v4449_v27 = vpop.permute.xlu1 %1620  ;;  %v4451_v62 = vpop.permute.xlu0 %1615 }
 0x25e   :  { %5315 = vst [vmem:[#allocation194_spill] sm:$0xff] %v4449_v27  ;;  %5316 = vst [vmem:[#allocation195_spill] sm:$0xff] %v4451_v62  ;;  %2314 = vperm.xlu1 %3001, %v1996_v61   ;;  %2309 = vperm.xlu0 %3000, %v1995_v11   ;;  %v2000_v27 = vld [vmem:[%s5124_s3 + $0x198] sm:$0xff]  ;;  %v1999_v61 = vld [vmem:[%s5124_s3 + $0x190] sm:$0xff] }
 0x261   :  { %v4459_v19 = vpop.permute.xlu1 %1630  ;;  %v4461_v35 = vpop.permute.xlu0 %1625 }
 0x262   :  { %5317 = vst [vmem:[#allocation196_spill] sm:$0xff] %v4459_v19  ;;  %5318 = vst [vmem:[#allocation197_spill] sm:$0xff] %v4461_v35  ;;  %2324 = vperm.xlu1 %3001, %v1998_v57   ;;  %2319 = vperm.xlu0 %3000, %v1997_v3   ;;  %v2002_v19 = vld [vmem:[%s5124_s3 + $0x1a8] sm:$0xff]  ;;  %v2001_v57 = vld [vmem:[%s5124_s3 + $0x1a0] sm:$0xff] }
 0x265   :  { %v4469_v11 = vpop.permute.xlu1 %1640  ;;  %v4471_v62 = vpop.permute.xlu0 %1635 }
 0x266   :  { %5319 = vst [vmem:[#allocation198_spill] sm:$0xff] %v4469_v11  ;;  %5320 = vst [vmem:[#allocation199_spill] sm:$0xff] %v4471_v62  ;;  %2334 = vperm.xlu1 %3001, %v2000_v27   ;;  %2329 = vperm.xlu0 %3000, %v1999_v61   ;;  %v2004_v11 = vld [vmem:[%s5124_s3 + $0x1b8] sm:$0xff]  ;;  %v2003_v27 = vld [vmem:[%s5124_s3 + $0x1b0] sm:$0xff] }
 0x269   :  { %v4479_v3 = vpop.permute.xlu1 %1650  ;;  %v4481_v35 = vpop.permute.xlu0 %1645 }
 0x26a   :  { %5321 = vst [vmem:[#allocation200_spill] sm:$0xff] %v4479_v3  ;;  %5322 = vst [vmem:[#allocation201_spill] sm:$0xff] %v4481_v35  ;;  %2344 = vperm.xlu1 %3001, %v2002_v19   ;;  %2339 = vperm.xlu0 %3000, %v2001_v57   ;;  %v2006_v3 = vld [vmem:[%s5124_s3 + $0x1c8] sm:$0xff]  ;;  %v2005_v19 = vld [vmem:[%s5124_s3 + $0x1c0] sm:$0xff] }
 0x26d   :  { %v4489_v61 = vpop.permute.xlu1 %1660  ;;  %v4491_v62 = vpop.permute.xlu0 %1655 }
 0x26e   :  { %5323 = vst [vmem:[#allocation202_spill] sm:$0xff] %v4489_v61  ;;  %5324 = vst [vmem:[#allocation203_spill] sm:$0xff] %v4491_v62  ;;  %2354 = vperm.xlu1 %3001, %v2004_v11   ;;  %2349 = vperm.xlu0 %3000, %v2003_v27   ;;  %v4506_v61 = vld [vmem:[%s5121_s0] ss:$0 sm:$0xff]  ;;  %v2008_v11 = vld [vmem:[%s5124_s3 + $0x1d8] sm:$0xff] }
 0x26f   :  { %v2007_v27 = vld [vmem:[%s5124_s3 + $0x1d0] sm:$0xff] }
 0x271   :  { %v4499_v57 = vpop.permute.xlu1 %1670  ;;  %v4501_v35 = vpop.permute.xlu0 %1665 }
 0x272   :  { %5325 = vst [vmem:[#allocation204_spill] sm:$0xff] %v4499_v57  ;;  %5326 = vst [vmem:[#allocation205_spill] sm:$0xff] %v4501_v35  ;;  %2364 = vperm.xlu1 %3001, %v2006_v3   ;;  %2359 = vperm.xlu0 %3000, %v2005_v19   ;;  %v797_v3 = vmul.f32 %v4506_v61, %v3251_v2  ;;  %v798_v19 = vmul.f32 %v4506_v61, %v3261_v6  ;;  %v2010_v35 = vld [vmem:[%s5124_s3 + $0x1e8] sm:$0xff] }
 0x273   :  { %v799_v6 = vmul.f32 %v4506_v61, %v3249_v1  ;;  %v801_v1 = vmul.f32 %v4506_v61, %v3271_v10 }
 0x275   :  { %v4514_v62 = vpop.permute.xlu1 %1680  ;;  %v4516_v57 = vpop.permute.xlu0 %1675 }
 0x276   :  { %5327 = vst [vmem:[#allocation206_spill] sm:$0xff] %v4514_v62  ;;  %5328 = vst [vmem:[#allocation207_spill] sm:$0xff] %v4516_v57  ;;  %2374 = vperm.xlu1 %3001, %v2008_v11   ;;  %2369 = vperm.xlu0 %3000, %v2007_v27   ;;  %v1694_v62 = vadd.f32 %v3889_v15, %v798_v19  ;;  %v1693_v57 = vadd.f32 %v3891_v16, %v797_v3  ;;  %v2012_v11 = vld [vmem:[%s5124_s3 + $0x1f8] sm:$0xff]  ;;  %v2011_v27 = vld [vmem:[%s5124_s3 + $0x1f0] sm:$0xff] }
 0x277   :  { %v800_v16 = vmul.f32 %v4506_v61, %v3259_v5  ;;  %v1695_v19 = vadd.f32 %v3901_v48, %v799_v6  ;;  %v2013_v5 = vld [vmem:[%s5124_s3 + $0x200] sm:$0xff]  ;;  %v1697_v48 = vadd.f32 %v3911_v56, %v801_v1 }
 0x278   :  { %v1822_v15 = vmax.f32 %v1694_v62, 0.0  ;;  %v1821_v3 = vmax.f32 %v1693_v57, 0.0  ;;  %v802_v62 = vmul.f32 %v4506_v61, %v3269_v9  ;;  %v2016_v9 = vld [vmem:[%s5124_s3 + $0x218] sm:$0xff] }
 0x279   :  { %v4530_v4 = vpop.permute.xlu1 %1690  ;;  %v4532_v2 = vpop.permute.xlu0 %1685  ;;  %v1823_v10 = vmax.f32 %v1695_v19, 0.0  ;;  %v1825_v56 = vmax.f32 %v1697_v48, 0.0 }
 0x27a   :  { %5329 = vst [vmem:[#allocation208_spill] sm:$0xff] %v4530_v4  ;;  %5330 = vst [vmem:[#allocation209_spill] sm:$0xff] %v4532_v2  ;;  %2384 = vperm.xlu1 %3001, %v2010_v35   ;;  %2379 = vperm.xlu0 %3000, %v2009_v58   ;;  %v1696_v4 = vadd.f32 %v3899_v47, %v800_v16  ;;  %v803_v47 = vmul.f32 %v4506_v61, %v3281_v14  ;;  %v2015_v14 = vld [vmem:[%s5124_s3 + $0x210] sm:$0xff] }
 0x27d   :  { %v2085_v35 = vpop.permute.xlu1 %2084  ;;  %v2080_v58 = vpop.permute.xlu0 %2079 }
 0x27e   :  { %v2718_v2 = vmul.f32 %v2085_v35, %v1822_v15  ;;  %v2717_v53 = vmul.f32 %v2080_v58, %v1821_v3  ;;  %2394 = vperm.xlu1 %3001, %v2012_v11   ;;  %2389 = vperm.xlu0 %3000, %v2011_v27   ;;  %v1824_v11 = vmax.f32 %v1696_v4, 0.0  ;;  %v1698_v27 = vadd.f32 %v3909_v0, %v802_v62 }
 0x27f   :  { %v804_v3 = vmul.f32 %v4506_v61, %v3279_v13  ;;  %v1699_v4 = vadd.f32 %v3921_v40, %v803_v47  ;;  %v2018_v40 = vld [vmem:[%s5124_s3 + $0x228] sm:$0xff]  ;;  %v807_v47 = vmul.f32 %v4506_v61, %v3301_v22  ;;  %v2019_v22 = vld [vmem:[%s5124_s3 + $0x230] sm:$0xff] }
 0x280   :  { %v2845_v16 = vadd.f32 %v2718_v2, %v2717_v53  ;;  %v805_v53 = vmul.f32 %v4506_v61, %v3291_v18  ;;  %v1826_v1 = vmax.f32 %v1698_v27, 0.0  ;;  %v2017_v18 = vld [vmem:[%s5124_s3 + $0x220] sm:$0xff] }
 0x281   :  { %v2095_v57 = vpop.permute.xlu1 %2094  ;;  %v2090_v6 = vpop.permute.xlu0 %2089  ;;  %v1700_v13 = vadd.f32 %v3919_v32, %v804_v3  ;;  %v1827_v62 = vmax.f32 %v1699_v4, 0.0 }
 0x282   :  { %v2719_v15 = vmul.f32 %v2090_v6, %v1823_v10  ;;  %2404 = vperm.xlu1 %3001, %v2014_v43   ;;  %2399 = vperm.xlu0 %3000, %v2013_v5   ;;  %v2720_v19 = vmul.f32 %v2095_v57, %v1824_v11  ;;  %v806_v5 = vmul.f32 %v4506_v61, %v3289_v17 }
 0x283   :  { %v1701_v10 = vadd.f32 %v3931_v24, %v805_v53  ;;  %v1828_v11 = vmax.f32 %v1700_v13, 0.0  ;;  %v2020_v24 = vld [vmem:[%s5124_s3 + $0x238] sm:$0xff] }
 0x284   :  { %v2846_v0 = vadd.f32 %v2845_v16, %v2719_v15  ;;  %v1702_v17 = vadd.f32 %v3929_v63, %v806_v5  ;;  %v808_v15 = vmul.f32 %v4506_v61, %v3299_v21 }
 0x285   :  { %v2105_v43 = vpop.permute.xlu1 %2104  ;;  %v2100_v2 = vpop.permute.xlu0 %2099  ;;  %v1829_v3 = vmax.f32 %v1701_v10, 0.0 }
 0x286   :  { %v2847_v35 = vadd.f32 %v2846_v0, %v2720_v19  ;;  %v2721_v58 = vmul.f32 %v2100_v2, %v1825_v56  ;;  %2414 = vperm.xlu1 %3001, %v2016_v9   ;;  %2409 = vperm.xlu0 %3000, %v2015_v14   ;;  %v2722_v48 = vmul.f32 %v2105_v43, %v1826_v1  ;;  %v1830_v0 = vmax.f32 %v1702_v17, 0.0 }
 0x287   :  { %v1703_v9 = vadd.f32 %v3941_v8, %v807_v47  ;;  %v809_v56 = vmul.f32 %v4506_v61, %v3311_v26  ;;  %v1704_v21 = vadd.f32 %v3939_v31, %v808_v15  ;;  %v810_v2 = vmul.f32 %v4506_v61, %v3309_v25  ;;  %v2022_v8 = vld [vmem:[%s5124_s3 + $0x248] sm:$0xff]  ;;  %v2021_v26 = vld [vmem:[%s5124_s3 + $0x240] sm:$0xff] }
 0x288   :  { %v2848_v32 = vadd.f32 %v2847_v35, %v2721_v58  ;;  %v811_v58 = vmul.f32 %v4506_v61, %v3321_v30  ;;  %v2023_v30 = vld [vmem:[%s5124_s3 + $0x250] sm:$0xff] }
 0x289   :  { %v2115_v57 = vpop.permute.xlu1 %2114  ;;  %v2110_v6 = vpop.permute.xlu0 %2109  ;;  %v1831_v1 = vmax.f32 %v1703_v9, 0.0  ;;  %v1705_v13 = vadd.f32 %v3951_v60, %v809_v56  ;;  %v1706_v25 = vadd.f32 %v3949_v55, %v810_v2  ;;  %v2024_v60 = vld [vmem:[%s5124_s3 + $0x258] sm:$0xff] }
 0x28a   :  { %v2849_v27 = vadd.f32 %v2848_v32, %v2722_v48  ;;  %v2723_v16 = vmul.f32 %v2110_v6, %v1827_v62  ;;  %2424 = vperm.xlu1 %3001, %v2018_v40   ;;  %2419 = vperm.xlu0 %3000, %v2017_v18   ;;  %v2724_v14 = vmul.f32 %v2115_v57, %v1828_v11  ;;  %v1832_v18 = vmax.f32 %v1704_v21, 0.0 }
 0x28b   :  { %v812_v48 = vmul.f32 %v4506_v61, %v3319_v29  ;;  %v1833_v32 = vmax.f32 %v1705_v13, 0.0  ;;  %v1707_v47 = vadd.f32 %v3961_v52, %v811_v58  ;;  %v813_v6 = vmul.f32 %v4506_v61, %v3331_v34  ;;  %v2026_v52 = vld [vmem:[%s5124_s3 + $0x268] sm:$0xff]  ;;  %v2025_v34 = vld [vmem:[%s5124_s3 + $0x260] sm:$0xff] }
 0x28c   :  { %v2850_v63 = vadd.f32 %v2849_v27, %v2723_v16  ;;  %v1834_v27 = vmax.f32 %v1706_v25, 0.0  ;;  %v816_v21 = vmul.f32 %v4506_v61, %v3339_v37  ;;  %v818_v58 = vmul.f32 %v4506_v61, %v3349_v41 }
 0x28d   :  { %v2125_v4 = vpop.permute.xlu1 %2124  ;;  %v2120_v19 = vpop.permute.xlu0 %2119  ;;  %v1708_v29 = vadd.f32 %v3959_v39, %v812_v48  ;;  %v819_v25 = vmul.f32 %v4506_v61, %v3361_v46  ;;  %v2031_v46 = vld [vmem:[%s5124_s3 + $0x290] sm:$0xff] }
 0x28e   :  { %v2851_v53 = vadd.f32 %v2850_v63, %v2724_v14  ;;  %v2725_v43 = vmul.f32 %v2120_v19, %v1829_v3  ;;  %2434 = vperm.xlu1 %3001, %v2020_v24   ;;  %2429 = vperm.xlu0 %3000, %v2019_v22   ;;  %v2726_v35 = vmul.f32 %v2125_v4, %v1830_v0  ;;  %v1835_v22 = vmax.f32 %v1707_v47, 0.0 }
 0x28f   :  { %v814_v24 = vmul.f32 %v4506_v61, %v3329_v33  ;;  %v1709_v3 = vadd.f32 %v3971_v44, %v813_v6  ;;  %v815_v14 = vmul.f32 %v4506_v61, %v3341_v38  ;;  %v1836_v4 = vmax.f32 %v1708_v29, 0.0  ;;  %v2028_v44 = vld [vmem:[%s5124_s3 + $0x278] sm:$0xff]  ;;  %v2027_v38 = vld [vmem:[%s5124_s3 + $0x270] sm:$0xff] }
 0x290   :  { %v2852_v31 = vadd.f32 %v2851_v53, %v2725_v43  ;;  %v1712_v37 = vadd.f32 %v3979_v7, %v816_v21  ;;  %v1714_v41 = vadd.f32 %v3989_v59, %v818_v58  ;;  %v821_v6 = vmul.f32 %v4506_v61, %v3371_v50  ;;  %v2033_v50 = vld [vmem:[%s5124_s3 + $0x2a0] sm:$0xff]  ;;  %v2038_v58 = vld [vmem:[%s5124_s3 + $0x2c8] sm:$0xff] }
 0x291   :  { %v2135_v5 = vpop.permute.xlu1 %2134  ;;  %v2130_v40 = vpop.permute.xlu0 %2129  ;;  %v1710_v33 = vadd.f32 %v3969_v23, %v814_v24  ;;  %v1837_v53 = vmax.f32 %v1709_v3, 0.0  ;;  %v1711_v43 = vadd.f32 %v3981_v36, %v815_v14  ;;  %v2030_v36 = vld [vmem:[%s5124_s3 + $0x288] sm:$0xff] }
 0x292   :  { %v2853_v62 = vadd.f32 %v2852_v31, %v2726_v35  ;;  %v2727_v10 = vmul.f32 %v2130_v40, %v1831_v1  ;;  %2444 = vperm.xlu1 %3001, %v2022_v8   ;;  %2439 = vperm.xlu0 %3000, %v2021_v26   ;;  %v2728_v57 = vmul.f32 %v2135_v5, %v1832_v18  ;;  %v1840_v48 = vmax.f32 %v1712_v37, 0.0 }
 0x293   :  { %v817_v8 = vmul.f32 %v4506_v61, %v3351_v42  ;;  %v1838_v13 = vmax.f32 %v1710_v33, 0.0  ;;  %v2029_v42 = vld [vmem:[%s5124_s3 + $0x280] sm:$0xff]  ;;  %v1839_v5 = vmax.f32 %v1711_v43, 0.0 }
 0x294   :  { %v2854_v55 = vadd.f32 %v2853_v62, %v2727_v10 }
 0x295   :  { %v2145_v11 = vpop.permute.xlu1 %2144  ;;  %v2140_v17 = vpop.permute.xlu0 %2139  ;;  %v1713_v40 = vadd.f32 %v3991_v28, %v817_v8  ;;  %v2032_v28 = vld [vmem:[%s5124_s3 + $0x298] sm:$0xff] }
 0x296   :  { %v2855_v16 = vadd.f32 %v2854_v55, %v2728_v57  ;;  %v2729_v15 = vmul.f32 %v2140_v17, %v1833_v32  ;;  %2454 = vperm.xlu1 %3001, %v2024_v60   ;;  %2449 = vperm.xlu0 %3000, %v2023_v30   ;;  %v2730_v9 = vmul.f32 %v2145_v11, %v1834_v27  ;;  %v1842_v27 = vmax.f32 %v1714_v41, 0.0 }
 0x297   :  { %v820_v32 = vmul.f32 %v4506_v61, %v3359_v45  ;;  %v1841_v47 = vmax.f32 %v1713_v40, 0.0  ;;  %v1715_v57 = vadd.f32 %v4001_v20, %v819_v25  ;;  %v2034_v20 = vld [vmem:[%s5124_s3 + $0x2a8] sm:$0xff] }
 0x298   :  { %v2856_v39 = vadd.f32 %v2855_v16, %v2729_v15  ;;  %v822_v15 = vmul.f32 %v4506_v61, %v3369_v49  ;;  %v5331_v49 = vld [vmem:[#allocation107_spill] sm:$0xff]  ;;  %v5338_v25 = vld [vmem:[#allocation10_spill] sm:$0xff] }
 0x299   :  { %v2155_v63 = vpop.permute.xlu1 %2154  ;;  %v2150_v56 = vpop.permute.xlu0 %2149  ;;  %v1716_v45 = vadd.f32 %v3999_v51, %v820_v32  ;;  %v1843_v24 = vmax.f32 %v1715_v57, 0.0  ;;  %v2040_v57 = vld [vmem:[%s5124_s3 + $0x2d8] sm:$0xff] }
 0x29a   :  { %v2857_v19 = vadd.f32 %v2856_v39, %v2730_v9  ;;  %v2731_v0 = vmul.f32 %v2150_v56, %v1835_v22  ;;  %2464 = vperm.xlu1 %3001, %v2026_v52   ;;  %2459 = vperm.xlu0 %3000, %v2025_v34   ;;  %v2732_v2 = vmul.f32 %v2155_v63, %v1836_v4  ;;  %v5332_v4 = vld [vmem:[#allocation6_spill] sm:$0xff] }
 0x29b   :  { %v1717_v52 = vadd.f32 %v4011_v12, %v821_v6  ;;  %v823_v22 = vmul.f32 %v4506_v61, %v3381_v54  ;;  %v1844_v39 = vmax.f32 %v1716_v45, 0.0  ;;  %v1718_v14 = vadd.f32 %v5331_v49, %v822_v15  ;;  %v2036_v12 = vld [vmem:[%s5124_s3 + $0x2b8] sm:$0xff]  ;;  %v2035_v54 = vld [vmem:[%s5124_s3 + $0x2b0] sm:$0xff] }
 0x29c   :  { %v2858_v23 = vadd.f32 %v2857_v19, %v2731_v0  ;;  %v824_v33 = vmul.f32 %v4506_v61, %v5332_v4  ;;  %v5333_v0 = vld [vmem:[#allocation109_spill] sm:$0xff]  ;;  %v5342_v45 = vld [vmem:[#allocation12_spill] sm:$0xff]  ;;  %v5345_v49 = vld [vmem:[#allocation115_spill] sm:$0xff] }
 0x29d   :  { %v2165_v26 = vpop.permute.xlu1 %2164  ;;  %v2160_v1 = vpop.permute.xlu0 %2159  ;;  %v1845_v19 = vmax.f32 %v1717_v52, 0.0  ;;  %v1719_v21 = vadd.f32 %v5333_v0, %v823_v22  ;;  %v1846_v8 = vmax.f32 %v1718_v14, 0.0  ;;  %v5341_v6 = vld [vmem:[#allocation113_spill] sm:$0xff]  ;;  %v5346_v4 = vld [vmem:[#allocation14_spill] sm:$0xff] }
 0x29e   :  { %v2859_v35 = vadd.f32 %v2858_v23, %v2732_v2  ;;  %v2733_v31 = vmul.f32 %v2160_v1, %v1837_v53  ;;  %2474 = vperm.xlu1 %3001, %v2028_v44   ;;  %2469 = vperm.xlu0 %3000, %v2027_v38   ;;  %v2734_v18 = vmul.f32 %v2165_v26, %v1838_v13  ;;  %v5334_v53 = vld [vmem:[#allocation8_spill] sm:$0xff]  ;;  %v5347_v0 = vld [vmem:[#allocation114_spill] sm:$0xff] }
 0x29f   :  { %v825_v43 = vmul.f32 %v4506_v61, %v5334_v53  ;;  %v5335_v26 = vld [vmem:[#allocation108_spill] sm:$0xff]  ;;  %v5348_v53 = vld [vmem:[#allocation13_spill] sm:$0xff] }
 0x2a0   :  { %v2860_v7 = vadd.f32 %v2859_v35, %v2733_v31  ;;  %v1720_v1 = vadd.f32 %v5335_v26, %v824_v33  ;;  %v5336_v35 = vld [vmem:[#allocation7_spill] sm:$0xff]  ;;  %v831_v33 = vmul.f32 %v4506_v61, %v5346_v4  ;;  %v5349_v26 = vld [vmem:[#allocation117_spill] sm:$0xff] }
 0x2a1   :  { %v2175_v62 = vpop.permute.xlu1 %2174  ;;  %v2170_v10 = vpop.permute.xlu0 %2169  ;;  %v826_v31 = vmul.f32 %v4506_v61, %v5336_v35  ;;  %v5350_v35 = vld [vmem:[#allocation16_spill] sm:$0xff]  ;;  %v5360_v4 = vld [vmem:[#allocation19_spill] sm:$0xff] }
 0x2a2   :  { %v2861_v60 = vadd.f32 %v2860_v7, %v2734_v18  ;;  %v2735_v30 = vmul.f32 %v2170_v10, %v1839_v5  ;;  %2484 = vperm.xlu1 %3001, %v2030_v36   ;;  %2479 = vperm.xlu0 %3000, %v2029_v42   ;;  %v2736_v55 = vmul.f32 %v2175_v62, %v1840_v48  ;;  %v2037_v36 = vld [vmem:[%s5124_s3 + $0x2c0] sm:$0xff]  ;;  %v1847_v42 = vmax.f32 %v1719_v21, 0.0  ;;  %v5337_v5 = vld [vmem:[#allocation111_spill] sm:$0xff] }
 0x2a3   :  { %v1721_v40 = vadd.f32 %v5337_v5, %v825_v43  ;;  %v827_v62 = vmul.f32 %v4506_v61, %v5338_v25  ;;  %v1848_v41 = vmax.f32 %v1720_v1, 0.0  ;;  %v832_v43 = vmul.f32 %v4506_v61, %v5348_v53  ;;  %v5351_v5 = vld [vmem:[#allocation116_spill] sm:$0xff]  ;;  %v5352_v25 = vld [vmem:[#allocation15_spill] sm:$0xff]  ;;  %v5362_v53 = vld [vmem:[#allocation22_spill] sm:$0xff] }
 0x2a4   :  { %v2862_v59 = vadd.f32 %v2861_v60, %v2735_v30  ;;  %v5339_v60 = vld [vmem:[#allocation110_spill] sm:$0xff]  ;;  %v1727_v1 = vadd.f32 %v5349_v26, %v831_v33  ;;  %v838_v33 = vmul.f32 %v4506_v61, %v5360_v4  ;;  %v5374_v4 = vld [vmem:[#allocation28_spill] sm:$0xff] }
 0x2a5   :  { %v2185_v11 = vpop.permute.xlu1 %2184  ;;  %v2180_v17 = vpop.permute.xlu0 %2179  ;;  %v1722_v30 = vadd.f32 %v5339_v60, %v826_v31  ;;  %v833_v31 = vmul.f32 %v4506_v61, %v5350_v35  ;;  %v5353_v60 = vld [vmem:[#allocation119_spill] sm:$0xff]  ;;  %v5363_v26 = vld [vmem:[#allocation122_spill] sm:$0xff]  ;;  %v5364_v35 = vld [vmem:[#allocation21_spill] sm:$0xff] }
 0x2a6   :  { %v2863_v29 = vadd.f32 %v2862_v59, %v2736_v55  ;;  %v2737_v16 = vmul.f32 %v2180_v17, %v1841_v47  ;;  %2494 = vperm.xlu1 %3001, %v2032_v28   ;;  %2489 = vperm.xlu0 %3000, %v2031_v46   ;;  %v2738_v34 = vmul.f32 %v2185_v11, %v1842_v27  ;;  %v5340_v46 = vld [vmem:[#allocation9_spill] sm:$0xff]  ;;  %v2039_v55 = vld [vmem:[%s5124_s3 + $0x2d0] sm:$0xff]  ;;  %v1849_v59 = vmax.f32 %v1721_v40, 0.0 }
 0x2a7   :  { %v828_v47 = vmul.f32 %v4506_v61, %v5340_v46  ;;  %v1723_v11 = vadd.f32 %v5341_v6, %v827_v62  ;;  %v1728_v40 = vadd.f32 %v5351_v5, %v832_v43  ;;  %v834_v62 = vmul.f32 %v4506_v61, %v5352_v25  ;;  %v5354_v46 = vld [vmem:[#allocation18_spill] sm:$0xff]  ;;  %v5365_v5 = vld [vmem:[#allocation125_spill] sm:$0xff]  ;;  %v5366_v25 = vld [vmem:[#allocation24_spill] sm:$0xff] }
 0x2a8   :  { %v2864_v51 = vadd.f32 %v2863_v29, %v2737_v16  ;;  %v829_v29 = vmul.f32 %v4506_v61, %v5342_v45  ;;  %v5355_v6 = vld [vmem:[#allocation118_spill] sm:$0xff]  ;;  %v5356_v45 = vld [vmem:[#allocation17_spill] sm:$0xff]  ;;  %v839_v43 = vmul.f32 %v4506_v61, %v5362_v53  ;;  %v5376_v53 = vld [vmem:[#allocation27_spill] sm:$0xff] }
 0x2a9   :  { %v2195_v3 = vpop.permute.xlu1 %2194  ;;  %v2190_v9 = vpop.permute.xlu0 %2189 }
 0x2aa   :  { %v2865_v63 = vadd.f32 %v2864_v51, %v2738_v34  ;;  %v2739_v56 = vmul.f32 %v2190_v9, %v1843_v24  ;;  %2504 = vperm.xlu1 %3001, %v2034_v20   ;;  %2499 = vperm.xlu0 %3000, %v2033_v50   ;;  %v2740_v44 = vmul.f32 %v2195_v3, %v1844_v39  ;;  %v1850_v20 = vmax.f32 %v1722_v30, 0.0  ;;  %v5343_v50 = vld [vmem:[#allocation112_spill] sm:$0xff]  ;;  %v5344_v51 = vld [vmem:[#allocation11_spill] sm:$0xff]  ;;  %v2041_v9 = vld [vmem:[%s5124_s3 + $0x2e0] sm:$0xff] }
 0x2ab   :  { %v1724_v24 = vadd.f32 %v5343_v50, %v828_v47  ;;  %v830_v22 = vmul.f32 %v4506_v61, %v5344_v51  ;;  %v2042_v3 = vld [vmem:[%s5124_s3 + $0x2e8] sm:$0xff]  ;;  %v1851_v39 = vmax.f32 %v1723_v11, 0.0  ;;  %v1725_v14 = vadd.f32 %v5345_v49, %v829_v29  ;;  %v5357_v50 = vld [vmem:[#allocation121_spill] sm:$0xff]  ;;  %v5358_v51 = vld [vmem:[#allocation20_spill] sm:$0xff] }
 0x2ac   :  { %v2866_v38 = vadd.f32 %v2865_v63, %v2739_v56  ;;  %v1729_v30 = vadd.f32 %v5353_v60, %v833_v31  ;;  %v835_v47 = vmul.f32 %v4506_v61, %v5354_v46  ;;  %v1730_v11 = vadd.f32 %v5355_v6, %v834_v62  ;;  %v5359_v49 = vld [vmem:[#allocation120_spill] sm:$0xff]  ;;  %v5368_v46 = vld [vmem:[#allocation23_spill] sm:$0xff] }
 0x2ad   :  { %v2205_v2 = vpop.permute.xlu1 %2204  ;;  %v2200_v23 = vpop.permute.xlu0 %2199  ;;  %v1726_v21 = vadd.f32 %v5347_v0, %v830_v22  ;;  %v836_v29 = vmul.f32 %v4506_v61, %v5356_v45  ;;  %v837_v22 = vmul.f32 %v4506_v61, %v5358_v51  ;;  %v5361_v0 = vld [vmem:[#allocation123_spill] sm:$0xff]  ;;  %v840_v31 = vmul.f32 %v4506_v61, %v5364_v35  ;;  %v5367_v60 = vld [vmem:[#allocation124_spill] sm:$0xff]  ;;  %v5370_v45 = vld [vmem:[#allocation26_spill] sm:$0xff] }
 0x2ae   :  { %v2867_v13 = vadd.f32 %v2866_v38, %v2740_v44  ;;  %v2741_v37 = vmul.f32 %v2200_v23, %v1845_v19  ;;  %2514 = vperm.xlu1 %3001, %v2036_v12   ;;  %2509 = vperm.xlu0 %3000, %v2035_v54   ;;  %v2742_v18 = vmul.f32 %v2205_v2, %v1846_v8  ;;  %v1852_v19 = vmax.f32 %v1724_v24, 0.0  ;;  %v2044_v2 = vld [vmem:[%s5124_s3 + $0x2f8] sm:$0xff]  ;;  %v2043_v23 = vld [vmem:[%s5124_s3 + $0x2f0] sm:$0xff]  ;;  %v5378_v35 = vld [vmem:[#allocation30_spill] sm:$0xff] }
 0x2af   :  { %v1853_v8 = vmax.f32 %v1725_v14, 0.0  ;;  %v1731_v24 = vadd.f32 %v5357_v50, %v835_v47  ;;  %v1732_v14 = vadd.f32 %v5359_v49, %v836_v29  ;;  %v841_v62 = vmul.f32 %v4506_v61, %v5366_v25  ;;  %v5369_v6 = vld [vmem:[#allocation127_spill] sm:$0xff]  ;;  %v5371_v50 = vld [vmem:[#allocation126_spill] sm:$0xff]  ;;  %v5372_v51 = vld [vmem:[#allocation25_spill] sm:$0xff] }
 0x2b0   :  { %v2868_v7 = vadd.f32 %v2867_v13, %v2741_v37  ;;  %v842_v47 = vmul.f32 %v4506_v61, %v5368_v46  ;;  %v843_v29 = vmul.f32 %v4506_v61, %v5370_v45  ;;  %v5373_v49 = vld [vmem:[#allocation129_spill] sm:$0xff]  ;;  %v5382_v46 = vld [vmem:[#allocation32_spill] sm:$0xff]  ;;  %v5384_v45 = vld [vmem:[#allocation31_spill] sm:$0xff] }
 0x2b1   :  { %v2215_v10 = vpop.permute.xlu1 %2214  ;;  %v2210_v48 = vpop.permute.xlu0 %2209  ;;  %v5380_v25 = vld [vmem:[#allocation29_spill] sm:$0xff] }
 0x2b2   :  { %v2869_v32 = vadd.f32 %v2868_v7, %v2742_v18  ;;  %v2743_v28 = vmul.f32 %v2210_v48, %v1847_v42  ;;  %2524 = vperm.xlu1 %3001, %v2038_v58   ;;  %2519 = vperm.xlu0 %3000, %v2037_v36   ;;  %v2744_v17 = vmul.f32 %v2215_v10, %v1848_v41  ;;  %v1854_v42 = vmax.f32 %v1726_v21, 0.0  ;;  %v2046_v10 = vld [vmem:[%s5124_s3 + $0x308] sm:$0xff]  ;;  %v2045_v48 = vld [vmem:[%s5124_s3 + $0x300] sm:$0xff] }
 0x2b3   :  { %v1855_v41 = vmax.f32 %v1727_v1, 0.0  ;;  %v1733_v21 = vadd.f32 %v5361_v0, %v837_v22  ;;  %v1734_v1 = vadd.f32 %v5363_v26, %v838_v33  ;;  %v844_v22 = vmul.f32 %v4506_v61, %v5372_v51  ;;  %v5375_v0 = vld [vmem:[#allocation128_spill] sm:$0xff]  ;;  %v5377_v26 = vld [vmem:[#allocation131_spill] sm:$0xff]  ;;  %v5386_v51 = vld [vmem:[#allocation34_spill] sm:$0xff] }
 0x2b4   :  { %v2870_v27 = vadd.f32 %v2869_v32, %v2743_v28  ;;  %v845_v33 = vmul.f32 %v4506_v61, %v5374_v4  ;;  %v5388_v4 = vld [vmem:[#allocation33_spill] sm:$0xff] }
 0x2b5   :  { %v2225_v16 = vpop.permute.xlu1 %2224  ;;  %v2220_v15 = vpop.permute.xlu0 %2219 }
 0x2b6   :  { %v2871_v52 = vadd.f32 %v2870_v27, %v2744_v17  ;;  %v2745_v34 = vmul.f32 %v2220_v15, %v1849_v59  ;;  %2534 = vperm.xlu1 %3001, %v2040_v57   ;;  %2529 = vperm.xlu0 %3000, %v2039_v55   ;;  %v2746_v63 = vmul.f32 %v2225_v16, %v1850_v20  ;;  %v1856_v59 = vmax.f32 %v1728_v40, 0.0  ;;  %v2048_v16 = vld [vmem:[%s5124_s3 + $0x318] sm:$0xff]  ;;  %v2047_v15 = vld [vmem:[%s5124_s3 + $0x310] sm:$0xff] }
 0x2b7   :  { %v1857_v20 = vmax.f32 %v1729_v30, 0.0  ;;  %v1735_v40 = vadd.f32 %v5365_v5, %v839_v43  ;;  %v1736_v30 = vadd.f32 %v5367_v60, %v840_v31  ;;  %v846_v43 = vmul.f32 %v4506_v61, %v5376_v53  ;;  %v5379_v5 = vld [vmem:[#allocation130_spill] sm:$0xff]  ;;  %v5381_v60 = vld [vmem:[#allocation133_spill] sm:$0xff]  ;;  %v5390_v53 = vld [vmem:[#allocation36_spill] sm:$0xff] }
 0x2b8   :  { %v2872_v56 = vadd.f32 %v2871_v52, %v2745_v34  ;;  %v847_v31 = vmul.f32 %v4506_v61, %v5378_v35  ;;  %v5392_v35 = vld [vmem:[#allocation35_spill] sm:$0xff] }
 0x2b9   :  { %v2235_v12 = vpop.permute.xlu1 %2234  ;;  %v2230_v54 = vpop.permute.xlu0 %2229 }
 0x2ba   :  { %v2873_v44 = vadd.f32 %v2872_v56, %v2746_v63  ;;  %v2747_v38 = vmul.f32 %v2230_v54, %v1851_v39  ;;  %2544 = vperm.xlu1 %3001, %v2042_v3   ;;  %2539 = vperm.xlu0 %3000, %v2041_v9   ;;  %v2748_v13 = vmul.f32 %v2235_v12, %v1852_v19  ;;  %v1858_v39 = vmax.f32 %v1730_v11, 0.0  ;;  %v2050_v12 = vld [vmem:[%s5124_s3 + $0x328] sm:$0xff]  ;;  %v2049_v54 = vld [vmem:[%s5124_s3 + $0x320] sm:$0xff] }
 0x2bb   :  { %v1859_v19 = vmax.f32 %v1731_v24, 0.0  ;;  %v1737_v11 = vadd.f32 %v5369_v6, %v841_v62  ;;  %v1738_v24 = vadd.f32 %v5371_v50, %v842_v47  ;;  %v848_v62 = vmul.f32 %v4506_v61, %v5380_v25  ;;  %v5383_v6 = vld [vmem:[#allocation132_spill] sm:$0xff]  ;;  %v5385_v50 = vld [vmem:[#allocation135_spill] sm:$0xff]  ;;  %v5394_v25 = vld [vmem:[#allocation38_spill] sm:$0xff] }
 0x2bc   :  { %v2874_v37 = vadd.f32 %v2873_v44, %v2747_v38  ;;  %v849_v47 = vmul.f32 %v4506_v61, %v5382_v46  ;;  %v5396_v46 = vld [vmem:[#allocation37_spill] sm:$0xff] }
 0x2bd   :  { %v2245_v58 = vpop.permute.xlu1 %2244  ;;  %v2240_v36 = vpop.permute.xlu0 %2239 }
 0x2be   :  { %v2875_v18 = vadd.f32 %v2874_v37, %v2748_v13  ;;  %v2749_v7 = vmul.f32 %v2240_v36, %v1853_v8  ;;  %2554 = vperm.xlu1 %3001, %v2044_v2   ;;  %2549 = vperm.xlu0 %3000, %v2043_v23   ;;  %v2750_v32 = vmul.f32 %v2245_v58, %v1854_v42  ;;  %v1860_v8 = vmax.f32 %v1732_v14, 0.0  ;;  %v2052_v58 = vld [vmem:[%s5124_s3 + $0x338] sm:$0xff]  ;;  %v2051_v36 = vld [vmem:[%s5124_s3 + $0x330] sm:$0xff] }
 0x2bf   :  { %v1861_v42 = vmax.f32 %v1733_v21, 0.0  ;;  %v1739_v14 = vadd.f32 %v5373_v49, %v843_v29  ;;  %v1740_v21 = vadd.f32 %v5375_v0, %v844_v22  ;;  %v850_v29 = vmul.f32 %v4506_v61, %v5384_v45  ;;  %v5387_v49 = vld [vmem:[#allocation134_spill] sm:$0xff]  ;;  %v5389_v0 = vld [vmem:[#allocation137_spill] sm:$0xff]  ;;  %v5398_v45 = vld [vmem:[#allocation40_spill] sm:$0xff] }
 0x2c0   :  { %v2876_v28 = vadd.f32 %v2875_v18, %v2749_v7  ;;  %v851_v22 = vmul.f32 %v4506_v61, %v5386_v51  ;;  %v5400_v51 = vld [vmem:[#allocation39_spill] sm:$0xff] }
 0x2c1   :  { %v2255_v57 = vpop.permute.xlu1 %2254  ;;  %v2250_v55 = vpop.permute.xlu0 %2249 }
 0x2c2   :  { %v2877_v17 = vadd.f32 %v2876_v28, %v2750_v32  ;;  %v2751_v27 = vmul.f32 %v2250_v55, %v1855_v41  ;;  %2564 = vperm.xlu1 %3001, %v2046_v10   ;;  %2559 = vperm.xlu0 %3000, %v2045_v48   ;;  %v2752_v52 = vmul.f32 %v2255_v57, %v1856_v59  ;;  %v1862_v41 = vmax.f32 %v1734_v1, 0.0  ;;  %v2054_v57 = vld [vmem:[%s5124_s3 + $0x348] sm:$0xff]  ;;  %v2053_v55 = vld [vmem:[%s5124_s3 + $0x340] sm:$0xff] }
 0x2c3   :  { %v1863_v59 = vmax.f32 %v1735_v40, 0.0  ;;  %v1741_v1 = vadd.f32 %v5377_v26, %v845_v33  ;;  %v1742_v40 = vadd.f32 %v5379_v5, %v846_v43  ;;  %v852_v33 = vmul.f32 %v4506_v61, %v5388_v4  ;;  %v5391_v26 = vld [vmem:[#allocation136_spill] sm:$0xff]  ;;  %v5393_v5 = vld [vmem:[#allocation139_spill] sm:$0xff]  ;;  %v5402_v4 = vld [vmem:[#allocation42_spill] sm:$0xff] }
 0x2c4   :  { %v2878_v34 = vadd.f32 %v2877_v17, %v2751_v27  ;;  %v853_v43 = vmul.f32 %v4506_v61, %v5390_v53  ;;  %v5404_v53 = vld [vmem:[#allocation41_spill] sm:$0xff] }
 0x2c5   :  { %v2265_v3 = vpop.permute.xlu1 %2264  ;;  %v2260_v9 = vpop.permute.xlu0 %2259 }
 0x2c6   :  { %v2879_v63 = vadd.f32 %v2878_v34, %v2752_v52  ;;  %v2753_v56 = vmul.f32 %v2260_v9, %v1857_v20  ;;  %2574 = vperm.xlu1 %3001, %v2048_v16   ;;  %2569 = vperm.xlu0 %3000, %v2047_v15   ;;  %v2754_v44 = vmul.f32 %v2265_v3, %v1858_v39  ;;  %v1864_v20 = vmax.f32 %v1736_v30, 0.0  ;;  %v2056_v3 = vld [vmem:[%s5124_s3 + $0x358] sm:$0xff]  ;;  %v2055_v9 = vld [vmem:[%s5124_s3 + $0x350] sm:$0xff] }
 0x2c7   :  { %v1865_v39 = vmax.f32 %v1737_v11, 0.0  ;;  %v1743_v30 = vadd.f32 %v5381_v60, %v847_v31  ;;  %v1744_v11 = vadd.f32 %v5383_v6, %v848_v62  ;;  %v854_v31 = vmul.f32 %v4506_v61, %v5392_v35  ;;  %v5395_v60 = vld [vmem:[#allocation138_spill] sm:$0xff]  ;;  %v5397_v6 = vld [vmem:[#allocation141_spill] sm:$0xff]  ;;  %v5406_v35 = vld [vmem:[#allocation44_spill] sm:$0xff] }
 0x2c8   :  { %v2880_v38 = vadd.f32 %v2879_v63, %v2753_v56  ;;  %v855_v62 = vmul.f32 %v4506_v61, %v5394_v25  ;;  %v5408_v25 = vld [vmem:[#allocation43_spill] sm:$0xff] }
 0x2c9   :  { %v2275_v2 = vpop.permute.xlu1 %2274  ;;  %v2270_v23 = vpop.permute.xlu0 %2269 }
 0x2ca   :  { %v2881_v13 = vadd.f32 %v2880_v38, %v2754_v44  ;;  %v2755_v37 = vmul.f32 %v2270_v23, %v1859_v19  ;;  %2584 = vperm.xlu1 %3001, %v2050_v12   ;;  %2579 = vperm.xlu0 %3000, %v2049_v54   ;;  %v2756_v18 = vmul.f32 %v2275_v2, %v1860_v8  ;;  %v1866_v19 = vmax.f32 %v1738_v24, 0.0  ;;  %v2058_v2 = vld [vmem:[%s5124_s3 + $0x368] sm:$0xff]  ;;  %v2057_v23 = vld [vmem:[%s5124_s3 + $0x360] sm:$0xff] }
 0x2cb   :  { %v1867_v8 = vmax.f32 %v1739_v14, 0.0  ;;  %v1745_v24 = vadd.f32 %v5385_v50, %v849_v47  ;;  %v1746_v14 = vadd.f32 %v5387_v49, %v850_v29  ;;  %v856_v47 = vmul.f32 %v4506_v61, %v5396_v46  ;;  %v5399_v50 = vld [vmem:[#allocation140_spill] sm:$0xff]  ;;  %v5401_v49 = vld [vmem:[#allocation143_spill] sm:$0xff]  ;;  %v4920_v46 = vld [vmem:[%s5121_s0] ss:$0 sm:$0xff] }
 0x2cc   :  { %v2882_v7 = vadd.f32 %v2881_v13, %v2755_v37  ;;  %v857_v29 = vmul.f32 %v4506_v61, %v5398_v45  ;;  %v5412_v45 = vld [vmem:[#allocation45_spill] sm:$0xff] }
 0x2cd   :  { %v2285_v10 = vpop.permute.xlu1 %2284  ;;  %v2280_v48 = vpop.permute.xlu0 %2279 }
 0x2ce   :  { %v2883_v32 = vadd.f32 %v2882_v7, %v2756_v18  ;;  %v2757_v28 = vmul.f32 %v2280_v48, %v1861_v42  ;;  %2594 = vperm.xlu1 %3001, %v2052_v58   ;;  %2589 = vperm.xlu0 %3000, %v2051_v36   ;;  %v2758_v17 = vmul.f32 %v2285_v10, %v1862_v41  ;;  %v1868_v42 = vmax.f32 %v1740_v21, 0.0  ;;  %v2060_v10 = vld [vmem:[%s5124_s3 + $0x378] sm:$0xff]  ;;  %v2059_v48 = vld [vmem:[%s5124_s3 + $0x370] sm:$0xff] }
 0x2cf   :  { %v1869_v41 = vmax.f32 %v1741_v1, 0.0  ;;  %v1747_v21 = vadd.f32 %v5389_v0, %v851_v22  ;;  %v1748_v1 = vadd.f32 %v5391_v26, %v852_v33  ;;  %v858_v22 = vmul.f32 %v4506_v61, %v5400_v51  ;;  %v5403_v0 = vld [vmem:[#allocation142_spill] sm:$0xff]  ;;  %v5405_v26 = vld [vmem:[#allocation145_spill] sm:$0xff]  ;;  %v5414_v51 = vld [vmem:[#allocation48_spill] sm:$0xff] }
 0x2d0   :  { %v2884_v27 = vadd.f32 %v2883_v32, %v2757_v28  ;;  %v859_v33 = vmul.f32 %v4506_v61, %v5402_v4  ;;  %v5416_v4 = vld [vmem:[#allocation47_spill] sm:$0xff] }
 0x2d1   :  { %v2295_v16 = vpop.permute.xlu1 %2294  ;;  %v2290_v15 = vpop.permute.xlu0 %2289 }
 0x2d2   :  { %v2885_v52 = vadd.f32 %v2884_v27, %v2758_v17  ;;  %v2759_v34 = vmul.f32 %v2290_v15, %v1863_v59  ;;  %2604 = vperm.xlu1 %3001, %v2054_v57   ;;  %2599 = vperm.xlu0 %3000, %v2053_v55   ;;  %v2760_v63 = vmul.f32 %v2295_v16, %v1864_v20  ;;  %v1870_v59 = vmax.f32 %v1742_v40, 0.0  ;;  %v2062_v16 = vld [vmem:[%s5124_s3 + $0x388] sm:$0xff]  ;;  %v2061_v15 = vld [vmem:[%s5124_s3 + $0x380] sm:$0xff] }
 0x2d3   :  { %v1871_v20 = vmax.f32 %v1743_v30, 0.0  ;;  %v1749_v40 = vadd.f32 %v5393_v5, %v853_v43  ;;  %v1750_v30 = vadd.f32 %v5395_v60, %v854_v31  ;;  %v860_v43 = vmul.f32 %v4506_v61, %v5404_v53  ;;  %v5407_v5 = vld [vmem:[#allocation144_spill] sm:$0xff]  ;;  %v5409_v60 = vld [vmem:[#allocation147_spill] sm:$0xff] }
 0x2d4   :  { %v2886_v56 = vadd.f32 %v2885_v52, %v2759_v34  ;;  %v861_v31 = vmul.f32 %v4506_v61, %v5406_v35 }
 0x2d5   :  { %v2305_v12 = vpop.permute.xlu1 %2304  ;;  %v2300_v54 = vpop.permute.xlu0 %2299 }
 0x2d6   :  { %v2887_v44 = vadd.f32 %v2886_v56, %v2760_v63  ;;  %v2761_v38 = vmul.f32 %v2300_v54, %v1865_v39  ;;  %2614 = vperm.xlu1 %3001, %v2056_v3   ;;  %2609 = vperm.xlu0 %3000, %v2055_v9   ;;  %v2762_v13 = vmul.f32 %v2305_v12, %v1866_v19  ;;  %v1872_v39 = vmax.f32 %v1744_v11, 0.0  ;;  %v2064_v12 = vld [vmem:[%s5124_s3 + $0x398] sm:$0xff]  ;;  %v2063_v54 = vld [vmem:[%s5124_s3 + $0x390] sm:$0xff] }
 0x2d7   :  { %v1873_v19 = vmax.f32 %v1745_v24, 0.0  ;;  %v1751_v11 = vadd.f32 %v5397_v6, %v855_v62  ;;  %v1752_v24 = vadd.f32 %v5399_v50, %v856_v47  ;;  %v862_v62 = vmul.f32 %v4506_v61, %v5408_v25  ;;  %v5410_v47 = vld [vmem:[#allocation46_spill] sm:$0xff]  ;;  %v5413_v50 = vld [vmem:[#allocation149_spill] sm:$0xff] }
 0x2d8   :  { %v2888_v37 = vadd.f32 %v2887_v44, %v2761_v38  ;;  %v863_v61 = vmul.f32 %v4920_v46, %v5410_v47  ;;  %v5411_v6 = vld [vmem:[#allocation146_spill] sm:$0xff] }
 0x2d9   :  { %v2315_v58 = vpop.permute.xlu1 %2314  ;;  %v2310_v36 = vpop.permute.xlu0 %2309 }
 0x2da   :  { %v2889_v18 = vadd.f32 %v2888_v37, %v2762_v13  ;;  %v2763_v7 = vmul.f32 %v2310_v36, %v1867_v8  ;;  %2624 = vperm.xlu1 %3001, %v2058_v2   ;;  %2619 = vperm.xlu0 %3000, %v2057_v23   ;;  %v2764_v32 = vmul.f32 %v2315_v58, %v1868_v42  ;;  %v1874_v8 = vmax.f32 %v1746_v14, 0.0  ;;  %v2066_v58 = vld [vmem:[%s5124_s3 + $0x3a8] sm:$0xff]  ;;  %v2065_v36 = vld [vmem:[%s5124_s3 + $0x3a0] sm:$0xff] }
 0x2db   :  { %v1875_v42 = vmax.f32 %v1747_v21, 0.0  ;;  %v1753_v14 = vadd.f32 %v5401_v49, %v857_v29  ;;  %v1754_v21 = vadd.f32 %v5403_v0, %v858_v22  ;;  %v864_v29 = vmul.f32 %v4920_v46, %v5412_v45  ;;  %v5415_v49 = vld [vmem:[#allocation148_spill] sm:$0xff] }
 0x2dc   :  { %v2890_v28 = vadd.f32 %v2889_v18, %v2763_v7  ;;  %v865_v22 = vmul.f32 %v4920_v46, %v5414_v51 }
 0x2dd   :  { %v2325_v57 = vpop.permute.xlu1 %2324  ;;  %v2320_v55 = vpop.permute.xlu0 %2319 }
 0x2de   :  { %v2891_v17 = vadd.f32 %v2890_v28, %v2764_v32  ;;  %v2765_v27 = vmul.f32 %v2320_v55, %v1869_v41  ;;  %2634 = vperm.xlu1 %3001, %v2060_v10   ;;  %2629 = vperm.xlu0 %3000, %v2059_v48   ;;  %v2766_v52 = vmul.f32 %v2325_v57, %v1870_v59  ;;  %v1876_v41 = vmax.f32 %v1748_v1, 0.0  ;;  %v2068_v57 = vld [vmem:[%s5124_s3 + $0x3b8] sm:$0xff]  ;;  %v2067_v55 = vld [vmem:[%s5124_s3 + $0x3b0] sm:$0xff] }
 0x2df   :  { %v1877_v59 = vmax.f32 %v1749_v40, 0.0  ;;  %v1755_v1 = vadd.f32 %v5405_v26, %v859_v33  ;;  %v1756_v40 = vadd.f32 %v5407_v5, %v860_v43  ;;  %v866_v33 = vmul.f32 %v4920_v46, %v5416_v4  ;;  %v5422_v5 = vld [vmem:[#allocation52_spill] sm:$0xff] }
 0x2e0   :  { %v2892_v34 = vadd.f32 %v2891_v17, %v2765_v27 }
 0x2e1   :  { %v2335_v3 = vpop.permute.xlu1 %2334  ;;  %v2330_v9 = vpop.permute.xlu0 %2329 }
 0x2e2   :  { %v2893_v63 = vadd.f32 %v2892_v34, %v2766_v52  ;;  %v2767_v56 = vmul.f32 %v2330_v9, %v1871_v20  ;;  %2644 = vperm.xlu1 %3001, %v2062_v16   ;;  %2639 = vperm.xlu0 %3000, %v2061_v15   ;;  %v2768_v44 = vmul.f32 %v2335_v3, %v1872_v39  ;;  %v1878_v20 = vmax.f32 %v1750_v30, 0.0  ;;  %v2070_v3 = vld [vmem:[%s5124_s3 + $0x3c8] sm:$0xff]  ;;  %v2069_v9 = vld [vmem:[%s5124_s3 + $0x3c0] sm:$0xff] }
 0x2e3   :  { %v1879_v39 = vmax.f32 %v1751_v11, 0.0  ;;  %v1757_v30 = vadd.f32 %v5409_v60, %v861_v31  ;;  %v1758_v11 = vadd.f32 %v5411_v6, %v862_v62  ;;  %v5421_v31 = vld [vmem:[#allocation153_spill] sm:$0xff]  ;;  %v5423_v62 = vld [vmem:[#allocation152_spill] sm:$0xff]  ;;  %v5424_v60 = vld [vmem:[#allocation51_spill] sm:$0xff] }
 0x2e4   :  { %v2894_v38 = vadd.f32 %v2893_v63, %v2767_v56 }
 0x2e5   :  { %v2345_v2 = vpop.permute.xlu1 %2344  ;;  %v2340_v23 = vpop.permute.xlu0 %2339 }
 0x2e6   :  { %v2895_v13 = vadd.f32 %v2894_v38, %v2768_v44  ;;  %v2769_v37 = vmul.f32 %v2340_v23, %v1873_v19  ;;  %2654 = vperm.xlu1 %3001, %v2064_v12   ;;  %2649 = vperm.xlu0 %3000, %v2063_v54   ;;  %v2770_v18 = vmul.f32 %v2345_v2, %v1874_v8  ;;  %v1880_v19 = vmax.f32 %v1752_v24, 0.0  ;;  %v2072_v2 = vld [vmem:[%s5124_s3 + $0x3d8] sm:$0xff]  ;;  %v2071_v23 = vld [vmem:[%s5124_s3 + $0x3d0] sm:$0xff] }
 0x2e7   :  { %v1881_v8 = vmax.f32 %v1753_v14, 0.0  ;;  %v1759_v24 = vadd.f32 %v5413_v50, %v863_v61  ;;  %v1760_v14 = vadd.f32 %v5415_v49, %v864_v29 }
 0x2e8   :  { %v2896_v7 = vadd.f32 %v2895_v13, %v2769_v37 }
 0x2e9   :  { %v2355_v10 = vpop.permute.xlu1 %2354  ;;  %v2350_v48 = vpop.permute.xlu0 %2349 }
 0x2ea   :  { %v2897_v32 = vadd.f32 %v2896_v7, %v2770_v18  ;;  %v2771_v28 = vmul.f32 %v2350_v48, %v1875_v42  ;;  %2664 = vperm.xlu1 %3001, %v2066_v58   ;;  %2659 = vperm.xlu0 %3000, %v2065_v36   ;;  %v2772_v17 = vmul.f32 %v2355_v10, %v1876_v41  ;;  %v1882_v42 = vmax.f32 %v1754_v21, 0.0  ;;  %v2074_v10 = vld [vmem:[%s5124_s3 + $0x3e8] sm:$0xff]  ;;  %v2073_v48 = vld [vmem:[%s5124_s3 + $0x3e0] sm:$0xff] }
 0x2eb   :  { %v1883_v41 = vmax.f32 %v1755_v1, 0.0 }
 0x2ec   :  { %v2898_v27 = vadd.f32 %v2897_v32, %v2771_v28 }
 0x2ed   :  { %v2365_v16 = vpop.permute.xlu1 %2364  ;;  %v2360_v15 = vpop.permute.xlu0 %2359 }
 0x2ee   :  { %v2899_v52 = vadd.f32 %v2898_v27, %v2772_v17  ;;  %v2773_v34 = vmul.f32 %v2360_v15, %v1877_v59  ;;  %2674 = vperm.xlu1 %3001, %v2068_v57   ;;  %2669 = vperm.xlu0 %3000, %v2067_v55   ;;  %v2774_v63 = vmul.f32 %v2365_v16, %v1878_v20  ;;  %v1884_v59 = vmax.f32 %v1756_v40, 0.0  ;;  %v2076_v16 = vld [vmem:[%s5124_s3 + $0x3f8] sm:$0xff]  ;;  %v2075_v15 = vld [vmem:[%s5124_s3 + $0x3f0] sm:$0xff] }
 0x2ef   :  { %v1885_v20 = vmax.f32 %v1757_v30, 0.0  ;;  %v869_v40 = vmul.f32 %v4920_v46, %v5422_v5  ;;  %v870_v30 = vmul.f32 %v4920_v46, %v5424_v60 }
 0x2f0   :  { %v2900_v56 = vadd.f32 %v2899_v52, %v2773_v34 }
 0x2f1   :  { %v2375_v12 = vpop.permute.xlu1 %2374  ;;  %v2370_v54 = vpop.permute.xlu0 %2369 }
 0x2f2   :  { %v2901_v44 = vadd.f32 %v2900_v56, %v2774_v63  ;;  %v2775_v38 = vmul.f32 %v2370_v54, %v1879_v39  ;;  %2684 = vperm.xlu1 %3001, %v2070_v3   ;;  %2679 = vperm.xlu0 %3000, %v2069_v9   ;;  %v2776_v13 = vmul.f32 %v2375_v12, %v1880_v19  ;;  %v1886_v39 = vmax.f32 %v1758_v11, 0.0  ;;  %v5417_v54 = vld [vmem:[#allocation151_spill] sm:$0xff] }
 0x2f3   :  { %v1887_v12 = vmax.f32 %v1759_v24, 0.0  ;;  %v1761_v19 = vadd.f32 %v5417_v54, %v865_v22  ;;  %v5429_v24 = vld [vmem:[#allocation157_spill] sm:$0xff]  ;;  %v5430_v22 = vld [vmem:[#allocation56_spill] sm:$0xff] }
 0x2f4   :  { %v2902_v37 = vadd.f32 %v2901_v44, %v2775_v38  ;;  %v5418_v44 = vld [vmem:[#allocation50_spill] sm:$0xff] }
 0x2f5   :  { %v2385_v58 = vpop.permute.xlu1 %2384  ;;  %v2380_v36 = vpop.permute.xlu0 %2379  ;;  %v867_v38 = vmul.f32 %v4920_v46, %v5418_v44  ;;  %v1889_v35 = vmax.f32 %v1761_v19, 0.0  ;;  %v5433_v19 = vld [vmem:[#allocation159_spill] sm:$0xff] }
 0x2f6   :  { %v2903_v18 = vadd.f32 %v2902_v37, %v2776_v13  ;;  %v2777_v7 = vmul.f32 %v2380_v36, %v1881_v8  ;;  %2694 = vperm.xlu1 %3001, %v2072_v2   ;;  %2689 = vperm.xlu0 %3000, %v2071_v23   ;;  %v2778_v32 = vmul.f32 %v2385_v58, %v1882_v42  ;;  %v1888_v2 = vmax.f32 %v1760_v14, 0.0  ;;  %v5419_v23 = vld [vmem:[#allocation150_spill] sm:$0xff]  ;;  %v5420_v13 = vld [vmem:[#allocation49_spill] sm:$0xff]  ;;  %v5431_v14 = vld [vmem:[#allocation156_spill] sm:$0xff] }
 0x2f7   :  { %v1762_v8 = vadd.f32 %v5419_v23, %v866_v33  ;;  %v868_v37 = vmul.f32 %v4920_v46, %v5420_v13  ;;  %v1763_v58 = vadd.f32 %v5421_v31, %v867_v38  ;;  %v5432_v33 = vld [vmem:[#allocation55_spill] sm:$0xff]  ;;  %v5434_v38 = vld [vmem:[#allocation58_spill] sm:$0xff] }
 0x2f8   :  { %v2904_v28 = vadd.f32 %v2903_v18, %v2777_v7 }
 0x2f9   :  { %v2395_v57 = vpop.permute.xlu1 %2394  ;;  %v2390_v55 = vpop.permute.xlu0 %2389  ;;  %v1890_v25 = vmax.f32 %v1762_v8, 0.0  ;;  %v5435_v8 = vld [vmem:[#allocation158_spill] sm:$0xff] }
 0x2fa   :  { %v2905_v17 = vadd.f32 %v2904_v28, %v2778_v32  ;;  %v2779_v27 = vmul.f32 %v2390_v55, %v1883_v41  ;;  %2704 = vperm.xlu1 %3001, %v2074_v10   ;;  %2699 = vperm.xlu0 %3000, %v2073_v48   ;;  %v2780_v52 = vmul.f32 %v2395_v57, %v1884_v59  ;;  %v1891_v32 = vmax.f32 %v1763_v58, 0.0  ;;  %v5425_v28 = vld [vmem:[#allocation155_spill] sm:$0xff]  ;;  %v5426_v55 = vld [vmem:[#allocation54_spill] sm:$0xff]  ;;  %v5437_v58 = vld [vmem:[#allocation161_spill] sm:$0xff] }
 0x2fb   :  { %v1764_v10 = vadd.f32 %v5423_v62, %v868_v37  ;;  %v1765_v47 = vadd.f32 %v5425_v28, %v869_v40  ;;  %v871_v59 = vmul.f32 %v4920_v46, %v5426_v55  ;;  %v5436_v37 = vld [vmem:[#allocation57_spill] sm:$0xff]  ;;  %v5438_v40 = vld [vmem:[#allocation60_spill] sm:$0xff] }
 0x2fc   :  { %v2906_v34 = vadd.f32 %v2905_v17, %v2779_v27  ;;  %v5427_v27 = vld [vmem:[#allocation154_spill] sm:$0xff] }
 0x2fd   :  { %v2405_v3 = vpop.permute.xlu1 %2404  ;;  %v2400_v9 = vpop.permute.xlu0 %2399  ;;  %v1892_v17 = vmax.f32 %v1764_v10, 0.0  ;;  %v1766_v45 = vadd.f32 %v5427_v27, %v870_v30  ;;  %v1893_v50 = vmax.f32 %v1765_v47, 0.0  ;;  %v5439_v10 = vld [vmem:[#allocation160_spill] sm:$0xff]  ;;  %v5440_v30 = vld [vmem:[#allocation59_spill] sm:$0xff] }
 0x2fe   :  { %v2907_v63 = vadd.f32 %v2906_v34, %v2780_v52  ;;  %v2781_v56 = vmul.f32 %v2400_v9, %v1885_v20  ;;  %2714 = vperm.xlu1 %3001, %v2076_v16   ;;  %2709 = vperm.xlu0 %3000, %v2075_v15   ;;  %v2782_v0 = vmul.f32 %v2405_v3, %v1886_v39  ;;  %v5428_v15 = vld [vmem:[#allocation53_spill] sm:$0xff]  ;;  %v5441_v47 = vld [vmem:[#allocation163_spill] sm:$0xff] }
 0x2ff   :  { %v872_v20 = vmul.f32 %v4920_v46, %v5428_v15  ;;  %v1767_v52 = vadd.f32 %v5429_v24, %v871_v59  ;;  %v873_v3 = vmul.f32 %v4920_v46, %v5430_v22  ;;  %v1894_v49 = vmax.f32 %v1766_v45, 0.0  ;;  %v5442_v59 = vld [vmem:[#allocation62_spill] sm:$0xff] }
 0x300   :  { %v2908_v21 = vadd.f32 %v2907_v63, %v2781_v56  ;;  %v5443_v45 = vld [vmem:[#allocation162_spill] sm:$0xff] }
 0x301   :  { %v2415_v53 = vpop.permute.xlu1 %2414  ;;  %v2410_v43 = vpop.permute.xlu0 %2409  ;;  %v1768_v63 = vadd.f32 %v5431_v14, %v872_v20  ;;  %v1895_v54 = vmax.f32 %v1767_v52, 0.0  ;;  %v5444_v20 = vld [vmem:[#allocation61_spill] sm:$0xff] }
 0x302   :  { %v2909_v26 = vadd.f32 %v2908_v21, %v2782_v0  ;;  %v2783_v1 = vmul.f32 %v2410_v43, %v1887_v12  ;;  %v2784_v36 = vmul.f32 %v2415_v53, %v1888_v2  ;;  %v874_v12 = vmul.f32 %v4920_v46, %v5432_v33  ;;  %v5445_v52 = vld [vmem:[#allocation165_spill] sm:$0xff] }
 0x303   :  { %v1769_v0 = vadd.f32 %v5433_v19, %v873_v3  ;;  %v875_v53 = vmul.f32 %v4920_v46, %v5434_v38  ;;  %v1896_v23 = vmax.f32 %v1768_v63, 0.0  ;;  %v5446_v3 = vld [vmem:[#allocation64_spill] sm:$0xff] }
 0x304   :  { %v2910_v42 = vadd.f32 %v2909_v26, %v2783_v1  ;;  %v1770_v26 = vadd.f32 %v5435_v8, %v874_v12  ;;  %v5447_v63 = vld [vmem:[#allocation164_spill] sm:$0xff]  ;;  %v5448_v12 = vld [vmem:[#allocation63_spill] sm:$0xff] }
 0x305   :  { %v2425_v18 = vpop.permute.xlu1 %2424  ;;  %v2420_v7 = vpop.permute.xlu0 %2419  ;;  %v1897_v31 = vmax.f32 %v1769_v0, 0.0  ;;  %v5449_v0 = vld [vmem:[#allocation167_spill] sm:$0xff] }
 0x306   :  { %v2911_v48 = vadd.f32 %v2910_v42, %v2784_v36  ;;  %v2785_v41 = vmul.f32 %v2420_v7, %v1889_v35  ;;  %v2786_v61 = vmul.f32 %v2425_v18, %v1890_v25  ;;  %v876_v35 = vmul.f32 %v4920_v46, %v5436_v37 }
 0x307   :  { %v1771_v36 = vadd.f32 %v5437_v58, %v875_v53  ;;  %v877_v18 = vmul.f32 %v4920_v46, %v5438_v40  ;;  %v1898_v62 = vmax.f32 %v1770_v26, 0.0  ;;  %v5450_v53 = vld [vmem:[#allocation66_spill] sm:$0xff] }
 0x308   :  { %v2912_v57 = vadd.f32 %v2911_v48, %v2785_v41  ;;  %v1772_v48 = vadd.f32 %v5439_v10, %v876_v35  ;;  %v5451_v26 = vld [vmem:[#allocation166_spill] sm:$0xff]  ;;  %v5452_v35 = vld [vmem:[#allocation65_spill] sm:$0xff] }
 0x309   :  { %v2435_v6 = vpop.permute.xlu1 %2434  ;;  %v2430_v11 = vpop.permute.xlu0 %2429  ;;  %v1899_v28 = vmax.f32 %v1771_v36, 0.0  ;;  %v5453_v36 = vld [vmem:[#allocation169_spill] sm:$0xff] }
 0x30a   :  { %v2787_v29 = vmul.f32 %v2430_v11, %v1891_v32  ;;  %v2913_v16 = vadd.f32 %v2912_v57, %v2786_v61  ;;  %v2788_v34 = vmul.f32 %v2435_v6, %v1892_v17  ;;  %v878_v32 = vmul.f32 %v4920_v46, %v5440_v30 }
 0x30b   :  { %v1773_v61 = vadd.f32 %v5441_v47, %v877_v18  ;;  %v879_v6 = vmul.f32 %v4920_v46, %v5442_v59  ;;  %v1900_v27 = vmax.f32 %v1772_v48, 0.0  ;;  %v5454_v18 = vld [vmem:[#allocation68_spill] sm:$0xff] }
 0x30c   :  { %v2914_v51 = vadd.f32 %v2913_v16, %v2787_v29  ;;  %v1774_v29 = vadd.f32 %v5443_v45, %v878_v32  ;;  %v5455_v48 = vld [vmem:[#allocation168_spill] sm:$0xff]  ;;  %v5456_v32 = vld [vmem:[#allocation67_spill] sm:$0xff] }
 0x30d   :  { %v2445_v9 = vpop.permute.xlu1 %2444  ;;  %v2440_v39 = vpop.permute.xlu0 %2439  ;;  %v1901_v24 = vmax.f32 %v1773_v61, 0.0  ;;  %v5457_v61 = vld [vmem:[#allocation171_spill] sm:$0xff] }
 0x30e   :  { %v2789_v56 = vmul.f32 %v2440_v39, %v1893_v50  ;;  %v2915_v4 = vadd.f32 %v2914_v51, %v2788_v34  ;;  %v2790_v21 = vmul.f32 %v2445_v9, %v1894_v49  ;;  %v880_v50 = vmul.f32 %v4920_v46, %v5444_v20 }
 0x30f   :  { %v1775_v34 = vadd.f32 %v5445_v52, %v879_v6  ;;  %v881_v9 = vmul.f32 %v4920_v46, %v5446_v3  ;;  %v1902_v14 = vmax.f32 %v1774_v29, 0.0  ;;  %v5458_v6 = vld [vmem:[#allocation70_spill] sm:$0xff] }
 0x310   :  { %v2916_v44 = vadd.f32 %v2915_v4, %v2789_v56  ;;  %v1776_v56 = vadd.f32 %v5447_v63, %v880_v50  ;;  %v5459_v29 = vld [vmem:[#allocation170_spill] sm:$0xff]  ;;  %v5460_v50 = vld [vmem:[#allocation69_spill] sm:$0xff] }
 0x311   :  { %v2455_v43 = vpop.permute.xlu1 %2454  ;;  %v2450_v2 = vpop.permute.xlu0 %2449  ;;  %v1903_v19 = vmax.f32 %v1775_v34, 0.0  ;;  %v5461_v34 = vld [vmem:[#allocation173_spill] sm:$0xff] }
 0x312   :  { %v2791_v1 = vmul.f32 %v2450_v2, %v1895_v54  ;;  %v2917_v13 = vadd.f32 %v2916_v44, %v2790_v21  ;;  %v2792_v42 = vmul.f32 %v2455_v43, %v1896_v23  ;;  %v882_v54 = vmul.f32 %v4920_v46, %v5448_v12 }
 0x313   :  { %v1777_v21 = vadd.f32 %v5449_v0, %v881_v9  ;;  %v883_v43 = vmul.f32 %v4920_v46, %v5450_v53  ;;  %v1904_v8 = vmax.f32 %v1776_v56, 0.0  ;;  %v5462_v9 = vld [vmem:[#allocation72_spill] sm:$0xff] }
 0x314   :  { %v2918_v5 = vadd.f32 %v2917_v13, %v2791_v1  ;;  %v1778_v1 = vadd.f32 %v5451_v26, %v882_v54  ;;  %v5463_v56 = vld [vmem:[#allocation172_spill] sm:$0xff]  ;;  %v5464_v54 = vld [vmem:[#allocation71_spill] sm:$0xff] }
 0x315   :  { %v2465_v7 = vpop.permute.xlu1 %2464  ;;  %v2460_v25 = vpop.permute.xlu0 %2459  ;;  %v1905_v58 = vmax.f32 %v1777_v21, 0.0  ;;  %v5465_v21 = vld [vmem:[#allocation175_spill] sm:$0xff] }
 0x316   :  { %v2793_v41 = vmul.f32 %v2460_v25, %v1897_v31  ;;  %v2919_v60 = vadd.f32 %v2918_v5, %v2792_v42  ;;  %v2794_v57 = vmul.f32 %v2465_v7, %v1898_v62  ;;  %v884_v31 = vmul.f32 %v4920_v46, %v5452_v35 }
 0x317   :  { %v1779_v42 = vadd.f32 %v5453_v36, %v883_v43  ;;  %v885_v7 = vmul.f32 %v4920_v46, %v5454_v18  ;;  %v1906_v10 = vmax.f32 %v1778_v1, 0.0  ;;  %v5466_v43 = vld [vmem:[#allocation74_spill] sm:$0xff] }
 0x318   :  { %v2920_v55 = vadd.f32 %v2919_v60, %v2793_v41  ;;  %v1780_v41 = vadd.f32 %v5455_v48, %v884_v31  ;;  %v5467_v1 = vld [vmem:[#allocation174_spill] sm:$0xff]  ;;  %v5468_v31 = vld [vmem:[#allocation73_spill] sm:$0xff] }
 0x319   :  { %v2475_v11 = vpop.permute.xlu1 %2474  ;;  %v2470_v17 = vpop.permute.xlu0 %2469  ;;  %v1907_v47 = vmax.f32 %v1779_v42, 0.0  ;;  %v5469_v42 = vld [vmem:[#allocation177_spill] sm:$0xff] }
 0x31a   :  { %v2795_v16 = vmul.f32 %v2470_v17, %v1899_v28  ;;  %v2921_v15 = vadd.f32 %v2920_v55, %v2794_v57  ;;  %v2796_v51 = vmul.f32 %v2475_v11, %v1900_v27  ;;  %v886_v28 = vmul.f32 %v4920_v46, %v5456_v32 }
 0x31b   :  { %v1781_v57 = vadd.f32 %v5457_v61, %v885_v7  ;;  %v887_v11 = vmul.f32 %v4920_v46, %v5458_v6  ;;  %v1908_v45 = vmax.f32 %v1780_v41, 0.0  ;;  %v5470_v7 = vld [vmem:[#allocation76_spill] sm:$0xff] }
 0x31c   :  { %v2922_v22 = vadd.f32 %v2921_v15, %v2795_v16  ;;  %v1782_v16 = vadd.f32 %v5459_v29, %v886_v28  ;;  %v5471_v41 = vld [vmem:[#allocation176_spill] sm:$0xff]  ;;  %v5472_v28 = vld [vmem:[#allocation75_spill] sm:$0xff] }
 0x31d   :  { %v2485_v39 = vpop.permute.xlu1 %2484  ;;  %v2480_v49 = vpop.permute.xlu0 %2479  ;;  %v1909_v52 = vmax.f32 %v1781_v57, 0.0  ;;  %v5473_v57 = vld [vmem:[#allocation179_spill] sm:$0xff] }
 0x31e   :  { %v2797_v4 = vmul.f32 %v2480_v49, %v1901_v24  ;;  %v2923_v33 = vadd.f32 %v2922_v22, %v2796_v51  ;;  %v2798_v44 = vmul.f32 %v2485_v39, %v1902_v14  ;;  %v888_v24 = vmul.f32 %v4920_v46, %v5460_v50 }
 0x31f   :  { %v1783_v51 = vadd.f32 %v5461_v34, %v887_v11  ;;  %v889_v39 = vmul.f32 %v4920_v46, %v5462_v9  ;;  %v1910_v63 = vmax.f32 %v1782_v16, 0.0  ;;  %v5474_v11 = vld [vmem:[#allocation78_spill] sm:$0xff] }
 0x320   :  { %v2924_v38 = vadd.f32 %v2923_v33, %v2797_v4  ;;  %v1784_v4 = vadd.f32 %v5463_v56, %v888_v24  ;;  %v5475_v16 = vld [vmem:[#allocation178_spill] sm:$0xff]  ;;  %v5476_v24 = vld [vmem:[#allocation77_spill] sm:$0xff] }
 0x321   :  { %v2495_v2 = vpop.permute.xlu1 %2494  ;;  %v2490_v23 = vpop.permute.xlu0 %2489  ;;  %v1911_v0 = vmax.f32 %v1783_v51, 0.0  ;;  %v5477_v51 = vld [vmem:[#allocation181_spill] sm:$0xff] }
 0x322   :  { %v2799_v13 = vmul.f32 %v2490_v23, %v1903_v19  ;;  %v2925_v37 = vadd.f32 %v2924_v38, %v2798_v44  ;;  %v2800_v5 = vmul.f32 %v2495_v2, %v1904_v8  ;;  %v890_v19 = vmul.f32 %v4920_v46, %v5464_v54 }
 0x323   :  { %v1785_v44 = vadd.f32 %v5465_v21, %v889_v39  ;;  %v891_v2 = vmul.f32 %v4920_v46, %v5466_v43  ;;  %v1912_v26 = vmax.f32 %v1784_v4, 0.0  ;;  %v5478_v39 = vld [vmem:[#allocation80_spill] sm:$0xff] }
 0x324   :  { %v2926_v40 = vadd.f32 %v2925_v37, %v2799_v13  ;;  %v1786_v13 = vadd.f32 %v5467_v1, %v890_v19  ;;  %v5479_v4 = vld [vmem:[#allocation180_spill] sm:$0xff]  ;;  %v5480_v19 = vld [vmem:[#allocation79_spill] sm:$0xff] }
 0x325   :  { %v2505_v25 = vpop.permute.xlu1 %2504  ;;  %v2500_v62 = vpop.permute.xlu0 %2499  ;;  %v1913_v36 = vmax.f32 %v1785_v44, 0.0  ;;  %v5481_v44 = vld [vmem:[#allocation183_spill] sm:$0xff] }
 0x326   :  { %v2801_v60 = vmul.f32 %v2500_v62, %v1905_v58  ;;  %v2927_v30 = vadd.f32 %v2926_v40, %v2800_v5  ;;  %v2802_v55 = vmul.f32 %v2505_v25, %v1906_v10  ;;  %v892_v58 = vmul.f32 %v4920_v46, %v5468_v31 }
 0x327   :  { %v1787_v5 = vadd.f32 %v5469_v42, %v891_v2  ;;  %v893_v25 = vmul.f32 %v4920_v46, %v5470_v7  ;;  %v1914_v48 = vmax.f32 %v1786_v13, 0.0  ;;  %v5482_v2 = vld [vmem:[#allocation82_spill] sm:$0xff] }
 0x328   :  { %v2928_v59 = vadd.f32 %v2927_v30, %v2801_v60  ;;  %v1788_v60 = vadd.f32 %v5471_v41, %v892_v58  ;;  %v5483_v13 = vld [vmem:[#allocation182_spill] sm:$0xff]  ;;  %v5484_v58 = vld [vmem:[#allocation81_spill] sm:$0xff] }
 0x329   :  { %v2515_v17 = vpop.permute.xlu1 %2514  ;;  %v2510_v27 = vpop.permute.xlu0 %2509  ;;  %v1915_v61 = vmax.f32 %v1787_v5, 0.0  ;;  %v5485_v5 = vld [vmem:[#allocation185_spill] sm:$0xff] }
 0x32a   :  { %v2803_v15 = vmul.f32 %v2510_v27, %v1907_v47  ;;  %v2929_v20 = vadd.f32 %v2928_v59, %v2802_v55  ;;  %v2804_v22 = vmul.f32 %v2515_v17, %v1908_v45  ;;  %v894_v47 = vmul.f32 %v4920_v46, %v5472_v28 }
 0x32b   :  { %v1789_v55 = vadd.f32 %v5473_v57, %v893_v25  ;;  %v895_v17 = vmul.f32 %v4920_v46, %v5474_v11  ;;  %v1916_v29 = vmax.f32 %v1788_v60, 0.0  ;;  %v5486_v25 = vld [vmem:[#allocation84_spill] sm:$0xff] }
 0x32c   :  { %v2930_v3 = vadd.f32 %v2929_v20, %v2803_v15  ;;  %v1790_v15 = vadd.f32 %v5475_v16, %v894_v47  ;;  %v5487_v60 = vld [vmem:[#allocation184_spill] sm:$0xff]  ;;  %v5488_v47 = vld [vmem:[#allocation83_spill] sm:$0xff] }
 0x32d   :  { %v2525_v49 = vpop.permute.xlu1 %2524  ;;  %v2520_v14 = vpop.permute.xlu0 %2519  ;;  %v1917_v34 = vmax.f32 %v1789_v55, 0.0  ;;  %v5489_v55 = vld [vmem:[#allocation187_spill] sm:$0xff] }
 0x32e   :  { %v2805_v33 = vmul.f32 %v2520_v14, %v1909_v52  ;;  %v2931_v12 = vadd.f32 %v2930_v3, %v2804_v22  ;;  %v2806_v38 = vmul.f32 %v2525_v49, %v1910_v63  ;;  %v896_v52 = vmul.f32 %v4920_v46, %v5476_v24 }
 0x32f   :  { %v1791_v22 = vadd.f32 %v5477_v51, %v895_v17  ;;  %v897_v49 = vmul.f32 %v4920_v46, %v5478_v39  ;;  %v1918_v56 = vmax.f32 %v1790_v15, 0.0  ;;  %v5490_v17 = vld [vmem:[#allocation86_spill] sm:$0xff] }
 0x330   :  { %v2932_v53 = vadd.f32 %v2931_v12, %v2805_v33  ;;  %v1792_v33 = vadd.f32 %v5479_v4, %v896_v52  ;;  %v5491_v15 = vld [vmem:[#allocation186_spill] sm:$0xff]  ;;  %v5492_v52 = vld [vmem:[#allocation85_spill] sm:$0xff] }
 0x331   :  { %v2535_v23 = vpop.permute.xlu1 %2534  ;;  %v2530_v8 = vpop.permute.xlu0 %2529  ;;  %v1919_v21 = vmax.f32 %v1791_v22, 0.0  ;;  %v5493_v22 = vld [vmem:[#allocation189_spill] sm:$0xff] }
 0x332   :  { %v2807_v37 = vmul.f32 %v2530_v8, %v1911_v0  ;;  %v2933_v35 = vadd.f32 %v2932_v53, %v2806_v38  ;;  %v2808_v40 = vmul.f32 %v2535_v23, %v1912_v26  ;;  %v898_v0 = vmul.f32 %v4920_v46, %v5480_v19 }
 0x333   :  { %v1793_v38 = vadd.f32 %v5481_v44, %v897_v49  ;;  %v899_v23 = vmul.f32 %v4920_v46, %v5482_v2  ;;  %v1920_v1 = vmax.f32 %v1792_v33, 0.0  ;;  %v5494_v49 = vld [vmem:[#allocation88_spill] sm:$0xff] }
 0x334   :  { %v2934_v18 = vadd.f32 %v2933_v35, %v2807_v37  ;;  %v1794_v37 = vadd.f32 %v5483_v13, %v898_v0  ;;  %v5495_v33 = vld [vmem:[#allocation188_spill] sm:$0xff]  ;;  %v5496_v0 = vld [vmem:[#allocation87_spill] sm:$0xff] }
 0x335   :  { %v2545_v62 = vpop.permute.xlu1 %2544  ;;  %v2540_v10 = vpop.permute.xlu0 %2539  ;;  %v1921_v42 = vmax.f32 %v1793_v38, 0.0  ;;  %v5497_v38 = vld [vmem:[#allocation191_spill] sm:$0xff] }
 0x336   :  { %v2809_v30 = vmul.f32 %v2540_v10, %v1913_v36  ;;  %v2935_v32 = vadd.f32 %v2934_v18, %v2808_v40  ;;  %v2810_v59 = vmul.f32 %v2545_v62, %v1914_v48  ;;  %v900_v36 = vmul.f32 %v4920_v46, %v5484_v58 }
 0x337   :  { %v1795_v40 = vadd.f32 %v5485_v5, %v899_v23  ;;  %v901_v62 = vmul.f32 %v4920_v46, %v5486_v25  ;;  %v1922_v41 = vmax.f32 %v1794_v37, 0.0  ;;  %v5498_v23 = vld [vmem:[#allocation90_spill] sm:$0xff] }
 0x338   :  { %v2936_v6 = vadd.f32 %v2935_v32, %v2809_v30  ;;  %v1796_v30 = vadd.f32 %v5487_v60, %v900_v36  ;;  %v5499_v37 = vld [vmem:[#allocation190_spill] sm:$0xff]  ;;  %v5500_v36 = vld [vmem:[#allocation89_spill] sm:$0xff] }
 0x339   :  { %v2555_v27 = vpop.permute.xlu1 %2554  ;;  %v2550_v45 = vpop.permute.xlu0 %2549  ;;  %v1923_v57 = vmax.f32 %v1795_v40, 0.0  ;;  %v5501_v40 = vld [vmem:[#allocation193_spill] sm:$0xff] }
 0x33a   :  { %v2811_v20 = vmul.f32 %v2550_v45, %v1915_v61  ;;  %v2937_v50 = vadd.f32 %v2936_v6, %v2810_v59  ;;  %v2812_v3 = vmul.f32 %v2555_v27, %v1916_v29  ;;  %v902_v61 = vmul.f32 %v4920_v46, %v5488_v47 }
 0x33b   :  { %v1797_v59 = vadd.f32 %v5489_v55, %v901_v62  ;;  %v903_v27 = vmul.f32 %v4920_v46, %v5490_v17  ;;  %v1924_v16 = vmax.f32 %v1796_v30, 0.0  ;;  %v5502_v62 = vld [vmem:[#allocation92_spill] sm:$0xff] }
 0x33c   :  { %v2938_v9 = vadd.f32 %v2937_v50, %v2811_v20  ;;  %v1798_v20 = vadd.f32 %v5491_v15, %v902_v61  ;;  %v5503_v30 = vld [vmem:[#allocation192_spill] sm:$0xff]  ;;  %v5504_v61 = vld [vmem:[#allocation91_spill] sm:$0xff] }
 0x33d   :  { %v2565_v14 = vpop.permute.xlu1 %2564  ;;  %v2560_v63 = vpop.permute.xlu0 %2559  ;;  %v1925_v51 = vmax.f32 %v1797_v59, 0.0  ;;  %v5505_v59 = vld [vmem:[#allocation195_spill] sm:$0xff] }
 0x33e   :  { %v2813_v12 = vmul.f32 %v2560_v63, %v1917_v34  ;;  %v2939_v54 = vadd.f32 %v2938_v9, %v2812_v3  ;;  %v2814_v53 = vmul.f32 %v2565_v14, %v1918_v56  ;;  %v904_v34 = vmul.f32 %v4920_v46, %v5492_v52 }
 0x33f   :  { %v1799_v3 = vadd.f32 %v5493_v22, %v903_v27  ;;  %v905_v14 = vmul.f32 %v4920_v46, %v5494_v49  ;;  %v1926_v4 = vmax.f32 %v1798_v20, 0.0  ;;  %v5506_v27 = vld [vmem:[#allocation94_spill] sm:$0xff] }
 0x340   :  { %v2940_v43 = vadd.f32 %v2939_v54, %v2813_v12  ;;  %v1800_v12 = vadd.f32 %v5495_v33, %v904_v34  ;;  %v5507_v20 = vld [vmem:[#allocation194_spill] sm:$0xff]  ;;  %v5508_v34 = vld [vmem:[#allocation93_spill] sm:$0xff] }
 0x341   :  { %v2575_v8 = vpop.permute.xlu1 %2574  ;;  %v2570_v26 = vpop.permute.xlu0 %2569  ;;  %v1927_v44 = vmax.f32 %v1799_v3, 0.0  ;;  %v5509_v3 = vld [vmem:[#allocation197_spill] sm:$0xff] }
 0x342   :  { %v2815_v35 = vmul.f32 %v2570_v26, %v1919_v21  ;;  %v2941_v31 = vadd.f32 %v2940_v43, %v2814_v53  ;;  %v2816_v18 = vmul.f32 %v2575_v8, %v1920_v1  ;;  %v906_v21 = vmul.f32 %v4920_v46, %v5496_v0 }
 0x343   :  { %v1801_v53 = vadd.f32 %v5497_v38, %v905_v14  ;;  %v907_v8 = vmul.f32 %v4920_v46, %v5498_v23  ;;  %v1928_v13 = vmax.f32 %v1800_v12, 0.0  ;;  %v5510_v14 = vld [vmem:[#allocation96_spill] sm:$0xff] }
 0x344   :  { %v2942_v7 = vadd.f32 %v2941_v31, %v2815_v35  ;;  %v1802_v35 = vadd.f32 %v5499_v37, %v906_v21  ;;  %v5511_v12 = vld [vmem:[#allocation196_spill] sm:$0xff]  ;;  %v5512_v21 = vld [vmem:[#allocation95_spill] sm:$0xff] }
 0x345   :  { %v2585_v10 = vpop.permute.xlu1 %2584  ;;  %v2580_v48 = vpop.permute.xlu0 %2579  ;;  %v1929_v5 = vmax.f32 %v1801_v53, 0.0  ;;  %v5513_v53 = vld [vmem:[#allocation199_spill] sm:$0xff] }
 0x346   :  { %v2817_v32 = vmul.f32 %v2580_v48, %v1921_v42  ;;  %v2943_v28 = vadd.f32 %v2942_v7, %v2816_v18  ;;  %v2818_v6 = vmul.f32 %v2585_v10, %v1922_v41  ;;  %v908_v42 = vmul.f32 %v4920_v46, %v5500_v36 }
 0x347   :  { %v1803_v18 = vadd.f32 %v5501_v40, %v907_v8  ;;  %v909_v10 = vmul.f32 %v4920_v46, %v5502_v62  ;;  %v1930_v60 = vmax.f32 %v1802_v35, 0.0  ;;  %v5514_v8 = vld [vmem:[#allocation98_spill] sm:$0xff] }
 0x348   :  { %v2944_v11 = vadd.f32 %v2943_v28, %v2817_v32  ;;  %v1804_v32 = vadd.f32 %v5503_v30, %v908_v42  ;;  %v5515_v35 = vld [vmem:[#allocation198_spill] sm:$0xff]  ;;  %v5516_v42 = vld [vmem:[#allocation97_spill] sm:$0xff] }
 0x349   :  { %v2595_v45 = vpop.permute.xlu1 %2594  ;;  %v2590_v29 = vpop.permute.xlu0 %2589  ;;  %v1931_v55 = vmax.f32 %v1803_v18, 0.0  ;;  %v5517_v18 = vld [vmem:[#allocation201_spill] sm:$0xff] }
 0x34a   :  { %v2819_v50 = vmul.f32 %v2590_v29, %v1923_v57  ;;  %v2945_v24 = vadd.f32 %v2944_v11, %v2818_v6  ;;  %v2820_v9 = vmul.f32 %v2595_v45, %v1924_v16  ;;  %v910_v57 = vmul.f32 %v4920_v46, %v5504_v61 }
 0x34b   :  { %v1805_v6 = vadd.f32 %v5505_v59, %v909_v10  ;;  %v911_v45 = vmul.f32 %v4920_v46, %v5506_v27  ;;  %v1932_v15 = vmax.f32 %v1804_v32, 0.0  ;;  %v5518_v10 = vld [vmem:[#allocation100_spill] sm:$0xff] }
 0x34c   :  { %v2946_v39 = vadd.f32 %v2945_v24, %v2819_v50  ;;  %v1806_v50 = vadd.f32 %v5507_v20, %v910_v57  ;;  %v5519_v32 = vld [vmem:[#allocation200_spill] sm:$0xff]  ;;  %v5520_v57 = vld [vmem:[#allocation99_spill] sm:$0xff] }
 0x34d   :  { %v2605_v63 = vpop.permute.xlu1 %2604  ;;  %v2600_v56 = vpop.permute.xlu0 %2599  ;;  %v1933_v22 = vmax.f32 %v1805_v6, 0.0  ;;  %v5521_v6 = vld [vmem:[#allocation203_spill] sm:$0xff] }
 0x34e   :  { %v2821_v54 = vmul.f32 %v2600_v56, %v1925_v51  ;;  %v2947_v19 = vadd.f32 %v2946_v39, %v2820_v9  ;;  %v2822_v43 = vmul.f32 %v2605_v63, %v1926_v4  ;;  %v912_v51 = vmul.f32 %v4920_v46, %v5508_v34 }
 0x34f   :  { %v1807_v9 = vadd.f32 %v5509_v3, %v911_v45  ;;  %v913_v63 = vmul.f32 %v4920_v46, %v5510_v14  ;;  %v1934_v33 = vmax.f32 %v1806_v50, 0.0  ;;  %v5522_v45 = vld [vmem:[#allocation102_spill] sm:$0xff] }
 0x350   :  { %v2948_v2 = vadd.f32 %v2947_v19, %v2821_v54  ;;  %v1808_v54 = vadd.f32 %v5511_v12, %v912_v51  ;;  %v5523_v50 = vld [vmem:[#allocation202_spill] sm:$0xff]  ;;  %v5524_v51 = vld [vmem:[#allocation101_spill] sm:$0xff] }
 0x351   :  { %v2615_v26 = vpop.permute.xlu1 %2614  ;;  %v2610_v1 = vpop.permute.xlu0 %2609  ;;  %v1935_v38 = vmax.f32 %v1807_v9, 0.0  ;;  %v5525_v9 = vld [vmem:[#allocation205_spill] sm:$0xff] }
 0x352   :  { %v2823_v31 = vmul.f32 %v2610_v1, %v1927_v44  ;;  %v2949_v58 = vadd.f32 %v2948_v2, %v2822_v43  ;;  %v2824_v7 = vmul.f32 %v2615_v26, %v1928_v13  ;;  %v914_v44 = vmul.f32 %v4920_v46, %v5512_v21 }
 0x353   :  { %v1809_v43 = vadd.f32 %v5513_v53, %v913_v63  ;;  %v915_v26 = vmul.f32 %v4920_v46, %v5514_v8  ;;  %v1936_v37 = vmax.f32 %v1808_v54, 0.0  ;;  %v5526_v63 = vld [vmem:[#allocation104_spill] sm:$0xff] }
 0x354   :  { %v2950_v25 = vadd.f32 %v2949_v58, %v2823_v31  ;;  %v1810_v31 = vadd.f32 %v5515_v35, %v914_v44  ;;  %v5527_v54 = vld [vmem:[#allocation204_spill] sm:$0xff]  ;;  %v5528_v44 = vld [vmem:[#allocation103_spill] sm:$0xff] }
 0x355   :  { %v2625_v48 = vpop.permute.xlu1 %2624  ;;  %v2620_v41 = vpop.permute.xlu0 %2619  ;;  %v1937_v40 = vmax.f32 %v1809_v43, 0.0  ;;  %v5529_v43 = vld [vmem:[#allocation207_spill] sm:$0xff] }
 0x356   :  { %v2825_v28 = vmul.f32 %v2620_v41, %v1929_v5  ;;  %v2951_v47 = vadd.f32 %v2950_v25, %v2824_v7  ;;  %v2826_v11 = vmul.f32 %v2625_v48, %v1930_v60  ;;  %v916_v5 = vmul.f32 %v4920_v46, %v5516_v42 }
 0x357   :  { %v1811_v7 = vadd.f32 %v5517_v18, %v915_v26  ;;  %v917_v48 = vmul.f32 %v4920_v46, %v5518_v10  ;;  %v1938_v30 = vmax.f32 %v1810_v31, 0.0  ;;  %v5530_v26 = vld [vmem:[#allocation106_spill] sm:$0xff] }
 0x358   :  { %v2952_v17 = vadd.f32 %v2951_v47, %v2825_v28  ;;  %v1812_v28 = vadd.f32 %v5519_v32, %v916_v5  ;;  %v5531_v31 = vld [vmem:[#allocation206_spill] sm:$0xff]  ;;  %v5532_v5 = vld [vmem:[#allocation105_spill] sm:$0xff] }
 0x359   :  { %v2635_v29 = vpop.permute.xlu1 %2634  ;;  %v2630_v16 = vpop.permute.xlu0 %2629  ;;  %v1939_v59 = vmax.f32 %v1811_v7, 0.0  ;;  %v5533_v7 = vld [vmem:[#allocation209_spill] sm:$0xff] }
 0x35a   :  { %v2827_v24 = vmul.f32 %v2630_v16, %v1931_v55  ;;  %v2953_v52 = vadd.f32 %v2952_v17, %v2826_v11  ;;  %v2828_v39 = vmul.f32 %v2635_v29, %v1932_v15  ;;  %v918_v55 = vmul.f32 %v4920_v46, %v5520_v57 }
 0x35b   :  { %v1813_v11 = vadd.f32 %v5521_v6, %v917_v48  ;;  %v919_v29 = vmul.f32 %v4920_v46, %v5522_v45  ;;  %v1940_v20 = vmax.f32 %v1812_v28, 0.0 }
 0x35c   :  { %v2954_v49 = vadd.f32 %v2953_v52, %v2827_v24  ;;  %v1814_v24 = vadd.f32 %v5523_v50, %v918_v55 }
 0x35d   :  { %v2645_v56 = vpop.permute.xlu1 %2644  ;;  %v2640_v4 = vpop.permute.xlu0 %2639  ;;  %v1941_v3 = vmax.f32 %v1813_v11, 0.0 }
 0x35e   :  { %v2829_v19 = vmul.f32 %v2640_v4, %v1933_v22  ;;  %v2955_v0 = vadd.f32 %v2954_v49, %v2828_v39  ;;  %v2830_v2 = vmul.f32 %v2645_v56, %v1934_v33  ;;  %v920_v22 = vmul.f32 %v4920_v46, %v5524_v51 }
 0x35f   :  { %v1815_v39 = vadd.f32 %v5525_v9, %v919_v29  ;;  %v921_v56 = vmul.f32 %v4920_v46, %v5526_v63  ;;  %v1942_v12 = vmax.f32 %v1814_v24, 0.0 }
 0x360   :  { %v2956_v23 = vadd.f32 %v2955_v0, %v2829_v19  ;;  %v1816_v19 = vadd.f32 %v5527_v54, %v920_v22 }
 0x361   :  { %v2655_v1 = vpop.permute.xlu1 %2654  ;;  %v2650_v13 = vpop.permute.xlu0 %2649  ;;  %v1943_v53 = vmax.f32 %v1815_v39, 0.0 }
 0x362   :  { %v2831_v58 = vmul.f32 %v2650_v13, %v1935_v38  ;;  %v2957_v36 = vadd.f32 %v2956_v23, %v2830_v2  ;;  %v2832_v25 = vmul.f32 %v2655_v1, %v1936_v37  ;;  %v922_v38 = vmul.f32 %v4920_v46, %v5528_v44 }
 0x363   :  { %v1817_v2 = vadd.f32 %v5529_v43, %v921_v56  ;;  %v923_v1 = vmul.f32 %v4920_v46, %v5530_v26  ;;  %v1944_v35 = vmax.f32 %v1816_v19, 0.0 }
 0x364   :  { %v2958_v62 = vadd.f32 %v2957_v36, %v2831_v58  ;;  %v1818_v58 = vadd.f32 %v5531_v31, %v922_v38 }
 0x365   :  { %v2665_v41 = vpop.permute.xlu1 %2664  ;;  %v2660_v60 = vpop.permute.xlu0 %2659  ;;  %v1945_v18 = vmax.f32 %v1817_v2, 0.0 }
 0x366   :  { %v2833_v47 = vmul.f32 %v2660_v60, %v1937_v40  ;;  %v2959_v61 = vadd.f32 %v2958_v62, %v2832_v25  ;;  %v2834_v17 = vmul.f32 %v2665_v41, %v1938_v30  ;;  %v924_v40 = vmul.f32 %v4920_v46, %v5532_v5  ;;  %v5534_v30 = vld [vmem:[#allocation208_spill] sm:$0xff] }
 0x367   :  { %v1819_v25 = vadd.f32 %v5533_v7, %v923_v1  ;;  %v1946_v60 = vmax.f32 %v1818_v58, 0.0 }
 0x368   :  { %v2960_v27 = vadd.f32 %v2959_v61, %v2833_v47  ;;  %v1820_v32 = vadd.f32 %v5534_v30, %v924_v40 }
 0x369   :  { %v2675_v16 = vpop.permute.xlu1 %2674  ;;  %v2670_v15 = vpop.permute.xlu0 %2669  ;;  %v1947_v61 = vmax.f32 %v1819_v25, 0.0 }
 0x36a   :  { %v2835_v52 = vmul.f32 %v2670_v15, %v1939_v59  ;;  %v2961_v34 = vadd.f32 %v2960_v27, %v2834_v17  ;;  %v2836_v49 = vmul.f32 %v2675_v16, %v1940_v20  ;;  %v1948_v11 = vmax.f32 %v1820_v32, 0.0 }
 0x36c   :  { %v2962_v14 = vadd.f32 %v2961_v34, %v2835_v52  ;;  %v2979_v52 = vstv %s5125_s4 }
 0x36d   :  { %v2685_v4 = vpop.permute.xlu1 %2684  ;;  %v2680_v33 = vpop.permute.xlu0 %2679 }
 0x36e   :  { %v2837_v0 = vmul.f32 %v2680_v33, %v1941_v3  ;;  %v2963_v21 = vadd.f32 %v2962_v14, %v2836_v49  ;;  %v2838_v23 = vmul.f32 %v2685_v4, %v1942_v12 }
 0x370   :  { %v2964_v8 = vadd.f32 %v2963_v21, %v2837_v0 }
 0x371   :  { %v2695_v13 = vpop.permute.xlu1 %2694  ;;  %v2690_v37 = vpop.permute.xlu0 %2689 }
 0x372   :  { %v2839_v36 = vmul.f32 %v2690_v37, %v1943_v53  ;;  %v2965_v42 = vadd.f32 %v2964_v8, %v2838_v23  ;;  %v2840_v62 = vmul.f32 %v2695_v13, %v1944_v35 }
 0x374   :  { %v2966_v10 = vadd.f32 %v2965_v42, %v2839_v36 }
 0x375   :  { %v2705_v48 = vpop.permute.xlu1 %2704  ;;  %v2700_v41 = vpop.permute.xlu0 %2699 }
 0x376   :  { %v2841_v28 = vmul.f32 %v2700_v41, %v1945_v18  ;;  %v2967_v47 = vadd.f32 %v2966_v10, %v2840_v62  ;;  %v2842_v57 = vmul.f32 %v2705_v48, %v1946_v60 }
 0x378   :  { %v2968_v55 = vadd.f32 %v2967_v47, %v2841_v28 }
 0x379   :  { %v2715_v59 = vpop.permute.xlu1 %2714  ;;  %v2710_v6 = vpop.permute.xlu0 %2709 }
 0x37a   :  { %v2843_v17 = vmul.f32 %v2710_v6, %v1947_v61  ;;  %v2969_v46 = vadd.f32 %v2968_v55, %v2842_v57  ;;  %v2844_v27 = vmul.f32 %v2715_v59, %v1948_v11 }
 0x37c   :  { %v2970_v45 = vadd.f32 %v2969_v46, %v2843_v17 }
 0x37e   :  { %v2971_v29 = vadd.f32 %v2970_v45, %v2844_v27 }
 0x380   :  { %v2972_v16 = vrot.slane %v2971_v29, 4 }
 0x382   :  { %v2973_v15 = vadd.f32 %v2972_v16, %v2971_v29 }
 0x384   :  { %v2974_v20 = vrot.slane %v2973_v15, 2 }
 0x386   :  { %v2975_v50 = vadd.f32 %v2974_v20, %v2973_v15 }
 0x388   :  { %v2976_v24 = vrot.slane %v2975_v50, 1 }
 0x38a   :  { %v2977_v34 = vadd.f32 %v2976_v24, %v2975_v50 }
 0x38c   :  { %v2980_v51 = vadd.f32 %v2979_v52, %v2977_v34 }
 0x38e   :  { %v2981_v22 = vmax.f32 %v2980_v51, 0.0 }
 0x390   :  { %2982 = vst [vmem:[#allocation3] sm:$0x1] %v2981_v22 }
 0x391   :  { %3014 = shalt.err (!%p3011_p4)
}
 0x392   :  { %2992 = dma.vmem_to_hbm [thread:$0]  %s2990_s11, 16, %s5126_s5, [#allocation4]  }
 0x393   :  { %3023 = dma.done.wait [#allocation4], 16  }
 0x394   :  { %3024 = vsyncadd [#allocation4], 4294967280 }
 0x395   :  { %2996 = vsyncpa [#allocation4], 1 }

</bundles_post_ra>
